<compile_context>
chip_gen: v5e
topology: v5e:2x2
jax: 0.10.0
libtpu: 0.0.40
codegen_flags: <defaults>
</compile_context>

<pallas_src>
import functools

import jax
import jax.numpy as jnp
from jax.experimental import pallas as pl
from jax.experimental.pallas import tpu as pltpu

NEG_SLOPE = 0.2      # LeakyReLU slope used by layers_a
EPS = 1e-12


def _leaky(x):
    return jnp.where(x > 0, x, NEG_SLOPE * x)


# -----------------------------------------------------------------------------
# Kernel
# -----------------------------------------------------------------------------
def disc_head_kernel(xa_ref, xv_ref,
                     wea_ref, bea_ref, wa1_ref, ba1_ref, wa2_ref, ba2_ref,
                     wev_ref, wv1_ref, wv2_ref,
                     wr2a_ref, br2a_ref, wr2v_ref,
                     hwa_ref, hwv_ref, hb_ref,
                     out_ref, *, adim, vdim, rank):
    bf16 = jnp.bfloat16
    f32 = jnp.float32

    def mm(w, x):
        # All matmuls run on the MXU with bf16 operands and f32 accumulation.
        return jnp.dot(w, x.astype(bf16), preferred_element_type=f32)

    def vec_roots(vs):
        # TODO(synk): VecRootS source not provided; assuming v * rsqrt(1 + |v|).
        n2 = vs[0] * vs[0] + vs[1] * vs[1] + vs[2] * vs[2]
        s = jax.lax.rsqrt(1.0 + jnp.sqrt(n2 + EPS))          # EUP ops, free slot
        return [v * s for v in vs]

    xa = xa_ref[...]                       # (adim, T)   feature-major
    xv = [xv_ref[c] for c in range(3)]     # 3 x (vdim, T)

    # Three FlatResidual blocks (static unroll over b for LLO visibility).
    for b in range(3):
        # --- scalar path: fused [layers_a[0]; a->rank] entry matmul ---------
        ea = mm(wea_ref[b], xa) + bea_ref[b]            # (adim+rank, T)
        ya = _leaky(ea[:adim])                          # first Linear + LeakyReLU
        a_r = ea[adim:adim + rank]                      # (rank, T)
        ya = _leaky(mm(wa1_ref[b], ya) + ba1_ref[b])
        ya = mm(wa2_ref[b], ya) + ba2_ref[b]            # 0.5 residual scale folded in

        # --- vector path: fused [VecLinear0; v->rank; v->rank2] entry -------
        ev = [mm(wev_ref[b], v) for v in xv]            # 3 x (vdim+2*rank, T)
        yv = [e[:vdim] for e in ev]
        v_r = [e[vdim:vdim + rank] for e in ev]
        v_r2 = [e[vdim + rank:vdim + 2 * rank] for e in ev]

        yv = vec_roots(yv)
        yv = [mm(wv1_ref[b], v) for v in yv]
        yv = vec_roots(yv)
        yv = [mm(wv2_ref[b], v) for v in yv]

        # --- ScalVecProducts (rank-bottlenecked bilinear products) ----------
        # TODO(synk): ScalVecProducts source not provided; standard definition assumed.
        dots = v_r[0] * v_r2[0] + v_r[1] * v_r2[1] + v_r[2] * v_r2[2]  # (rank, T)
        p_a = mm(wr2a_ref[b], a_r * dots) + br2a_ref[b]                # (adim, T), 0.5 folded
        p_v = [mm(wr2v_ref[b], a_r * v) for v in v_r]                  # 3 x (vdim, T)

        # --- residual update (scalar 0.5 already folded into weights) -------
        xa = xa + ya + p_a
        xv = [x + (y + p) * 0.05 for x, y, p in zip(xv, yv, p_v)]

    # --- head: lin_a(x_a*norm_a) + lin_v(|x_v|*norm_v); norms folded into weights
    vnorms = jnp.sqrt(xv[0] * xv[0] + xv[1] * xv[1] + xv[2] * xv[2])   # (vdim, T)
    out = (jnp.sum(xa * hwa_ref[...], axis=0, keepdims=True)
           + jnp.sum(vnorms * hwv_ref[...], axis=0, keepdims=True)
           + hb_ref[...])
    out_ref[...] = out.astype(out_ref.dtype)            # (1, T) lane-dense store


# -----------------------------------------------------------------------------
# Parameters (PyTorch (out_features, in_features) layout) + host-side prep
# -----------------------------------------------------------------------------
def make_params(key, adim, vdim, rank):
    """Deterministic synthetic parameters, PyTorch weight layout (out, in)."""
    ks = jax.random.split(key, 14)

    def init(k, shape, fan_in):
        return jax.random.normal(k, shape, jnp.float32) / jnp.sqrt(float(fan_in))

    return dict(
        wa=init(ks[0], (3, 3, adim, adim), adim),     # layers_a Linear weights
        ba=init(ks[1], (3, 3, adim), adim),           # layers_a biases
        wv=init(ks[2], (3, 3, vdim, vdim), vdim),     # layers_v VecLinear (no bias)
        wa2r=init(ks[3], (3, rank, adim), adim),      # ScalVecProducts
        ba2r=init(ks[4], (3, rank), adim),
        wv2r=init(ks[5], (3, rank, vdim), vdim),
        wv2r2=init(ks[6], (3, rank, vdim), vdim),
        wr2a=init(ks[7], (3, adim, rank), rank),
        br2a=init(ks[8], (3, adim), rank),
        wr2v=init(ks[9], (3, vdim, rank), rank),
        lina_w=init(ks[10], (1, adim), adim),         # lin_a
        lina_b=init(ks[11], (1,), adim),
        linv_w=init(ks[12], (1, vdim), vdim),         # lin_v
        linv_b=init(ks[13], (1,), vdim),
    )


def _prepare_weights(P, norm_a, norm_v):
    """Fuse sibling weights, fold head norms + scalar 0.5 residual scale,
    cast matmul weights to bf16 (power-of-two scaling commutes exactly with
    the bf16 cast, so numerics match scaling after the matmul)."""
    bf, f32 = jnp.bfloat16, jnp.float32
    wea = jnp.concatenate([P['wa'][:, 0], P['wa2r']], axis=1).astype(bf)        # (3, adim+rank, adim)
    bea = jnp.concatenate([P['ba'][:, 0], P['ba2r']], axis=1)[..., None].astype(f32)
    wa1 = P['wa'][:, 1].astype(bf)
    ba1 = P['ba'][:, 1][..., None].astype(f32)
    wa2 = (P['wa'][:, 2] * 0.5).astype(bf)                                      # 0.5 residual fold
    ba2 = (P['ba'][:, 2] * 0.5)[..., None].astype(f32)
    wev = jnp.concatenate([P['wv'][:, 0], P['wv2r'], P['wv2r2']], axis=1).astype(bf)  # (3, vdim+2*rank, vdim)
    wv1 = P['wv'][:, 1].astype(bf)
    wv2 = P['wv'][:, 2].astype(bf)
    wr2a = (P['wr2a'] * 0.5).astype(bf)                                         # 0.5 residual fold
    br2a = (P['br2a'] * 0.5)[..., None].astype(f32)
    wr2v = P['wr2v'].astype(bf)
    hwa = (P['lina_w'] * norm_a).reshape(-1, 1).astype(f32)   # (adim, 1), head stays f32 (VPU)
    hwv = (P['linv_w'] * norm_v).reshape(-1, 1).astype(f32)   # (vdim, 1)
    hb = (P['lina_b'] + P['linv_b']).reshape(1, 1).astype(f32)
    return [wea, bea, wa1, ba1, wa2, ba2, wev, wv1, wv2, wr2a, br2a, wr2v, hwa, hwv, hb]


# -----------------------------------------------------------------------------
# Wrapper
# -----------------------------------------------------------------------------
def disc_head_forward(x_a, x_v, params, poly_len, *, tile_rows=1024):
    """x_a: (B, N, adim), x_v: (B, N, vdim, 3)  ->  (B, N, 1)."""
    B, N, adim = x_a.shape
    vdim = x_v.shape[2]
    rank = params['wa2r'].shape[1]
    R = B * N
    norm_a = 1.0 / (poly_len * adim ** 0.5)
    norm_v = 1.0 / (poly_len * vdim ** 0.5)

    # Feature-major activations: rows on the 128-lane axis.
    xa = jnp.transpose(x_a.reshape(R, adim), (1, 0)).astype(jnp.float32)          # (adim, R)
    xv = jnp.transpose(x_v.reshape(R, vdim, 3), (2, 1, 0)).astype(jnp.float32)    # (3, vdim, R)

    # Tile selection: multiple of 128, up to tile_rows; pad R so any shape works.
    tile = min(int(tile_rows), 128 * pl.cdiv(R, 128))
    tile = max(128, 128 * (tile // 128))
    ntiles = pl.cdiv(R, tile)
    R_pad = ntiles * tile
    if R_pad != R:
        xa = jnp.pad(xa, ((0, 0), (0, R_pad - R)))
        xv = jnp.pad(xv, ((0, 0), (0, 0), (0, R_pad - R)))

    weights = _prepare_weights(params, norm_a, norm_v)
    # Constant index maps: weight tiles are DMA'd once and revisited per step.
    weight_specs = [pl.BlockSpec(w.shape, (lambda i, nd=w.ndim: (0,) * nd))
                    for w in weights]

    kernel = functools.partial(disc_head_kernel, adim=adim, vdim=vdim, rank=rank)
    out = pl.pallas_call(
        kernel,
        out_shape=jax.ShapeDtypeStruct((1, R_pad), jnp.float32),
        grid_spec=pltpu.PrefetchScalarGridSpec(
            num_scalar_prefetch=0,
            grid=(ntiles,),
            in_specs=[pl.BlockSpec((adim, tile), lambda i: (0, i)),
                      pl.BlockSpec((3, vdim, tile), lambda i: (0, 0, i))]
                     + weight_specs,
            out_specs=pl.BlockSpec((1, tile), lambda i: (0, i)),
        ),
        compiler_params=pltpu.CompilerParams(dimension_semantics=("parallel",)),
    )(xa, xv, *weights)
    return out[0, :R].reshape(B, N, 1)


# -----------------------------------------------------------------------------
# Pure-JAX reference (same bf16-matmul / f32-accumulate numerics as the kernel)
# -----------------------------------------------------------------------------
def ref_forward(x_a, x_v, P, poly_len):
    B, N, adim = x_a.shape
    vdim = x_v.shape[2]
    bf = jnp.bfloat16
    norm_a = 1.0 / (poly_len * adim ** 0.5)
    norm_v = 1.0 / (poly_len * vdim ** 0.5)
    xa = x_a.reshape(B * N, adim).astype(jnp.float32)
    xv = x_v.reshape(B * N, vdim, 3).astype(jnp.float32)

    def lin(x, w, b=None):          # x (R, in), w (out, in)
        y = jnp.dot(x.astype(bf), w.T.astype(bf), preferred_element_type=jnp.float32)
        return y if b is None else y + b

    def vlin(v, w):                 # v (R, vin, 3), w (vout, vin)
        return jnp.einsum('ric,oi->roc', v.astype(bf), w.astype(bf),
                          preferred_element_type=jnp.float32)

    def vroots(v):
        n = jnp.sqrt(jnp.sum(v * v, axis=-1, keepdims=True) + EPS)
        return v * jax.lax.rsqrt(1.0 + n)

    for b in range(3):
        ya = _leaky(lin(xa, P['wa'][b, 0], P['ba'][b, 0]))
        ya = _leaky(lin(ya, P['wa'][b, 1], P['ba'][b, 1]))
        ya = lin(ya, P['wa'][b, 2], P['ba'][b, 2])
        yv = vroots(vlin(xv, P['wv'][b, 0]))
        yv = vroots(vlin(yv, P['wv'][b, 1]))
        yv = vlin(yv, P['wv'][b, 2])
        a_r = lin(xa, P['wa2r'][b], P['ba2r'][b])
        v_r = vlin(xv, P['wv2r'][b])
        v_r2 = vlin(xv, P['wv2r2'][b])
        dots = jnp.sum(v_r * v_r2, axis=-1)
        p_a = lin(a_r * dots, P['wr2a'][b], P['br2a'][b])
        p_v = vlin(a_r[..., None] * v_r, P['wr2v'][b])
        xa = xa + (ya + p_a) * 0.5
        xv = xv + (yv + p_v) * 0.05

    vn = jnp.sqrt(jnp.sum(xv * xv, axis=-1))
    out = (xa @ (P['lina_w'] * norm_a).T + vn @ (P['linv_w'] * norm_v).T
           + P['lina_b'] + P['linv_b'])
    return out.reshape(B, N, 1)


if __name__ == "__main__":
    B, poly_len = 2, 8
    adim, vdim, rank = 32, 16, 8

    key = jax.random.PRNGKey(0)
    k_a, k_v, k_p = jax.random.split(key, 3)
    x_a = jax.random.normal(k_a, (B, poly_len, adim), jnp.float32)
    x_v = jax.random.normal(k_v, (B, poly_len, vdim, 3), jnp.float32)
    params = make_params(k_p, adim, vdim, rank)

    out = disc_head_forward(x_a, x_v, params, poly_len)
    out = jax.block_until_ready(out)

    ref = ref_forward(x_a, x_v, params, poly_len)
    assert out.shape == (B, poly_len, 1)
    err = float(jnp.max(jnp.abs(out - ref)))
    scale = float(jnp.max(jnp.abs(ref))) + 1e-6
    assert err <= 2e-3 * max(1.0, scale), f"kernel mismatch: err={err}, scale={scale}"

    print("KERNEL_OK")
</pallas_src>

<mosaic_0001>
module attributes {stable_mosaic.version = 11 : i64} {
  func.func @disc_head_kernel(%arg0: i32, %arg1: memref<32x128xf32, #tpu.memory_space<vmem>>, %arg2: memref<3x16x128xf32, #tpu.memory_space<vmem>>, %arg3: memref<3x40x32xbf16, #tpu.memory_space<vmem>>, %arg4: memref<3x40x1xf32, #tpu.memory_space<vmem>>, %arg5: memref<3x32x32xbf16, #tpu.memory_space<vmem>>, %arg6: memref<3x32x1xf32, #tpu.memory_space<vmem>>, %arg7: memref<3x32x32xbf16, #tpu.memory_space<vmem>>, %arg8: memref<3x32x1xf32, #tpu.memory_space<vmem>>, %arg9: memref<3x32x16xbf16, #tpu.memory_space<vmem>>, %arg10: memref<3x16x16xbf16, #tpu.memory_space<vmem>>, %arg11: memref<3x16x16xbf16, #tpu.memory_space<vmem>>, %arg12: memref<3x32x8xbf16, #tpu.memory_space<vmem>>, %arg13: memref<3x32x1xf32, #tpu.memory_space<vmem>>, %arg14: memref<3x16x8xbf16, #tpu.memory_space<vmem>>, %arg15: memref<32x1xf32, #tpu.memory_space<vmem>>, %arg16: memref<16x1xf32, #tpu.memory_space<vmem>>, %arg17: memref<1x1xf32, #tpu.memory_space<vmem>>, %arg18: memref<1x128xf32, #tpu.memory_space<vmem>>) attributes {dimension_semantics = [#tpu.dimension_semantics<parallel>], iteration_bounds = array<i64: 1>, scalar_prefetch = 0 : i64, scratch_operands = 0 : i64, tpu.core_type = #tpu.core_type<tc>, window_params = [{transform_indices = @transform_0, window_bounds = array<i64: 32, 128>}, {transform_indices = @transform_1, window_bounds = array<i64: 3, 16, 128>}, {pipeline_mode = #tpu.pipeline_mode<synchronous>, transform_indices = @transform_2, window_bounds = array<i64: 3, 40, 32>}, {pipeline_mode = #tpu.pipeline_mode<synchronous>, transform_indices = @transform_3, window_bounds = array<i64: 3, 40, 1>}, {pipeline_mode = #tpu.pipeline_mode<synchronous>, transform_indices = @transform_4, window_bounds = array<i64: 3, 32, 32>}, {pipeline_mode = #tpu.pipeline_mode<synchronous>, transform_indices = @transform_5, window_bounds = array<i64: 3, 32, 1>}, {pipeline_mode = #tpu.pipeline_mode<synchronous>, transform_indices = @transform_6, window_bounds = array<i64: 3, 32, 32>}, {pipeline_mode = #tpu.pipeline_mode<synchronous>, transform_indices = @transform_7, window_bounds = array<i64: 3, 32, 1>}, {pipeline_mode = #tpu.pipeline_mode<synchronous>, transform_indices = @transform_8, window_bounds = array<i64: 3, 32, 16>}, {pipeline_mode = #tpu.pipeline_mode<synchronous>, transform_indices = @transform_9, window_bounds = array<i64: 3, 16, 16>}, {pipeline_mode = #tpu.pipeline_mode<synchronous>, transform_indices = @transform_10, window_bounds = array<i64: 3, 16, 16>}, {pipeline_mode = #tpu.pipeline_mode<synchronous>, transform_indices = @transform_11, window_bounds = array<i64: 3, 32, 8>}, {pipeline_mode = #tpu.pipeline_mode<synchronous>, transform_indices = @transform_12, window_bounds = array<i64: 3, 32, 1>}, {pipeline_mode = #tpu.pipeline_mode<synchronous>, transform_indices = @transform_13, window_bounds = array<i64: 3, 16, 8>}, {pipeline_mode = #tpu.pipeline_mode<synchronous>, transform_indices = @transform_14, window_bounds = array<i64: 32, 1>}, {pipeline_mode = #tpu.pipeline_mode<synchronous>, transform_indices = @transform_15, window_bounds = array<i64: 16, 1>}, {pipeline_mode = #tpu.pipeline_mode<synchronous>, transform_indices = @transform_16, window_bounds = array<i64: 1, 1>}, {transform_indices = @transform_17, window_bounds = array<i64: 1, 128>}]} {
    %c0 = arith.constant 0 : index
    %c0_0 = arith.constant 0 : index
    %0 = vector.load %arg1[%c0, %c0_0] : memref<32x128xf32, #tpu.memory_space<vmem>>, vector<32x128xf32>
    %c0_1 = arith.constant 0 : index
    %c0_2 = arith.constant 0 : index
    %c0_3 = arith.constant 0 : index
    %1 = vector.load %arg2[%c0_1, %c0_2, %c0_3] : memref<3x16x128xf32, #tpu.memory_space<vmem>>, vector<1x16x128xf32>
    %2 = vector.shape_cast %1 : vector<1x16x128xf32> to vector<16x128xf32>
    %c1 = arith.constant 1 : index
    %c0_4 = arith.constant 0 : index
    %c0_5 = arith.constant 0 : index
    %3 = vector.load %arg2[%c1, %c0_4, %c0_5] : memref<3x16x128xf32, #tpu.memory_space<vmem>>, vector<1x16x128xf32>
    %4 = vector.shape_cast %3 : vector<1x16x128xf32> to vector<16x128xf32>
    %c2 = arith.constant 2 : index
    %c0_6 = arith.constant 0 : index
    %c0_7 = arith.constant 0 : index
    %5 = vector.load %arg2[%c2, %c0_6, %c0_7] : memref<3x16x128xf32, #tpu.memory_space<vmem>>, vector<1x16x128xf32>
    %6 = vector.shape_cast %5 : vector<1x16x128xf32> to vector<16x128xf32>
    %c0_8 = arith.constant 0 : index
    %c0_9 = arith.constant 0 : index
    %c0_10 = arith.constant 0 : index
    %7 = vector.load %arg3[%c0_8, %c0_9, %c0_10] : memref<3x40x32xbf16, #tpu.memory_space<vmem>>, vector<1x40x32xbf16>
    %8 = vector.shape_cast %7 : vector<1x40x32xbf16> to vector<40x32xbf16>
    %9 = arith.truncf %0 : vector<32x128xf32> to vector<32x128xbf16>
    %cst = arith.constant dense<0.000000e+00> : vector<40x128xf32>
    %10 = tpu.matmul %8, %9, %cst {dimension_numbers = #tpu.dot_dimension_numbers<[1], [0], [0], [1], [0, 0, 1, 1], [], []>} : vector<40x32xbf16>, vector<32x128xbf16>, vector<40x128xf32> -> vector<40x128xf32>
    %c0_11 = arith.constant 0 : index
    %c0_12 = arith.constant 0 : index
    %c0_13 = arith.constant 0 : index
    %11 = vector.load %arg4[%c0_11, %c0_12, %c0_13] : memref<3x40x1xf32, #tpu.memory_space<vmem>>, vector<1x40x1xf32>
    %12 = vector.shape_cast %11 : vector<1x40x1xf32> to vector<40x1xf32>
    %13 = vector.broadcast %12 : vector<40x1xf32> to vector<40x128xf32>
    %14 = arith.addf %10, %13 : vector<40x128xf32>
    %15 = vector.extract_strided_slice %14 {offsets = [0, 0], sizes = [32, 128], strides = [1, 1]} : vector<40x128xf32> to vector<32x128xf32>
    %cst_14 = arith.constant 0.000000e+00 : f32
    %16 = vector.broadcast %cst_14 : f32 to vector<32x128xf32>
    %17 = arith.cmpf ogt, %15, %16 : vector<32x128xf32>
    %cst_15 = arith.constant 2.000000e-01 : f32
    %18 = vector.broadcast %cst_15 : f32 to vector<32x128xf32>
    %19 = arith.mulf %18, %15 : vector<32x128xf32>
    %20 = arith.select %17, %15, %19 : vector<32x128xi1>, vector<32x128xf32>
    %21 = vector.extract_strided_slice %14 {offsets = [32, 0], sizes = [8, 128], strides = [1, 1]} : vector<40x128xf32> to vector<8x128xf32>
    %c0_16 = arith.constant 0 : index
    %c0_17 = arith.constant 0 : index
    %c0_18 = arith.constant 0 : index
    %22 = vector.load %arg5[%c0_16, %c0_17, %c0_18] : memref<3x32x32xbf16, #tpu.memory_space<vmem>>, vector<1x32x32xbf16>
    %23 = vector.shape_cast %22 : vector<1x32x32xbf16> to vector<32x32xbf16>
    %24 = arith.truncf %20 : vector<32x128xf32> to vector<32x128xbf16>
    %cst_19 = arith.constant dense<0.000000e+00> : vector<32x128xf32>
    %25 = tpu.matmul %23, %24, %cst_19 {dimension_numbers = #tpu.dot_dimension_numbers<[1], [0], [0], [1], [0, 0, 1, 1], [], []>} : vector<32x32xbf16>, vector<32x128xbf16>, vector<32x128xf32> -> vector<32x128xf32>
    %c0_20 = arith.constant 0 : index
    %c0_21 = arith.constant 0 : index
    %c0_22 = arith.constant 0 : index
    %26 = vector.load %arg6[%c0_20, %c0_21, %c0_22] : memref<3x32x1xf32, #tpu.memory_space<vmem>>, vector<1x32x1xf32>
    %27 = vector.shape_cast %26 : vector<1x32x1xf32> to vector<32x1xf32>
    %28 = vector.broadcast %27 : vector<32x1xf32> to vector<32x128xf32>
    %29 = arith.addf %25, %28 : vector<32x128xf32>
    %cst_23 = arith.constant 0.000000e+00 : f32
    %30 = vector.broadcast %cst_23 : f32 to vector<32x128xf32>
    %31 = arith.cmpf ogt, %29, %30 : vector<32x128xf32>
    %cst_24 = arith.constant 2.000000e-01 : f32
    %32 = vector.broadcast %cst_24 : f32 to vector<32x128xf32>
    %33 = arith.mulf %32, %29 : vector<32x128xf32>
    %34 = arith.select %31, %29, %33 : vector<32x128xi1>, vector<32x128xf32>
    %c0_25 = arith.constant 0 : index
    %c0_26 = arith.constant 0 : index
    %c0_27 = arith.constant 0 : index
    %35 = vector.load %arg7[%c0_25, %c0_26, %c0_27] : memref<3x32x32xbf16, #tpu.memory_space<vmem>>, vector<1x32x32xbf16>
    %36 = vector.shape_cast %35 : vector<1x32x32xbf16> to vector<32x32xbf16>
    %37 = arith.truncf %34 : vector<32x128xf32> to vector<32x128xbf16>
    %cst_28 = arith.constant dense<0.000000e+00> : vector<32x128xf32>
    %38 = tpu.matmul %36, %37, %cst_28 {dimension_numbers = #tpu.dot_dimension_numbers<[1], [0], [0], [1], [0, 0, 1, 1], [], []>} : vector<32x32xbf16>, vector<32x128xbf16>, vector<32x128xf32> -> vector<32x128xf32>
    %c0_29 = arith.constant 0 : index
    %c0_30 = arith.constant 0 : index
    %c0_31 = arith.constant 0 : index
    %39 = vector.load %arg8[%c0_29, %c0_30, %c0_31] : memref<3x32x1xf32, #tpu.memory_space<vmem>>, vector<1x32x1xf32>
    %40 = vector.shape_cast %39 : vector<1x32x1xf32> to vector<32x1xf32>
    %41 = vector.broadcast %40 : vector<32x1xf32> to vector<32x128xf32>
    %42 = arith.addf %38, %41 : vector<32x128xf32>
    %c0_32 = arith.constant 0 : index
    %c0_33 = arith.constant 0 : index
    %c0_34 = arith.constant 0 : index
    %43 = vector.load %arg9[%c0_32, %c0_33, %c0_34] : memref<3x32x16xbf16, #tpu.memory_space<vmem>>, vector<1x32x16xbf16>
    %44 = vector.shape_cast %43 : vector<1x32x16xbf16> to vector<32x16xbf16>
    %45 = arith.truncf %2 : vector<16x128xf32> to vector<16x128xbf16>
    %cst_35 = arith.constant dense<0.000000e+00> : vector<32x128xf32>
    %46 = tpu.matmul %44, %45, %cst_35 {dimension_numbers = #tpu.dot_dimension_numbers<[1], [0], [0], [1], [0, 0, 1, 1], [], []>} : vector<32x16xbf16>, vector<16x128xbf16>, vector<32x128xf32> -> vector<32x128xf32>
    %c0_36 = arith.constant 0 : index
    %c0_37 = arith.constant 0 : index
    %c0_38 = arith.constant 0 : index
    %47 = vector.load %arg9[%c0_36, %c0_37, %c0_38] : memref<3x32x16xbf16, #tpu.memory_space<vmem>>, vector<1x32x16xbf16>
    %48 = vector.shape_cast %47 : vector<1x32x16xbf16> to vector<32x16xbf16>
    %49 = arith.truncf %4 : vector<16x128xf32> to vector<16x128xbf16>
    %cst_39 = arith.constant dense<0.000000e+00> : vector<32x128xf32>
    %50 = tpu.matmul %48, %49, %cst_39 {dimension_numbers = #tpu.dot_dimension_numbers<[1], [0], [0], [1], [0, 0, 1, 1], [], []>} : vector<32x16xbf16>, vector<16x128xbf16>, vector<32x128xf32> -> vector<32x128xf32>
    %c0_40 = arith.constant 0 : index
    %c0_41 = arith.constant 0 : index
    %c0_42 = arith.constant 0 : index
    %51 = vector.load %arg9[%c0_40, %c0_41, %c0_42] : memref<3x32x16xbf16, #tpu.memory_space<vmem>>, vector<1x32x16xbf16>
    %52 = vector.shape_cast %51 : vector<1x32x16xbf16> to vector<32x16xbf16>
    %53 = arith.truncf %6 : vector<16x128xf32> to vector<16x128xbf16>
    %cst_43 = arith.constant dense<0.000000e+00> : vector<32x128xf32>
    %54 = tpu.matmul %52, %53, %cst_43 {dimension_numbers = #tpu.dot_dimension_numbers<[1], [0], [0], [1], [0, 0, 1, 1], [], []>} : vector<32x16xbf16>, vector<16x128xbf16>, vector<32x128xf32> -> vector<32x128xf32>
    %55 = vector.extract_strided_slice %46 {offsets = [0, 0], sizes = [16, 128], strides = [1, 1]} : vector<32x128xf32> to vector<16x128xf32>
    %56 = vector.extract_strided_slice %50 {offsets = [0, 0], sizes = [16, 128], strides = [1, 1]} : vector<32x128xf32> to vector<16x128xf32>
    %57 = vector.extract_strided_slice %54 {offsets = [0, 0], sizes = [16, 128], strides = [1, 1]} : vector<32x128xf32> to vector<16x128xf32>
    %58 = vector.extract_strided_slice %46 {offsets = [16, 0], sizes = [8, 128], strides = [1, 1]} : vector<32x128xf32> to vector<8x128xf32>
    %59 = vector.extract_strided_slice %50 {offsets = [16, 0], sizes = [8, 128], strides = [1, 1]} : vector<32x128xf32> to vector<8x128xf32>
    %60 = vector.extract_strided_slice %54 {offsets = [16, 0], sizes = [8, 128], strides = [1, 1]} : vector<32x128xf32> to vector<8x128xf32>
    %61 = vector.extract_strided_slice %46 {offsets = [24, 0], sizes = [8, 128], strides = [1, 1]} : vector<32x128xf32> to vector<8x128xf32>
    %62 = vector.extract_strided_slice %50 {offsets = [24, 0], sizes = [8, 128], strides = [1, 1]} : vector<32x128xf32> to vector<8x128xf32>
    %63 = vector.extract_strided_slice %54 {offsets = [24, 0], sizes = [8, 128], strides = [1, 1]} : vector<32x128xf32> to vector<8x128xf32>
    %64 = arith.mulf %55, %55 : vector<16x128xf32>
    %65 = arith.mulf %56, %56 : vector<16x128xf32>
    %66 = arith.addf %64, %65 : vector<16x128xf32>
    %67 = arith.mulf %57, %57 : vector<16x128xf32>
    %68 = arith.addf %66, %67 : vector<16x128xf32>
    %cst_44 = arith.constant 9.99999996E-13 : f32
    %69 = vector.broadcast %cst_44 : f32 to vector<16x128xf32>
    %70 = arith.addf %68, %69 : vector<16x128xf32>
    %71 = math.sqrt %70 : vector<16x128xf32>
    %cst_45 = arith.constant 1.000000e+00 : f32
    %72 = vector.broadcast %cst_45 : f32 to vector<16x128xf32>
    %73 = arith.addf %72, %71 : vector<16x128xf32>
    %74 = math.rsqrt %73 : vector<16x128xf32>
    %75 = arith.mulf %55, %74 : vector<16x128xf32>
    %76 = arith.mulf %56, %74 : vector<16x128xf32>
    %77 = arith.mulf %57, %74 : vector<16x128xf32>
    %c0_46 = arith.constant 0 : index
    %c0_47 = arith.constant 0 : index
    %c0_48 = arith.constant 0 : index
    %78 = vector.load %arg10[%c0_46, %c0_47, %c0_48] : memref<3x16x16xbf16, #tpu.memory_space<vmem>>, vector<1x16x16xbf16>
    %79 = vector.shape_cast %78 : vector<1x16x16xbf16> to vector<16x16xbf16>
    %80 = arith.truncf %75 : vector<16x128xf32> to vector<16x128xbf16>
    %cst_49 = arith.constant dense<0.000000e+00> : vector<16x128xf32>
    %81 = tpu.matmul %79, %80, %cst_49 {dimension_numbers = #tpu.dot_dimension_numbers<[1], [0], [0], [1], [0, 0, 1, 1], [], []>} : vector<16x16xbf16>, vector<16x128xbf16>, vector<16x128xf32> -> vector<16x128xf32>
    %c0_50 = arith.constant 0 : index
    %c0_51 = arith.constant 0 : index
    %c0_52 = arith.constant 0 : index
    %82 = vector.load %arg10[%c0_50, %c0_51, %c0_52] : memref<3x16x16xbf16, #tpu.memory_space<vmem>>, vector<1x16x16xbf16>
    %83 = vector.shape_cast %82 : vector<1x16x16xbf16> to vector<16x16xbf16>
    %84 = arith.truncf %76 : vector<16x128xf32> to vector<16x128xbf16>
    %cst_53 = arith.constant dense<0.000000e+00> : vector<16x128xf32>
    %85 = tpu.matmul %83, %84, %cst_53 {dimension_numbers = #tpu.dot_dimension_numbers<[1], [0], [0], [1], [0, 0, 1, 1], [], []>} : vector<16x16xbf16>, vector<16x128xbf16>, vector<16x128xf32> -> vector<16x128xf32>
    %c0_54 = arith.constant 0 : index
    %c0_55 = arith.constant 0 : index
    %c0_56 = arith.constant 0 : index
    %86 = vector.load %arg10[%c0_54, %c0_55, %c0_56] : memref<3x16x16xbf16, #tpu.memory_space<vmem>>, vector<1x16x16xbf16>
    %87 = vector.shape_cast %86 : vector<1x16x16xbf16> to vector<16x16xbf16>
    %88 = arith.truncf %77 : vector<16x128xf32> to vector<16x128xbf16>
    %cst_57 = arith.constant dense<0.000000e+00> : vector<16x128xf32>
    %89 = tpu.matmul %87, %88, %cst_57 {dimension_numbers = #tpu.dot_dimension_numbers<[1], [0], [0], [1], [0, 0, 1, 1], [], []>} : vector<16x16xbf16>, vector<16x128xbf16>, vector<16x128xf32> -> vector<16x128xf32>
    %90 = arith.mulf %81, %81 : vector<16x128xf32>
    %91 = arith.mulf %85, %85 : vector<16x128xf32>
    %92 = arith.addf %90, %91 : vector<16x128xf32>
    %93 = arith.mulf %89, %89 : vector<16x128xf32>
    %94 = arith.addf %92, %93 : vector<16x128xf32>
    %cst_58 = arith.constant 9.99999996E-13 : f32
    %95 = vector.broadcast %cst_58 : f32 to vector<16x128xf32>
    %96 = arith.addf %94, %95 : vector<16x128xf32>
    %97 = math.sqrt %96 : vector<16x128xf32>
    %cst_59 = arith.constant 1.000000e+00 : f32
    %98 = vector.broadcast %cst_59 : f32 to vector<16x128xf32>
    %99 = arith.addf %98, %97 : vector<16x128xf32>
    %100 = math.rsqrt %99 : vector<16x128xf32>
    %101 = arith.mulf %81, %100 : vector<16x128xf32>
    %102 = arith.mulf %85, %100 : vector<16x128xf32>
    %103 = arith.mulf %89, %100 : vector<16x128xf32>
    %c0_60 = arith.constant 0 : index
    %c0_61 = arith.constant 0 : index
    %c0_62 = arith.constant 0 : index
    %104 = vector.load %arg11[%c0_60, %c0_61, %c0_62] : memref<3x16x16xbf16, #tpu.memory_space<vmem>>, vector<1x16x16xbf16>
    %105 = vector.shape_cast %104 : vector<1x16x16xbf16> to vector<16x16xbf16>
    %106 = arith.truncf %101 : vector<16x128xf32> to vector<16x128xbf16>
    %cst_63 = arith.constant dense<0.000000e+00> : vector<16x128xf32>
    %107 = tpu.matmul %105, %106, %cst_63 {dimension_numbers = #tpu.dot_dimension_numbers<[1], [0], [0], [1], [0, 0, 1, 1], [], []>} : vector<16x16xbf16>, vector<16x128xbf16>, vector<16x128xf32> -> vector<16x128xf32>
    %c0_64 = arith.constant 0 : index
    %c0_65 = arith.constant 0 : index
    %c0_66 = arith.constant 0 : index
    %108 = vector.load %arg11[%c0_64, %c0_65, %c0_66] : memref<3x16x16xbf16, #tpu.memory_space<vmem>>, vector<1x16x16xbf16>
    %109 = vector.shape_cast %108 : vector<1x16x16xbf16> to vector<16x16xbf16>
    %110 = arith.truncf %102 : vector<16x128xf32> to vector<16x128xbf16>
    %cst_67 = arith.constant dense<0.000000e+00> : vector<16x128xf32>
    %111 = tpu.matmul %109, %110, %cst_67 {dimension_numbers = #tpu.dot_dimension_numbers<[1], [0], [0], [1], [0, 0, 1, 1], [], []>} : vector<16x16xbf16>, vector<16x128xbf16>, vector<16x128xf32> -> vector<16x128xf32>
    %c0_68 = arith.constant 0 : index
    %c0_69 = arith.constant 0 : index
    %c0_70 = arith.constant 0 : index
    %112 = vector.load %arg11[%c0_68, %c0_69, %c0_70] : memref<3x16x16xbf16, #tpu.memory_space<vmem>>, vector<1x16x16xbf16>
    %113 = vector.shape_cast %112 : vector<1x16x16xbf16> to vector<16x16xbf16>
    %114 = arith.truncf %103 : vector<16x128xf32> to vector<16x128xbf16>
    %cst_71 = arith.constant dense<0.000000e+00> : vector<16x128xf32>
    %115 = tpu.matmul %113, %114, %cst_71 {dimension_numbers = #tpu.dot_dimension_numbers<[1], [0], [0], [1], [0, 0, 1, 1], [], []>} : vector<16x16xbf16>, vector<16x128xbf16>, vector<16x128xf32> -> vector<16x128xf32>
    %116 = arith.mulf %58, %61 : vector<8x128xf32>
    %117 = arith.mulf %59, %62 : vector<8x128xf32>
    %118 = arith.addf %116, %117 : vector<8x128xf32>
    %119 = arith.mulf %60, %63 : vector<8x128xf32>
    %120 = arith.addf %118, %119 : vector<8x128xf32>
    %c0_72 = arith.constant 0 : index
    %c0_73 = arith.constant 0 : index
    %c0_74 = arith.constant 0 : index
    %121 = vector.load %arg12[%c0_72, %c0_73, %c0_74] : memref<3x32x8xbf16, #tpu.memory_space<vmem>>, vector<1x32x8xbf16>
    %122 = vector.shape_cast %121 : vector<1x32x8xbf16> to vector<32x8xbf16>
    %123 = arith.mulf %21, %120 : vector<8x128xf32>
    %124 = arith.truncf %123 : vector<8x128xf32> to vector<8x128xbf16>
    %cst_75 = arith.constant dense<0.000000e+00> : vector<32x128xf32>
    %125 = tpu.matmul %122, %124, %cst_75 {dimension_numbers = #tpu.dot_dimension_numbers<[1], [0], [0], [1], [0, 0, 1, 1], [], []>} : vector<32x8xbf16>, vector<8x128xbf16>, vector<32x128xf32> -> vector<32x128xf32>
    %c0_76 = arith.constant 0 : index
    %c0_77 = arith.constant 0 : index
    %c0_78 = arith.constant 0 : index
    %126 = vector.load %arg13[%c0_76, %c0_77, %c0_78] : memref<3x32x1xf32, #tpu.memory_space<vmem>>, vector<1x32x1xf32>
    %127 = vector.shape_cast %126 : vector<1x32x1xf32> to vector<32x1xf32>
    %128 = vector.broadcast %127 : vector<32x1xf32> to vector<32x128xf32>
    %129 = arith.addf %125, %128 : vector<32x128xf32>
    %c0_79 = arith.constant 0 : index
    %c0_80 = arith.constant 0 : index
    %c0_81 = arith.constant 0 : index
    %130 = vector.load %arg14[%c0_79, %c0_80, %c0_81] : memref<3x16x8xbf16, #tpu.memory_space<vmem>>, vector<1x16x8xbf16>
    %131 = vector.shape_cast %130 : vector<1x16x8xbf16> to vector<16x8xbf16>
    %132 = arith.mulf %21, %58 : vector<8x128xf32>
    %133 = arith.truncf %132 : vector<8x128xf32> to vector<8x128xbf16>
    %cst_82 = arith.constant dense<0.000000e+00> : vector<16x128xf32>
    %134 = tpu.matmul %131, %133, %cst_82 {dimension_numbers = #tpu.dot_dimension_numbers<[1], [0], [0], [1], [0, 0, 1, 1], [], []>} : vector<16x8xbf16>, vector<8x128xbf16>, vector<16x128xf32> -> vector<16x128xf32>
    %c0_83 = arith.constant 0 : index
    %c0_84 = arith.constant 0 : index
    %c0_85 = arith.constant 0 : index
    %135 = vector.load %arg14[%c0_83, %c0_84, %c0_85] : memref<3x16x8xbf16, #tpu.memory_space<vmem>>, vector<1x16x8xbf16>
    %136 = vector.shape_cast %135 : vector<1x16x8xbf16> to vector<16x8xbf16>
    %137 = arith.mulf %21, %59 : vector<8x128xf32>
    %138 = arith.truncf %137 : vector<8x128xf32> to vector<8x128xbf16>
    %cst_86 = arith.constant dense<0.000000e+00> : vector<16x128xf32>
    %139 = tpu.matmul %136, %138, %cst_86 {dimension_numbers = #tpu.dot_dimension_numbers<[1], [0], [0], [1], [0, 0, 1, 1], [], []>} : vector<16x8xbf16>, vector<8x128xbf16>, vector<16x128xf32> -> vector<16x128xf32>
    %c0_87 = arith.constant 0 : index
    %c0_88 = arith.constant 0 : index
    %c0_89 = arith.constant 0 : index
    %140 = vector.load %arg14[%c0_87, %c0_88, %c0_89] : memref<3x16x8xbf16, #tpu.memory_space<vmem>>, vector<1x16x8xbf16>
    %141 = vector.shape_cast %140 : vector<1x16x8xbf16> to vector<16x8xbf16>
    %142 = arith.mulf %21, %60 : vector<8x128xf32>
    %143 = arith.truncf %142 : vector<8x128xf32> to vector<8x128xbf16>
    %cst_90 = arith.constant dense<0.000000e+00> : vector<16x128xf32>
    %144 = tpu.matmul %141, %143, %cst_90 {dimension_numbers = #tpu.dot_dimension_numbers<[1], [0], [0], [1], [0, 0, 1, 1], [], []>} : vector<16x8xbf16>, vector<8x128xbf16>, vector<16x128xf32> -> vector<16x128xf32>
    %145 = arith.addf %0, %42 : vector<32x128xf32>
    %146 = arith.addf %145, %129 : vector<32x128xf32>
    %147 = arith.addf %107, %134 : vector<16x128xf32>
    %cst_91 = arith.constant 5.000000e-02 : f32
    %148 = vector.broadcast %cst_91 : f32 to vector<16x128xf32>
    %149 = arith.mulf %147, %148 : vector<16x128xf32>
    %150 = arith.addf %2, %149 : vector<16x128xf32>
    %151 = arith.addf %111, %139 : vector<16x128xf32>
    %cst_92 = arith.constant 5.000000e-02 : f32
    %152 = vector.broadcast %cst_92 : f32 to vector<16x128xf32>
    %153 = arith.mulf %151, %152 : vector<16x128xf32>
    %154 = arith.addf %4, %153 : vector<16x128xf32>
    %155 = arith.addf %115, %144 : vector<16x128xf32>
    %cst_93 = arith.constant 5.000000e-02 : f32
    %156 = vector.broadcast %cst_93 : f32 to vector<16x128xf32>
    %157 = arith.mulf %155, %156 : vector<16x128xf32>
    %158 = arith.addf %6, %157 : vector<16x128xf32>
    %c1_94 = arith.constant 1 : index
    %c0_95 = arith.constant 0 : index
    %c0_96 = arith.constant 0 : index
    %159 = vector.load %arg3[%c1_94, %c0_95, %c0_96] : memref<3x40x32xbf16, #tpu.memory_space<vmem>>, vector<1x40x32xbf16>
    %160 = vector.shape_cast %159 : vector<1x40x32xbf16> to vector<40x32xbf16>
    %161 = arith.truncf %146 : vector<32x128xf32> to vector<32x128xbf16>
    %cst_97 = arith.constant dense<0.000000e+00> : vector<40x128xf32>
    %162 = tpu.matmul %160, %161, %cst_97 {dimension_numbers = #tpu.dot_dimension_numbers<[1], [0], [0], [1], [0, 0, 1, 1], [], []>} : vector<40x32xbf16>, vector<32x128xbf16>, vector<40x128xf32> -> vector<40x128xf32>
    %c1_98 = arith.constant 1 : index
    %c0_99 = arith.constant 0 : index
    %c0_100 = arith.constant 0 : index
    %163 = vector.load %arg4[%c1_98, %c0_99, %c0_100] : memref<3x40x1xf32, #tpu.memory_space<vmem>>, vector<1x40x1xf32>
    %164 = vector.shape_cast %163 : vector<1x40x1xf32> to vector<40x1xf32>
    %165 = vector.broadcast %164 : vector<40x1xf32> to vector<40x128xf32>
    %166 = arith.addf %162, %165 : vector<40x128xf32>
    %167 = vector.extract_strided_slice %166 {offsets = [0, 0], sizes = [32, 128], strides = [1, 1]} : vector<40x128xf32> to vector<32x128xf32>
    %cst_101 = arith.constant 0.000000e+00 : f32
    %168 = vector.broadcast %cst_101 : f32 to vector<32x128xf32>
    %169 = arith.cmpf ogt, %167, %168 : vector<32x128xf32>
    %cst_102 = arith.constant 2.000000e-01 : f32
    %170 = vector.broadcast %cst_102 : f32 to vector<32x128xf32>
    %171 = arith.mulf %170, %167 : vector<32x128xf32>
    %172 = arith.select %169, %167, %171 : vector<32x128xi1>, vector<32x128xf32>
    %173 = vector.extract_strided_slice %166 {offsets = [32, 0], sizes = [8, 128], strides = [1, 1]} : vector<40x128xf32> to vector<8x128xf32>
    %c1_103 = arith.constant 1 : index
    %c0_104 = arith.constant 0 : index
    %c0_105 = arith.constant 0 : index
    %174 = vector.load %arg5[%c1_103, %c0_104, %c0_105] : memref<3x32x32xbf16, #tpu.memory_space<vmem>>, vector<1x32x32xbf16>
    %175 = vector.shape_cast %174 : vector<1x32x32xbf16> to vector<32x32xbf16>
    %176 = arith.truncf %172 : vector<32x128xf32> to vector<32x128xbf16>
    %cst_106 = arith.constant dense<0.000000e+00> : vector<32x128xf32>
    %177 = tpu.matmul %175, %176, %cst_106 {dimension_numbers = #tpu.dot_dimension_numbers<[1], [0], [0], [1], [0, 0, 1, 1], [], []>} : vector<32x32xbf16>, vector<32x128xbf16>, vector<32x128xf32> -> vector<32x128xf32>
    %c1_107 = arith.constant 1 : index
    %c0_108 = arith.constant 0 : index
    %c0_109 = arith.constant 0 : index
    %178 = vector.load %arg6[%c1_107, %c0_108, %c0_109] : memref<3x32x1xf32, #tpu.memory_space<vmem>>, vector<1x32x1xf32>
    %179 = vector.shape_cast %178 : vector<1x32x1xf32> to vector<32x1xf32>
    %180 = vector.broadcast %179 : vector<32x1xf32> to vector<32x128xf32>
    %181 = arith.addf %177, %180 : vector<32x128xf32>
    %cst_110 = arith.constant 0.000000e+00 : f32
    %182 = vector.broadcast %cst_110 : f32 to vector<32x128xf32>
    %183 = arith.cmpf ogt, %181, %182 : vector<32x128xf32>
    %cst_111 = arith.constant 2.000000e-01 : f32
    %184 = vector.broadcast %cst_111 : f32 to vector<32x128xf32>
    %185 = arith.mulf %184, %181 : vector<32x128xf32>
    %186 = arith.select %183, %181, %185 : vector<32x128xi1>, vector<32x128xf32>
    %c1_112 = arith.constant 1 : index
    %c0_113 = arith.constant 0 : index
    %c0_114 = arith.constant 0 : index
    %187 = vector.load %arg7[%c1_112, %c0_113, %c0_114] : memref<3x32x32xbf16, #tpu.memory_space<vmem>>, vector<1x32x32xbf16>
    %188 = vector.shape_cast %187 : vector<1x32x32xbf16> to vector<32x32xbf16>
    %189 = arith.truncf %186 : vector<32x128xf32> to vector<32x128xbf16>
    %cst_115 = arith.constant dense<0.000000e+00> : vector<32x128xf32>
    %190 = tpu.matmul %188, %189, %cst_115 {dimension_numbers = #tpu.dot_dimension_numbers<[1], [0], [0], [1], [0, 0, 1, 1], [], []>} : vector<32x32xbf16>, vector<32x128xbf16>, vector<32x128xf32> -> vector<32x128xf32>
    %c1_116 = arith.constant 1 : index
    %c0_117 = arith.constant 0 : index
    %c0_118 = arith.constant 0 : index
    %191 = vector.load %arg8[%c1_116, %c0_117, %c0_118] : memref<3x32x1xf32, #tpu.memory_space<vmem>>, vector<1x32x1xf32>
    %192 = vector.shape_cast %191 : vector<1x32x1xf32> to vector<32x1xf32>
    %193 = vector.broadcast %192 : vector<32x1xf32> to vector<32x128xf32>
    %194 = arith.addf %190, %193 : vector<32x128xf32>
    %c1_119 = arith.constant 1 : index
    %c0_120 = arith.constant 0 : index
    %c0_121 = arith.constant 0 : index
    %195 = vector.load %arg9[%c1_119, %c0_120, %c0_121] : memref<3x32x16xbf16, #tpu.memory_space<vmem>>, vector<1x32x16xbf16>
    %196 = vector.shape_cast %195 : vector<1x32x16xbf16> to vector<32x16xbf16>
    %197 = arith.truncf %150 : vector<16x128xf32> to vector<16x128xbf16>
    %cst_122 = arith.constant dense<0.000000e+00> : vector<32x128xf32>
    %198 = tpu.matmul %196, %197, %cst_122 {dimension_numbers = #tpu.dot_dimension_numbers<[1], [0], [0], [1], [0, 0, 1, 1], [], []>} : vector<32x16xbf16>, vector<16x128xbf16>, vector<32x128xf32> -> vector<32x128xf32>
    %c1_123 = arith.constant 1 : index
    %c0_124 = arith.constant 0 : index
    %c0_125 = arith.constant 0 : index
    %199 = vector.load %arg9[%c1_123, %c0_124, %c0_125] : memref<3x32x16xbf16, #tpu.memory_space<vmem>>, vector<1x32x16xbf16>
    %200 = vector.shape_cast %199 : vector<1x32x16xbf16> to vector<32x16xbf16>
    %201 = arith.truncf %154 : vector<16x128xf32> to vector<16x128xbf16>
    %cst_126 = arith.constant dense<0.000000e+00> : vector<32x128xf32>
    %202 = tpu.matmul %200, %201, %cst_126 {dimension_numbers = #tpu.dot_dimension_numbers<[1], [0], [0], [1], [0, 0, 1, 1], [], []>} : vector<32x16xbf16>, vector<16x128xbf16>, vector<32x128xf32> -> vector<32x128xf32>
    %c1_127 = arith.constant 1 : index
    %c0_128 = arith.constant 0 : index
    %c0_129 = arith.constant 0 : index
    %203 = vector.load %arg9[%c1_127, %c0_128, %c0_129] : memref<3x32x16xbf16, #tpu.memory_space<vmem>>, vector<1x32x16xbf16>
    %204 = vector.shape_cast %203 : vector<1x32x16xbf16> to vector<32x16xbf16>
    %205 = arith.truncf %158 : vector<16x128xf32> to vector<16x128xbf16>
    %cst_130 = arith.constant dense<0.000000e+00> : vector<32x128xf32>
    %206 = tpu.matmul %204, %205, %cst_130 {dimension_numbers = #tpu.dot_dimension_numbers<[1], [0], [0], [1], [0, 0, 1, 1], [], []>} : vector<32x16xbf16>, vector<16x128xbf16>, vector<32x128xf32> -> vector<32x128xf32>
    %207 = vector.extract_strided_slice %198 {offsets = [0, 0], sizes = [16, 128], strides = [1, 1]} : vector<32x128xf32> to vector<16x128xf32>
    %208 = vector.extract_strided_slice %202 {offsets = [0, 0], sizes = [16, 128], strides = [1, 1]} : vector<32x128xf32> to vector<16x128xf32>
    %209 = vector.extract_strided_slice %206 {offsets = [0, 0], sizes = [16, 128], strides = [1, 1]} : vector<32x128xf32> to vector<16x128xf32>
    %210 = vector.extract_strided_slice %198 {offsets = [16, 0], sizes = [8, 128], strides = [1, 1]} : vector<32x128xf32> to vector<8x128xf32>
    %211 = vector.extract_strided_slice %202 {offsets = [16, 0], sizes = [8, 128], strides = [1, 1]} : vector<32x128xf32> to vector<8x128xf32>
    %212 = vector.extract_strided_slice %206 {offsets = [16, 0], sizes = [8, 128], strides = [1, 1]} : vector<32x128xf32> to vector<8x128xf32>
    %213 = vector.extract_strided_slice %198 {offsets = [24, 0], sizes = [8, 128], strides = [1, 1]} : vector<32x128xf32> to vector<8x128xf32>
    %214 = vector.extract_strided_slice %202 {offsets = [24, 0], sizes = [8, 128], strides = [1, 1]} : vector<32x128xf32> to vector<8x128xf32>
    %215 = vector.extract_strided_slice %206 {offsets = [24, 0], sizes = [8, 128], strides = [1, 1]} : vector<32x128xf32> to vector<8x128xf32>
    %216 = arith.mulf %207, %207 : vector<16x128xf32>
    %217 = arith.mulf %208, %208 : vector<16x128xf32>
    %218 = arith.addf %216, %217 : vector<16x128xf32>
    %219 = arith.mulf %209, %209 : vector<16x128xf32>
    %220 = arith.addf %218, %219 : vector<16x128xf32>
    %cst_131 = arith.constant 9.99999996E-13 : f32
    %221 = vector.broadcast %cst_131 : f32 to vector<16x128xf32>
    %222 = arith.addf %220, %221 : vector<16x128xf32>
    %223 = math.sqrt %222 : vector<16x128xf32>
    %cst_132 = arith.constant 1.000000e+00 : f32
    %224 = vector.broadcast %cst_132 : f32 to vector<16x128xf32>
    %225 = arith.addf %224, %223 : vector<16x128xf32>
    %226 = math.rsqrt %225 : vector<16x128xf32>
    %227 = arith.mulf %207, %226 : vector<16x128xf32>
    %228 = arith.mulf %208, %226 : vector<16x128xf32>
    %229 = arith.mulf %209, %226 : vector<16x128xf32>
    %c1_133 = arith.constant 1 : index
    %c0_134 = arith.constant 0 : index
    %c0_135 = arith.constant 0 : index
    %230 = vector.load %arg10[%c1_133, %c0_134, %c0_135] : memref<3x16x16xbf16, #tpu.memory_space<vmem>>, vector<1x16x16xbf16>
    %231 = vector.shape_cast %230 : vector<1x16x16xbf16> to vector<16x16xbf16>
    %232 = arith.truncf %227 : vector<16x128xf32> to vector<16x128xbf16>
    %cst_136 = arith.constant dense<0.000000e+00> : vector<16x128xf32>
    %233 = tpu.matmul %231, %232, %cst_136 {dimension_numbers = #tpu.dot_dimension_numbers<[1], [0], [0], [1], [0, 0, 1, 1], [], []>} : vector<16x16xbf16>, vector<16x128xbf16>, vector<16x128xf32> -> vector<16x128xf32>
    %c1_137 = arith.constant 1 : index
    %c0_138 = arith.constant 0 : index
    %c0_139 = arith.constant 0 : index
    %234 = vector.load %arg10[%c1_137, %c0_138, %c0_139] : memref<3x16x16xbf16, #tpu.memory_space<vmem>>, vector<1x16x16xbf16>
    %235 = vector.shape_cast %234 : vector<1x16x16xbf16> to vector<16x16xbf16>
    %236 = arith.truncf %228 : vector<16x128xf32> to vector<16x128xbf16>
    %cst_140 = arith.constant dense<0.000000e+00> : vector<16x128xf32>
    %237 = tpu.matmul %235, %236, %cst_140 {dimension_numbers = #tpu.dot_dimension_numbers<[1], [0], [0], [1], [0, 0, 1, 1], [], []>} : vector<16x16xbf16>, vector<16x128xbf16>, vector<16x128xf32> -> vector<16x128xf32>
    %c1_141 = arith.constant 1 : index
    %c0_142 = arith.constant 0 : index
    %c0_143 = arith.constant 0 : index
    %238 = vector.load %arg10[%c1_141, %c0_142, %c0_143] : memref<3x16x16xbf16, #tpu.memory_space<vmem>>, vector<1x16x16xbf16>
    %239 = vector.shape_cast %238 : vector<1x16x16xbf16> to vector<16x16xbf16>
    %240 = arith.truncf %229 : vector<16x128xf32> to vector<16x128xbf16>
    %cst_144 = arith.constant dense<0.000000e+00> : vector<16x128xf32>
    %241 = tpu.matmul %239, %240, %cst_144 {dimension_numbers = #tpu.dot_dimension_numbers<[1], [0], [0], [1], [0, 0, 1, 1], [], []>} : vector<16x16xbf16>, vector<16x128xbf16>, vector<16x128xf32> -> vector<16x128xf32>
    %242 = arith.mulf %233, %233 : vector<16x128xf32>
    %243 = arith.mulf %237, %237 : vector<16x128xf32>
    %244 = arith.addf %242, %243 : vector<16x128xf32>
    %245 = arith.mulf %241, %241 : vector<16x128xf32>
    %246 = arith.addf %244, %245 : vector<16x128xf32>
    %cst_145 = arith.constant 9.99999996E-13 : f32
    %247 = vector.broadcast %cst_145 : f32 to vector<16x128xf32>
    %248 = arith.addf %246, %247 : vector<16x128xf32>
    %249 = math.sqrt %248 : vector<16x128xf32>
    %cst_146 = arith.constant 1.000000e+00 : f32
    %250 = vector.broadcast %cst_146 : f32 to vector<16x128xf32>
    %251 = arith.addf %250, %249 : vector<16x128xf32>
    %252 = math.rsqrt %251 : vector<16x128xf32>
    %253 = arith.mulf %233, %252 : vector<16x128xf32>
    %254 = arith.mulf %237, %252 : vector<16x128xf32>
    %255 = arith.mulf %241, %252 : vector<16x128xf32>
    %c1_147 = arith.constant 1 : index
    %c0_148 = arith.constant 0 : index
    %c0_149 = arith.constant 0 : index
    %256 = vector.load %arg11[%c1_147, %c0_148, %c0_149] : memref<3x16x16xbf16, #tpu.memory_space<vmem>>, vector<1x16x16xbf16>
    %257 = vector.shape_cast %256 : vector<1x16x16xbf16> to vector<16x16xbf16>
    %258 = arith.truncf %253 : vector<16x128xf32> to vector<16x128xbf16>
    %cst_150 = arith.constant dense<0.000000e+00> : vector<16x128xf32>
    %259 = tpu.matmul %257, %258, %cst_150 {dimension_numbers = #tpu.dot_dimension_numbers<[1], [0], [0], [1], [0, 0, 1, 1], [], []>} : vector<16x16xbf16>, vector<16x128xbf16>, vector<16x128xf32> -> vector<16x128xf32>
    %c1_151 = arith.constant 1 : index
    %c0_152 = arith.constant 0 : index
    %c0_153 = arith.constant 0 : index
    %260 = vector.load %arg11[%c1_151, %c0_152, %c0_153] : memref<3x16x16xbf16, #tpu.memory_space<vmem>>, vector<1x16x16xbf16>
    %261 = vector.shape_cast %260 : vector<1x16x16xbf16> to vector<16x16xbf16>
    %262 = arith.truncf %254 : vector<16x128xf32> to vector<16x128xbf16>
    %cst_154 = arith.constant dense<0.000000e+00> : vector<16x128xf32>
    %263 = tpu.matmul %261, %262, %cst_154 {dimension_numbers = #tpu.dot_dimension_numbers<[1], [0], [0], [1], [0, 0, 1, 1], [], []>} : vector<16x16xbf16>, vector<16x128xbf16>, vector<16x128xf32> -> vector<16x128xf32>
    %c1_155 = arith.constant 1 : index
    %c0_156 = arith.constant 0 : index
    %c0_157 = arith.constant 0 : index
    %264 = vector.load %arg11[%c1_155, %c0_156, %c0_157] : memref<3x16x16xbf16, #tpu.memory_space<vmem>>, vector<1x16x16xbf16>
    %265 = vector.shape_cast %264 : vector<1x16x16xbf16> to vector<16x16xbf16>
    %266 = arith.truncf %255 : vector<16x128xf32> to vector<16x128xbf16>
    %cst_158 = arith.constant dense<0.000000e+00> : vector<16x128xf32>
    %267 = tpu.matmul %265, %266, %cst_158 {dimension_numbers = #tpu.dot_dimension_numbers<[1], [0], [0], [1], [0, 0, 1, 1], [], []>} : vector<16x16xbf16>, vector<16x128xbf16>, vector<16x128xf32> -> vector<16x128xf32>
    %268 = arith.mulf %210, %213 : vector<8x128xf32>
    %269 = arith.mulf %211, %214 : vector<8x128xf32>
    %270 = arith.addf %268, %269 : vector<8x128xf32>
    %271 = arith.mulf %212, %215 : vector<8x128xf32>
    %272 = arith.addf %270, %271 : vector<8x128xf32>
    %c1_159 = arith.constant 1 : index
    %c0_160 = arith.constant 0 : index
    %c0_161 = arith.constant 0 : index
    %273 = vector.load %arg12[%c1_159, %c0_160, %c0_161] : memref<3x32x8xbf16, #tpu.memory_space<vmem>>, vector<1x32x8xbf16>
    %274 = vector.shape_cast %273 : vector<1x32x8xbf16> to vector<32x8xbf16>
    %275 = arith.mulf %173, %272 : vector<8x128xf32>
    %276 = arith.truncf %275 : vector<8x128xf32> to vector<8x128xbf16>
    %cst_162 = arith.constant dense<0.000000e+00> : vector<32x128xf32>
    %277 = tpu.matmul %274, %276, %cst_162 {dimension_numbers = #tpu.dot_dimension_numbers<[1], [0], [0], [1], [0, 0, 1, 1], [], []>} : vector<32x8xbf16>, vector<8x128xbf16>, vector<32x128xf32> -> vector<32x128xf32>
    %c1_163 = arith.constant 1 : index
    %c0_164 = arith.constant 0 : index
    %c0_165 = arith.constant 0 : index
    %278 = vector.load %arg13[%c1_163, %c0_164, %c0_165] : memref<3x32x1xf32, #tpu.memory_space<vmem>>, vector<1x32x1xf32>
    %279 = vector.shape_cast %278 : vector<1x32x1xf32> to vector<32x1xf32>
    %280 = vector.broadcast %279 : vector<32x1xf32> to vector<32x128xf32>
    %281 = arith.addf %277, %280 : vector<32x128xf32>
    %c1_166 = arith.constant 1 : index
    %c0_167 = arith.constant 0 : index
    %c0_168 = arith.constant 0 : index
    %282 = vector.load %arg14[%c1_166, %c0_167, %c0_168] : memref<3x16x8xbf16, #tpu.memory_space<vmem>>, vector<1x16x8xbf16>
    %283 = vector.shape_cast %282 : vector<1x16x8xbf16> to vector<16x8xbf16>
    %284 = arith.mulf %173, %210 : vector<8x128xf32>
    %285 = arith.truncf %284 : vector<8x128xf32> to vector<8x128xbf16>
    %cst_169 = arith.constant dense<0.000000e+00> : vector<16x128xf32>
    %286 = tpu.matmul %283, %285, %cst_169 {dimension_numbers = #tpu.dot_dimension_numbers<[1], [0], [0], [1], [0, 0, 1, 1], [], []>} : vector<16x8xbf16>, vector<8x128xbf16>, vector<16x128xf32> -> vector<16x128xf32>
    %c1_170 = arith.constant 1 : index
    %c0_171 = arith.constant 0 : index
    %c0_172 = arith.constant 0 : index
    %287 = vector.load %arg14[%c1_170, %c0_171, %c0_172] : memref<3x16x8xbf16, #tpu.memory_space<vmem>>, vector<1x16x8xbf16>
    %288 = vector.shape_cast %287 : vector<1x16x8xbf16> to vector<16x8xbf16>
    %289 = arith.mulf %173, %211 : vector<8x128xf32>
    %290 = arith.truncf %289 : vector<8x128xf32> to vector<8x128xbf16>
    %cst_173 = arith.constant dense<0.000000e+00> : vector<16x128xf32>
    %291 = tpu.matmul %288, %290, %cst_173 {dimension_numbers = #tpu.dot_dimension_numbers<[1], [0], [0], [1], [0, 0, 1, 1], [], []>} : vector<16x8xbf16>, vector<8x128xbf16>, vector<16x128xf32> -> vector<16x128xf32>
    %c1_174 = arith.constant 1 : index
    %c0_175 = arith.constant 0 : index
    %c0_176 = arith.constant 0 : index
    %292 = vector.load %arg14[%c1_174, %c0_175, %c0_176] : memref<3x16x8xbf16, #tpu.memory_space<vmem>>, vector<1x16x8xbf16>
    %293 = vector.shape_cast %292 : vector<1x16x8xbf16> to vector<16x8xbf16>
    %294 = arith.mulf %173, %212 : vector<8x128xf32>
    %295 = arith.truncf %294 : vector<8x128xf32> to vector<8x128xbf16>
    %cst_177 = arith.constant dense<0.000000e+00> : vector<16x128xf32>
    %296 = tpu.matmul %293, %295, %cst_177 {dimension_numbers = #tpu.dot_dimension_numbers<[1], [0], [0], [1], [0, 0, 1, 1], [], []>} : vector<16x8xbf16>, vector<8x128xbf16>, vector<16x128xf32> -> vector<16x128xf32>
    %297 = arith.addf %146, %194 : vector<32x128xf32>
    %298 = arith.addf %297, %281 : vector<32x128xf32>
    %299 = arith.addf %259, %286 : vector<16x128xf32>
    %cst_178 = arith.constant 5.000000e-02 : f32
    %300 = vector.broadcast %cst_178 : f32 to vector<16x128xf32>
    %301 = arith.mulf %299, %300 : vector<16x128xf32>
    %302 = arith.addf %150, %301 : vector<16x128xf32>
    %303 = arith.addf %263, %291 : vector<16x128xf32>
    %cst_179 = arith.constant 5.000000e-02 : f32
    %304 = vector.broadcast %cst_179 : f32 to vector<16x128xf32>
    %305 = arith.mulf %303, %304 : vector<16x128xf32>
    %306 = arith.addf %154, %305 : vector<16x128xf32>
    %307 = arith.addf %267, %296 : vector<16x128xf32>
    %cst_180 = arith.constant 5.000000e-02 : f32
    %308 = vector.broadcast %cst_180 : f32 to vector<16x128xf32>
    %309 = arith.mulf %307, %308 : vector<16x128xf32>
    %310 = arith.addf %158, %309 : vector<16x128xf32>
    %c2_181 = arith.constant 2 : index
    %c0_182 = arith.constant 0 : index
    %c0_183 = arith.constant 0 : index
    %311 = vector.load %arg3[%c2_181, %c0_182, %c0_183] : memref<3x40x32xbf16, #tpu.memory_space<vmem>>, vector<1x40x32xbf16>
    %312 = vector.shape_cast %311 : vector<1x40x32xbf16> to vector<40x32xbf16>
    %313 = arith.truncf %298 : vector<32x128xf32> to vector<32x128xbf16>
    %cst_184 = arith.constant dense<0.000000e+00> : vector<40x128xf32>
    %314 = tpu.matmul %312, %313, %cst_184 {dimension_numbers = #tpu.dot_dimension_numbers<[1], [0], [0], [1], [0, 0, 1, 1], [], []>} : vector<40x32xbf16>, vector<32x128xbf16>, vector<40x128xf32> -> vector<40x128xf32>
    %c2_185 = arith.constant 2 : index
    %c0_186 = arith.constant 0 : index
    %c0_187 = arith.constant 0 : index
    %315 = vector.load %arg4[%c2_185, %c0_186, %c0_187] : memref<3x40x1xf32, #tpu.memory_space<vmem>>, vector<1x40x1xf32>
    %316 = vector.shape_cast %315 : vector<1x40x1xf32> to vector<40x1xf32>
    %317 = vector.broadcast %316 : vector<40x1xf32> to vector<40x128xf32>
    %318 = arith.addf %314, %317 : vector<40x128xf32>
    %319 = vector.extract_strided_slice %318 {offsets = [0, 0], sizes = [32, 128], strides = [1, 1]} : vector<40x128xf32> to vector<32x128xf32>
    %cst_188 = arith.constant 0.000000e+00 : f32
    %320 = vector.broadcast %cst_188 : f32 to vector<32x128xf32>
    %321 = arith.cmpf ogt, %319, %320 : vector<32x128xf32>
    %cst_189 = arith.constant 2.000000e-01 : f32
    %322 = vector.broadcast %cst_189 : f32 to vector<32x128xf32>
    %323 = arith.mulf %322, %319 : vector<32x128xf32>
    %324 = arith.select %321, %319, %323 : vector<32x128xi1>, vector<32x128xf32>
    %325 = vector.extract_strided_slice %318 {offsets = [32, 0], sizes = [8, 128], strides = [1, 1]} : vector<40x128xf32> to vector<8x128xf32>
    %c2_190 = arith.constant 2 : index
    %c0_191 = arith.constant 0 : index
    %c0_192 = arith.constant 0 : index
    %326 = vector.load %arg5[%c2_190, %c0_191, %c0_192] : memref<3x32x32xbf16, #tpu.memory_space<vmem>>, vector<1x32x32xbf16>
    %327 = vector.shape_cast %326 : vector<1x32x32xbf16> to vector<32x32xbf16>
    %328 = arith.truncf %324 : vector<32x128xf32> to vector<32x128xbf16>
    %cst_193 = arith.constant dense<0.000000e+00> : vector<32x128xf32>
    %329 = tpu.matmul %327, %328, %cst_193 {dimension_numbers = #tpu.dot_dimension_numbers<[1], [0], [0], [1], [0, 0, 1, 1], [], []>} : vector<32x32xbf16>, vector<32x128xbf16>, vector<32x128xf32> -> vector<32x128xf32>
    %c2_194 = arith.constant 2 : index
    %c0_195 = arith.constant 0 : index
    %c0_196 = arith.constant 0 : index
    %330 = vector.load %arg6[%c2_194, %c0_195, %c0_196] : memref<3x32x1xf32, #tpu.memory_space<vmem>>, vector<1x32x1xf32>
    %331 = vector.shape_cast %330 : vector<1x32x1xf32> to vector<32x1xf32>
    %332 = vector.broadcast %331 : vector<32x1xf32> to vector<32x128xf32>
    %333 = arith.addf %329, %332 : vector<32x128xf32>
    %cst_197 = arith.constant 0.000000e+00 : f32
    %334 = vector.broadcast %cst_197 : f32 to vector<32x128xf32>
    %335 = arith.cmpf ogt, %333, %334 : vector<32x128xf32>
    %cst_198 = arith.constant 2.000000e-01 : f32
    %336 = vector.broadcast %cst_198 : f32 to vector<32x128xf32>
    %337 = arith.mulf %336, %333 : vector<32x128xf32>
    %338 = arith.select %335, %333, %337 : vector<32x128xi1>, vector<32x128xf32>
    %c2_199 = arith.constant 2 : index
    %c0_200 = arith.constant 0 : index
    %c0_201 = arith.constant 0 : index
    %339 = vector.load %arg7[%c2_199, %c0_200, %c0_201] : memref<3x32x32xbf16, #tpu.memory_space<vmem>>, vector<1x32x32xbf16>
    %340 = vector.shape_cast %339 : vector<1x32x32xbf16> to vector<32x32xbf16>
    %341 = arith.truncf %338 : vector<32x128xf32> to vector<32x128xbf16>
    %cst_202 = arith.constant dense<0.000000e+00> : vector<32x128xf32>
    %342 = tpu.matmul %340, %341, %cst_202 {dimension_numbers = #tpu.dot_dimension_numbers<[1], [0], [0], [1], [0, 0, 1, 1], [], []>} : vector<32x32xbf16>, vector<32x128xbf16>, vector<32x128xf32> -> vector<32x128xf32>
    %c2_203 = arith.constant 2 : index
    %c0_204 = arith.constant 0 : index
    %c0_205 = arith.constant 0 : index
    %343 = vector.load %arg8[%c2_203, %c0_204, %c0_205] : memref<3x32x1xf32, #tpu.memory_space<vmem>>, vector<1x32x1xf32>
    %344 = vector.shape_cast %343 : vector<1x32x1xf32> to vector<32x1xf32>
    %345 = vector.broadcast %344 : vector<32x1xf32> to vector<32x128xf32>
    %346 = arith.addf %342, %345 : vector<32x128xf32>
    %c2_206 = arith.constant 2 : index
    %c0_207 = arith.constant 0 : index
    %c0_208 = arith.constant 0 : index
    %347 = vector.load %arg9[%c2_206, %c0_207, %c0_208] : memref<3x32x16xbf16, #tpu.memory_space<vmem>>, vector<1x32x16xbf16>
    %348 = vector.shape_cast %347 : vector<1x32x16xbf16> to vector<32x16xbf16>
    %349 = arith.truncf %302 : vector<16x128xf32> to vector<16x128xbf16>
    %cst_209 = arith.constant dense<0.000000e+00> : vector<32x128xf32>
    %350 = tpu.matmul %348, %349, %cst_209 {dimension_numbers = #tpu.dot_dimension_numbers<[1], [0], [0], [1], [0, 0, 1, 1], [], []>} : vector<32x16xbf16>, vector<16x128xbf16>, vector<32x128xf32> -> vector<32x128xf32>
    %c2_210 = arith.constant 2 : index
    %c0_211 = arith.constant 0 : index
    %c0_212 = arith.constant 0 : index
    %351 = vector.load %arg9[%c2_210, %c0_211, %c0_212] : memref<3x32x16xbf16, #tpu.memory_space<vmem>>, vector<1x32x16xbf16>
    %352 = vector.shape_cast %351 : vector<1x32x16xbf16> to vector<32x16xbf16>
    %353 = arith.truncf %306 : vector<16x128xf32> to vector<16x128xbf16>
    %cst_213 = arith.constant dense<0.000000e+00> : vector<32x128xf32>
    %354 = tpu.matmul %352, %353, %cst_213 {dimension_numbers = #tpu.dot_dimension_numbers<[1], [0], [0], [1], [0, 0, 1, 1], [], []>} : vector<32x16xbf16>, vector<16x128xbf16>, vector<32x128xf32> -> vector<32x128xf32>
    %c2_214 = arith.constant 2 : index
    %c0_215 = arith.constant 0 : index
    %c0_216 = arith.constant 0 : index
    %355 = vector.load %arg9[%c2_214, %c0_215, %c0_216] : memref<3x32x16xbf16, #tpu.memory_space<vmem>>, vector<1x32x16xbf16>
    %356 = vector.shape_cast %355 : vector<1x32x16xbf16> to vector<32x16xbf16>
    %357 = arith.truncf %310 : vector<16x128xf32> to vector<16x128xbf16>
    %cst_217 = arith.constant dense<0.000000e+00> : vector<32x128xf32>
    %358 = tpu.matmul %356, %357, %cst_217 {dimension_numbers = #tpu.dot_dimension_numbers<[1], [0], [0], [1], [0, 0, 1, 1], [], []>} : vector<32x16xbf16>, vector<16x128xbf16>, vector<32x128xf32> -> vector<32x128xf32>
    %359 = vector.extract_strided_slice %350 {offsets = [0, 0], sizes = [16, 128], strides = [1, 1]} : vector<32x128xf32> to vector<16x128xf32>
    %360 = vector.extract_strided_slice %354 {offsets = [0, 0], sizes = [16, 128], strides = [1, 1]} : vector<32x128xf32> to vector<16x128xf32>
    %361 = vector.extract_strided_slice %358 {offsets = [0, 0], sizes = [16, 128], strides = [1, 1]} : vector<32x128xf32> to vector<16x128xf32>
    %362 = vector.extract_strided_slice %350 {offsets = [16, 0], sizes = [8, 128], strides = [1, 1]} : vector<32x128xf32> to vector<8x128xf32>
    %363 = vector.extract_strided_slice %354 {offsets = [16, 0], sizes = [8, 128], strides = [1, 1]} : vector<32x128xf32> to vector<8x128xf32>
    %364 = vector.extract_strided_slice %358 {offsets = [16, 0], sizes = [8, 128], strides = [1, 1]} : vector<32x128xf32> to vector<8x128xf32>
    %365 = vector.extract_strided_slice %350 {offsets = [24, 0], sizes = [8, 128], strides = [1, 1]} : vector<32x128xf32> to vector<8x128xf32>
    %366 = vector.extract_strided_slice %354 {offsets = [24, 0], sizes = [8, 128], strides = [1, 1]} : vector<32x128xf32> to vector<8x128xf32>
    %367 = vector.extract_strided_slice %358 {offsets = [24, 0], sizes = [8, 128], strides = [1, 1]} : vector<32x128xf32> to vector<8x128xf32>
    %368 = arith.mulf %359, %359 : vector<16x128xf32>
    %369 = arith.mulf %360, %360 : vector<16x128xf32>
    %370 = arith.addf %368, %369 : vector<16x128xf32>
    %371 = arith.mulf %361, %361 : vector<16x128xf32>
    %372 = arith.addf %370, %371 : vector<16x128xf32>
    %cst_218 = arith.constant 9.99999996E-13 : f32
    %373 = vector.broadcast %cst_218 : f32 to vector<16x128xf32>
    %374 = arith.addf %372, %373 : vector<16x128xf32>
    %375 = math.sqrt %374 : vector<16x128xf32>
    %cst_219 = arith.constant 1.000000e+00 : f32
    %376 = vector.broadcast %cst_219 : f32 to vector<16x128xf32>
    %377 = arith.addf %376, %375 : vector<16x128xf32>
    %378 = math.rsqrt %377 : vector<16x128xf32>
    %379 = arith.mulf %359, %378 : vector<16x128xf32>
    %380 = arith.mulf %360, %378 : vector<16x128xf32>
    %381 = arith.mulf %361, %378 : vector<16x128xf32>
    %c2_220 = arith.constant 2 : index
    %c0_221 = arith.constant 0 : index
    %c0_222 = arith.constant 0 : index
    %382 = vector.load %arg10[%c2_220, %c0_221, %c0_222] : memref<3x16x16xbf16, #tpu.memory_space<vmem>>, vector<1x16x16xbf16>
    %383 = vector.shape_cast %382 : vector<1x16x16xbf16> to vector<16x16xbf16>
    %384 = arith.truncf %379 : vector<16x128xf32> to vector<16x128xbf16>
    %cst_223 = arith.constant dense<0.000000e+00> : vector<16x128xf32>
    %385 = tpu.matmul %383, %384, %cst_223 {dimension_numbers = #tpu.dot_dimension_numbers<[1], [0], [0], [1], [0, 0, 1, 1], [], []>} : vector<16x16xbf16>, vector<16x128xbf16>, vector<16x128xf32> -> vector<16x128xf32>
    %c2_224 = arith.constant 2 : index
    %c0_225 = arith.constant 0 : index
    %c0_226 = arith.constant 0 : index
    %386 = vector.load %arg10[%c2_224, %c0_225, %c0_226] : memref<3x16x16xbf16, #tpu.memory_space<vmem>>, vector<1x16x16xbf16>
    %387 = vector.shape_cast %386 : vector<1x16x16xbf16> to vector<16x16xbf16>
    %388 = arith.truncf %380 : vector<16x128xf32> to vector<16x128xbf16>
    %cst_227 = arith.constant dense<0.000000e+00> : vector<16x128xf32>
    %389 = tpu.matmul %387, %388, %cst_227 {dimension_numbers = #tpu.dot_dimension_numbers<[1], [0], [0], [1], [0, 0, 1, 1], [], []>} : vector<16x16xbf16>, vector<16x128xbf16>, vector<16x128xf32> -> vector<16x128xf32>
    %c2_228 = arith.constant 2 : index
    %c0_229 = arith.constant 0 : index
    %c0_230 = arith.constant 0 : index
    %390 = vector.load %arg10[%c2_228, %c0_229, %c0_230] : memref<3x16x16xbf16, #tpu.memory_space<vmem>>, vector<1x16x16xbf16>
    %391 = vector.shape_cast %390 : vector<1x16x16xbf16> to vector<16x16xbf16>
    %392 = arith.truncf %381 : vector<16x128xf32> to vector<16x128xbf16>
    %cst_231 = arith.constant dense<0.000000e+00> : vector<16x128xf32>
    %393 = tpu.matmul %391, %392, %cst_231 {dimension_numbers = #tpu.dot_dimension_numbers<[1], [0], [0], [1], [0, 0, 1, 1], [], []>} : vector<16x16xbf16>, vector<16x128xbf16>, vector<16x128xf32> -> vector<16x128xf32>
    %394 = arith.mulf %385, %385 : vector<16x128xf32>
    %395 = arith.mulf %389, %389 : vector<16x128xf32>
    %396 = arith.addf %394, %395 : vector<16x128xf32>
    %397 = arith.mulf %393, %393 : vector<16x128xf32>
    %398 = arith.addf %396, %397 : vector<16x128xf32>
    %cst_232 = arith.constant 9.99999996E-13 : f32
    %399 = vector.broadcast %cst_232 : f32 to vector<16x128xf32>
    %400 = arith.addf %398, %399 : vector<16x128xf32>
    %401 = math.sqrt %400 : vector<16x128xf32>
    %cst_233 = arith.constant 1.000000e+00 : f32
    %402 = vector.broadcast %cst_233 : f32 to vector<16x128xf32>
    %403 = arith.addf %402, %401 : vector<16x128xf32>
    %404 = math.rsqrt %403 : vector<16x128xf32>
    %405 = arith.mulf %385, %404 : vector<16x128xf32>
    %406 = arith.mulf %389, %404 : vector<16x128xf32>
    %407 = arith.mulf %393, %404 : vector<16x128xf32>
    %c2_234 = arith.constant 2 : index
    %c0_235 = arith.constant 0 : index
    %c0_236 = arith.constant 0 : index
    %408 = vector.load %arg11[%c2_234, %c0_235, %c0_236] : memref<3x16x16xbf16, #tpu.memory_space<vmem>>, vector<1x16x16xbf16>
    %409 = vector.shape_cast %408 : vector<1x16x16xbf16> to vector<16x16xbf16>
    %410 = arith.truncf %405 : vector<16x128xf32> to vector<16x128xbf16>
    %cst_237 = arith.constant dense<0.000000e+00> : vector<16x128xf32>
    %411 = tpu.matmul %409, %410, %cst_237 {dimension_numbers = #tpu.dot_dimension_numbers<[1], [0], [0], [1], [0, 0, 1, 1], [], []>} : vector<16x16xbf16>, vector<16x128xbf16>, vector<16x128xf32> -> vector<16x128xf32>
    %c2_238 = arith.constant 2 : index
    %c0_239 = arith.constant 0 : index
    %c0_240 = arith.constant 0 : index
    %412 = vector.load %arg11[%c2_238, %c0_239, %c0_240] : memref<3x16x16xbf16, #tpu.memory_space<vmem>>, vector<1x16x16xbf16>
    %413 = vector.shape_cast %412 : vector<1x16x16xbf16> to vector<16x16xbf16>
    %414 = arith.truncf %406 : vector<16x128xf32> to vector<16x128xbf16>
    %cst_241 = arith.constant dense<0.000000e+00> : vector<16x128xf32>
    %415 = tpu.matmul %413, %414, %cst_241 {dimension_numbers = #tpu.dot_dimension_numbers<[1], [0], [0], [1], [0, 0, 1, 1], [], []>} : vector<16x16xbf16>, vector<16x128xbf16>, vector<16x128xf32> -> vector<16x128xf32>
    %c2_242 = arith.constant 2 : index
    %c0_243 = arith.constant 0 : index
    %c0_244 = arith.constant 0 : index
    %416 = vector.load %arg11[%c2_242, %c0_243, %c0_244] : memref<3x16x16xbf16, #tpu.memory_space<vmem>>, vector<1x16x16xbf16>
    %417 = vector.shape_cast %416 : vector<1x16x16xbf16> to vector<16x16xbf16>
    %418 = arith.truncf %407 : vector<16x128xf32> to vector<16x128xbf16>
    %cst_245 = arith.constant dense<0.000000e+00> : vector<16x128xf32>
    %419 = tpu.matmul %417, %418, %cst_245 {dimension_numbers = #tpu.dot_dimension_numbers<[1], [0], [0], [1], [0, 0, 1, 1], [], []>} : vector<16x16xbf16>, vector<16x128xbf16>, vector<16x128xf32> -> vector<16x128xf32>
    %420 = arith.mulf %362, %365 : vector<8x128xf32>
    %421 = arith.mulf %363, %366 : vector<8x128xf32>
    %422 = arith.addf %420, %421 : vector<8x128xf32>
    %423 = arith.mulf %364, %367 : vector<8x128xf32>
    %424 = arith.addf %422, %423 : vector<8x128xf32>
    %c2_246 = arith.constant 2 : index
    %c0_247 = arith.constant 0 : index
    %c0_248 = arith.constant 0 : index
    %425 = vector.load %arg12[%c2_246, %c0_247, %c0_248] : memref<3x32x8xbf16, #tpu.memory_space<vmem>>, vector<1x32x8xbf16>
    %426 = vector.shape_cast %425 : vector<1x32x8xbf16> to vector<32x8xbf16>
    %427 = arith.mulf %325, %424 : vector<8x128xf32>
    %428 = arith.truncf %427 : vector<8x128xf32> to vector<8x128xbf16>
    %cst_249 = arith.constant dense<0.000000e+00> : vector<32x128xf32>
    %429 = tpu.matmul %426, %428, %cst_249 {dimension_numbers = #tpu.dot_dimension_numbers<[1], [0], [0], [1], [0, 0, 1, 1], [], []>} : vector<32x8xbf16>, vector<8x128xbf16>, vector<32x128xf32> -> vector<32x128xf32>
    %c2_250 = arith.constant 2 : index
    %c0_251 = arith.constant 0 : index
    %c0_252 = arith.constant 0 : index
    %430 = vector.load %arg13[%c2_250, %c0_251, %c0_252] : memref<3x32x1xf32, #tpu.memory_space<vmem>>, vector<1x32x1xf32>
    %431 = vector.shape_cast %430 : vector<1x32x1xf32> to vector<32x1xf32>
    %432 = vector.broadcast %431 : vector<32x1xf32> to vector<32x128xf32>
    %433 = arith.addf %429, %432 : vector<32x128xf32>
    %c2_253 = arith.constant 2 : index
    %c0_254 = arith.constant 0 : index
    %c0_255 = arith.constant 0 : index
    %434 = vector.load %arg14[%c2_253, %c0_254, %c0_255] : memref<3x16x8xbf16, #tpu.memory_space<vmem>>, vector<1x16x8xbf16>
    %435 = vector.shape_cast %434 : vector<1x16x8xbf16> to vector<16x8xbf16>
    %436 = arith.mulf %325, %362 : vector<8x128xf32>
    %437 = arith.truncf %436 : vector<8x128xf32> to vector<8x128xbf16>
    %cst_256 = arith.constant dense<0.000000e+00> : vector<16x128xf32>
    %438 = tpu.matmul %435, %437, %cst_256 {dimension_numbers = #tpu.dot_dimension_numbers<[1], [0], [0], [1], [0, 0, 1, 1], [], []>} : vector<16x8xbf16>, vector<8x128xbf16>, vector<16x128xf32> -> vector<16x128xf32>
    %c2_257 = arith.constant 2 : index
    %c0_258 = arith.constant 0 : index
    %c0_259 = arith.constant 0 : index
    %439 = vector.load %arg14[%c2_257, %c0_258, %c0_259] : memref<3x16x8xbf16, #tpu.memory_space<vmem>>, vector<1x16x8xbf16>
    %440 = vector.shape_cast %439 : vector<1x16x8xbf16> to vector<16x8xbf16>
    %441 = arith.mulf %325, %363 : vector<8x128xf32>
    %442 = arith.truncf %441 : vector<8x128xf32> to vector<8x128xbf16>
    %cst_260 = arith.constant dense<0.000000e+00> : vector<16x128xf32>
    %443 = tpu.matmul %440, %442, %cst_260 {dimension_numbers = #tpu.dot_dimension_numbers<[1], [0], [0], [1], [0, 0, 1, 1], [], []>} : vector<16x8xbf16>, vector<8x128xbf16>, vector<16x128xf32> -> vector<16x128xf32>
    %c2_261 = arith.constant 2 : index
    %c0_262 = arith.constant 0 : index
    %c0_263 = arith.constant 0 : index
    %444 = vector.load %arg14[%c2_261, %c0_262, %c0_263] : memref<3x16x8xbf16, #tpu.memory_space<vmem>>, vector<1x16x8xbf16>
    %445 = vector.shape_cast %444 : vector<1x16x8xbf16> to vector<16x8xbf16>
    %446 = arith.mulf %325, %364 : vector<8x128xf32>
    %447 = arith.truncf %446 : vector<8x128xf32> to vector<8x128xbf16>
    %cst_264 = arith.constant dense<0.000000e+00> : vector<16x128xf32>
    %448 = tpu.matmul %445, %447, %cst_264 {dimension_numbers = #tpu.dot_dimension_numbers<[1], [0], [0], [1], [0, 0, 1, 1], [], []>} : vector<16x8xbf16>, vector<8x128xbf16>, vector<16x128xf32> -> vector<16x128xf32>
    %449 = arith.addf %298, %346 : vector<32x128xf32>
    %450 = arith.addf %449, %433 : vector<32x128xf32>
    %451 = arith.addf %411, %438 : vector<16x128xf32>
    %cst_265 = arith.constant 5.000000e-02 : f32
    %452 = vector.broadcast %cst_265 : f32 to vector<16x128xf32>
    %453 = arith.mulf %451, %452 : vector<16x128xf32>
    %454 = arith.addf %302, %453 : vector<16x128xf32>
    %455 = arith.addf %415, %443 : vector<16x128xf32>
    %cst_266 = arith.constant 5.000000e-02 : f32
    %456 = vector.broadcast %cst_266 : f32 to vector<16x128xf32>
    %457 = arith.mulf %455, %456 : vector<16x128xf32>
    %458 = arith.addf %306, %457 : vector<16x128xf32>
    %459 = arith.addf %419, %448 : vector<16x128xf32>
    %cst_267 = arith.constant 5.000000e-02 : f32
    %460 = vector.broadcast %cst_267 : f32 to vector<16x128xf32>
    %461 = arith.mulf %459, %460 : vector<16x128xf32>
    %462 = arith.addf %310, %461 : vector<16x128xf32>
    %463 = arith.mulf %454, %454 : vector<16x128xf32>
    %464 = arith.mulf %458, %458 : vector<16x128xf32>
    %465 = arith.addf %463, %464 : vector<16x128xf32>
    %466 = arith.mulf %462, %462 : vector<16x128xf32>
    %467 = arith.addf %465, %466 : vector<16x128xf32>
    %468 = math.sqrt %467 : vector<16x128xf32>
    %c0_268 = arith.constant 0 : index
    %c0_269 = arith.constant 0 : index
    %469 = vector.load %arg15[%c0_268, %c0_269] : memref<32x1xf32, #tpu.memory_space<vmem>>, vector<32x1xf32>
    %470 = vector.broadcast %469 : vector<32x1xf32> to vector<32x128xf32>
    %471 = arith.mulf %450, %470 : vector<32x128xf32>
    %cst_270 = arith.constant dense<0.000000e+00> : vector<128xf32>
    %472 = vector.multi_reduction <add>, %471, %cst_270 [0] : vector<32x128xf32> to vector<128xf32>
    %473 = vector.shape_cast %472 : vector<128xf32> to vector<1x128xf32>
    %c0_271 = arith.constant 0 : index
    %c0_272 = arith.constant 0 : index
    %474 = vector.load %arg16[%c0_271, %c0_272] : memref<16x1xf32, #tpu.memory_space<vmem>>, vector<16x1xf32>
    %475 = vector.broadcast %474 : vector<16x1xf32> to vector<16x128xf32>
    %476 = arith.mulf %468, %475 : vector<16x128xf32>
    %cst_273 = arith.constant dense<0.000000e+00> : vector<128xf32>
    %477 = vector.multi_reduction <add>, %476, %cst_273 [0] : vector<16x128xf32> to vector<128xf32>
    %478 = vector.shape_cast %477 : vector<128xf32> to vector<1x128xf32>
    %479 = arith.addf %473, %478 : vector<1x128xf32>
    %c0_274 = arith.constant 0 : index
    %c0_275 = arith.constant 0 : index
    %480 = vector.load %arg17[%c0_274, %c0_275] : memref<1x1xf32, #tpu.memory_space<vmem>>, vector<1x1xf32>
    %481 = vector.broadcast %480 : vector<1x1xf32> to vector<1x128xf32>
    %482 = arith.addf %479, %481 : vector<1x128xf32>
    %c0_276 = arith.constant 0 : index
    %c0_277 = arith.constant 0 : index
    %483 = vector.load %arg18[%c0_276, %c0_277] : memref<1x128xf32, #tpu.memory_space<vmem>>, vector<1x128xf32>
    tpu.vector_store %arg18[%c0_276, %c0_277], %482 {strides = array<i32>} : memref<1x128xf32, #tpu.memory_space<vmem>>, vector<1x128xf32>,
    return
  }
  func.func @transform_0(%arg0: i32) -> (i32, i32) {
    %c0_i32 = arith.constant 0 : i32
    %c0_i32_0 = arith.constant 0 : i32
    return %c0_i32, %arg0 : i32, i32
  }
  func.func @transform_1(%arg0: i32) -> (i32, i32, i32) {
    %c0_i32 = arith.constant 0 : i32
    %c0_i32_0 = arith.constant 0 : i32
    %c0_i32_1 = arith.constant 0 : i32
    return %c0_i32, %c0_i32_0, %arg0 : i32, i32, i32
  }
  func.func @transform_2(%arg0: i32) -> (i32, i32, i32) {
    %c0_i32 = arith.constant 0 : i32
    %c0_i32_0 = arith.constant 0 : i32
    %c0_i32_1 = arith.constant 0 : i32
    %c0_i32_2 = arith.constant 0 : i32
    return %c0_i32, %c0_i32_0, %c0_i32_1 : i32, i32, i32
  }
  func.func @transform_3(%arg0: i32) -> (i32, i32, i32) {
    %c0_i32 = arith.constant 0 : i32
    %c0_i32_0 = arith.constant 0 : i32
    %c0_i32_1 = arith.constant 0 : i32
    %c0_i32_2 = arith.constant 0 : i32
    return %c0_i32, %c0_i32_0, %c0_i32_1 : i32, i32, i32
  }
  func.func @transform_4(%arg0: i32) -> (i32, i32, i32) {
    %c0_i32 = arith.constant 0 : i32
    %c0_i32_0 = arith.constant 0 : i32
    %c0_i32_1 = arith.constant 0 : i32
    %c0_i32_2 = arith.constant 0 : i32
    return %c0_i32, %c0_i32_0, %c0_i32_1 : i32, i32, i32
  }
  func.func @transform_5(%arg0: i32) -> (i32, i32, i32) {
    %c0_i32 = arith.constant 0 : i32
    %c0_i32_0 = arith.constant 0 : i32
    %c0_i32_1 = arith.constant 0 : i32
    %c0_i32_2 = arith.constant 0 : i32
    return %c0_i32, %c0_i32_0, %c0_i32_1 : i32, i32, i32
  }
  func.func @transform_6(%arg0: i32) -> (i32, i32, i32) {
    %c0_i32 = arith.constant 0 : i32
    %c0_i32_0 = arith.constant 0 : i32
    %c0_i32_1 = arith.constant 0 : i32
    %c0_i32_2 = arith.constant 0 : i32
    return %c0_i32, %c0_i32_0, %c0_i32_1 : i32, i32, i32
  }
  func.func @transform_7(%arg0: i32) -> (i32, i32, i32) {
    %c0_i32 = arith.constant 0 : i32
    %c0_i32_0 = arith.constant 0 : i32
    %c0_i32_1 = arith.constant 0 : i32
    %c0_i32_2 = arith.constant 0 : i32
    return %c0_i32, %c0_i32_0, %c0_i32_1 : i32, i32, i32
  }
  func.func @transform_8(%arg0: i32) -> (i32, i32, i32) {
    %c0_i32 = arith.constant 0 : i32
    %c0_i32_0 = arith.constant 0 : i32
    %c0_i32_1 = arith.constant 0 : i32
    %c0_i32_2 = arith.constant 0 : i32
    return %c0_i32, %c0_i32_0, %c0_i32_1 : i32, i32, i32
  }
  func.func @transform_9(%arg0: i32) -> (i32, i32, i32) {
    %c0_i32 = arith.constant 0 : i32
    %c0_i32_0 = arith.constant 0 : i32
    %c0_i32_1 = arith.constant 0 : i32
    %c0_i32_2 = arith.constant 0 : i32
    return %c0_i32, %c0_i32_0, %c0_i32_1 : i32, i32, i32
  }
  func.func @transform_10(%arg0: i32) -> (i32, i32, i32) {
    %c0_i32 = arith.constant 0 : i32
    %c0_i32_0 = arith.constant 0 : i32
    %c0_i32_1 = arith.constant 0 : i32
    %c0_i32_2 = arith.constant 0 : i32
    return %c0_i32, %c0_i32_0, %c0_i32_1 : i32, i32, i32
  }
  func.func @transform_11(%arg0: i32) -> (i32, i32, i32) {
    %c0_i32 = arith.constant 0 : i32
    %c0_i32_0 = arith.constant 0 : i32
    %c0_i32_1 = arith.constant 0 : i32
    %c0_i32_2 = arith.constant 0 : i32
    return %c0_i32, %c0_i32_0, %c0_i32_1 : i32, i32, i32
  }
  func.func @transform_12(%arg0: i32) -> (i32, i32, i32) {
    %c0_i32 = arith.constant 0 : i32
    %c0_i32_0 = arith.constant 0 : i32
    %c0_i32_1 = arith.constant 0 : i32
    %c0_i32_2 = arith.constant 0 : i32
    return %c0_i32, %c0_i32_0, %c0_i32_1 : i32, i32, i32
  }
  func.func @transform_13(%arg0: i32) -> (i32, i32, i32) {
    %c0_i32 = arith.constant 0 : i32
    %c0_i32_0 = arith.constant 0 : i32
    %c0_i32_1 = arith.constant 0 : i32
    %c0_i32_2 = arith.constant 0 : i32
    return %c0_i32, %c0_i32_0, %c0_i32_1 : i32, i32, i32
  }
  func.func @transform_14(%arg0: i32) -> (i32, i32) {
    %c0_i32 = arith.constant 0 : i32
    %c0_i32_0 = arith.constant 0 : i32
    %c0_i32_1 = arith.constant 0 : i32
    return %c0_i32, %c0_i32_0 : i32, i32
  }
  func.func @transform_15(%arg0: i32) -> (i32, i32) {
    %c0_i32 = arith.constant 0 : i32
    %c0_i32_0 = arith.constant 0 : i32
    %c0_i32_1 = arith.constant 0 : i32
    return %c0_i32, %c0_i32_0 : i32, i32
  }
  func.func @transform_16(%arg0: i32) -> (i32, i32) {
    %c0_i32 = arith.constant 0 : i32
    %c0_i32_0 = arith.constant 0 : i32
    %c0_i32_1 = arith.constant 0 : i32
    return %c0_i32, %c0_i32_0 : i32, i32
  }
  func.func @transform_17(%arg0: i32) -> (i32, i32) {
    %c0_i32 = arith.constant 0 : i32
    %c0_i32_0 = arith.constant 0 : i32
    return %c0_i32, %arg0 : i32, i32
  }
}

</mosaic_0001>

<bundles_post_ra>
// kernel: tpu_custom_call.1
= control target key start
LH: loop header
LB: loop body
LE: loop exit
PB: predicated region body
PF: predicated region fallthrough
CT: control target
= control target key end

     0   :  { %s3714_s0 = inlined_call_operand.vmem [shape: f32[32,128], index: 0, kind: input, shape index: {}]   ;;  %s3715_s1 = inlined_call_operand.vmem [shape: f32[3,16,128], index: 1, kind: input, shape index: {}]   ;;  %s3716_s2 = inlined_call_operand.vmem [shape: bf16[3,40,32], index: 2, kind: input, shape index: {}]   ;;  %s3717_s3 = inlined_call_operand.vmem [shape: f32[3,40,1], index: 3, kind: input, shape index: {}]   ;;  %s3718_s4 = inlined_call_operand.vmem [shape: bf16[3,32,32], index: 4, kind: input, shape index: {}]   ;;  %s3719_s5 = inlined_call_operand.vmem [shape: f32[3,32,1], index: 5, kind: input, shape index: {}]   ;;  %s3720_s6 = inlined_call_operand.vmem [shape: bf16[3,32,32], index: 6, kind: input, shape index: {}]   ;;  %s3721_s7 = inlined_call_operand.vmem [shape: f32[3,32,1], index: 7, kind: input, shape index: {}]   ;;  %s3722_s8 = inlined_call_operand.vmem [shape: bf16[3,32,16], index: 8, kind: input, shape index: {}]   ;;  %s3723_s9 = inlined_call_operand.vmem [shape: bf16[3,16,16], index: 9, kind: input, shape index: {}]   ;;  %s3724_s10 = inlined_call_operand.vmem [shape: bf16[3,16,16], index: 10, kind: input, shape index: {}]   ;;  %s3725_s11 = inlined_call_operand.vmem [shape: bf16[3,32,8], index: 11, kind: input, shape index: {}]   ;;  %s3726_s12 = inlined_call_operand.vmem [shape: f32[3,32,1], index: 12, kind: input, shape index: {}]   ;;  %s3727_s13 = inlined_call_operand.vmem [shape: bf16[3,16,8], index: 13, kind: input, shape index: {}]   ;;  %s3728_s14 = inlined_call_operand.vmem [shape: f32[32,1], index: 14, kind: input, shape index: {}]   ;;  %s3729_s15 = inlined_call_operand.vmem [shape: f32[16,1], index: 15, kind: input, shape index: {}]   ;;  %s3730_s16 = inlined_call_operand.<no memory space> [shape: f32[1,1], index: 16, kind: input, shape index: {}]   ;;  %s3731_s17 = inlined_call_operand.hbm [shape: f32[1,128], index: 17, kind: output, shape index: {}]  }
   0x1   :  { %3734 = sst [smem:[#allocation6_spill]] %s3714_s0  ;;  %v22_v0 = vstv %s3730_s16 }
   0x2   :  { %3735 = sst [smem:[#allocation7_spill]] %s3715_s1  ;;  %23 = vst [vmem:[#allocation2] sm:$0x1] %v22_v0 }
   0x3   :  { %v81_v1 = vld [vmem:[%s3717_s3 + $0x10] sm:$0xff]  ;;  %v79_v2 = vld [vmem:[%s3717_s3] sm:$0xff]  ;;  %s3736_s18 = sld [smem:[#allocation6_spill]]  ;;  %v2802_v4 = vmov 0  }
   0x4   :  { %2722 = vset.pattern.permute.xlu1 %v2802_v4  ;;  %2721 = vset.pattern.permute.xlu0 %v2802_v4 }
   0x5   :  { %96 = vperm.xlu0 %2721, %v81_v1   ;;  %86 = vperm.xlu1 %2722, %v79_v2  }
   0x6   :  { %2723 = vset.pattern.permute.xlu2 %v2802_v4 }
   0x9   :  { %v2906_v3 = vld [vmem:[%s3736_s18 + $0x10] sm:$0xff]  ;;  %v2911_v5 = vld [vmem:[%s3736_s18 + $0x18] sm:$0xff]  ;;  %v2916_v6 = vld [vmem:[%s3736_s18] sm:$0xff] }
   0xa   :  { %v2921_v7 = vld [vmem:[%s3736_s18 + $0x8] sm:$0xff]  ;;  %v78_v8 = vpack.c.bf16 %v2911_v5, %v2906_v3 }
   0xb   :  { %v77_v9 = vpack.c.bf16 %v2921_v7, %v2916_v6 }
   0xc   :  { %138 = vmatpush.bf16.msra.mxu0 %v78_v8 }
   0xd   :  { %24 = vsyncpa [#allocation4], 0  ;;  %v82_v10 = vld [vmem:[%s3717_s3 + $0x18] sm:$0xff]  ;;  %v80_v11 = vld [vmem:[%s3717_s3 + $0x8] sm:$0xff]  ;;  %vm122_vm0 = vcmask 261120   ;;  %s3737_s29 = sld [smem:[#allocation7_spill]] }
   0xe   :  { %v2680_v12 = vld [vmem:[%s3716_s2] sm:$0xff]  ;;  %101 = vperm.xlu0 %2721, %v82_v10   ;;  %91 = vperm.xlu1 %2722, %v80_v11   ;;  %v174_v14 = vld [vmem:[%s3719_s5 + $0x8] sm:$0xff]  ;;  %v252_v15 = vld [vmem:[%s3721_s7 + $0x10] sm:$0xff]  ;;  %vm324_vm1 = vcmask 130048   ;;  %vm630_vm6 = vcmask 1043456   ;;  %vm623_vm15 = vcmask 64512  }
   0xf   :  { %v173_v13 = vld [vmem:[%s3719_s5] sm:$0xff]  ;;  %v253_v16 = vld [vmem:[%s3721_s7 + $0x18] sm:$0xff]  ;;  %v2681_v17 = vld [vmem:[%s3716_s2 + $0x8] sm:$0xff] }
  0x10   :  { %139 = vmatpush.bf16.msra.mxu0 %v77_v9  ;;  %v592_v18 = vld [vmem:[%s3726_s12 + $0x18] sm:$0xff]  ;;  %v250_v19 = vld [vmem:[%s3721_s7] sm:$0xff]  ;;  %v590_v21 = vld [vmem:[%s3726_s12 + $0x8] sm:$0xff] }
  0x11   :  { %v589_v20 = vld [vmem:[%s3726_s12] sm:$0xff]  ;;  %v2445_v23 = vld [vmem:[%s3717_s3 + $0x28] sm:$0xff]  ;;  %v2467_v24 = vld [vmem:[%s3719_s5 + $0x30] sm:$0xff] }
  0x12   :  { %v2448_v22 = vld [vmem:[%s3717_s3 + $0x40] sm:$0xff]  ;;  %v2468_v25 = vld [vmem:[%s3719_s5 + $0x38] sm:$0xff]  ;;  %v2466_v26 = vld [vmem:[%s3719_s5 + $0x28] sm:$0xff] }
  0x13   :  { %2372 = vmatmul.msk.bf16.vlgmr.msra.gmra.mxu0 %vm122_vm0, %v2680_v12  ;;  %v2449_v27 = vld [vmem:[%s3717_s3 + $0x48] sm:$0xff]  ;;  %v2486_v28 = vld [vmem:[%s3721_s7 + $0x38] sm:$0xff]  ;;  %v2532_v29 = vld [vmem:[%s3726_s12 + $0x30] sm:$0xff] }
  0x14   :  { %v175_v30 = vld [vmem:[%s3719_s5 + $0x10] sm:$0xff]  ;;  %v2483_v31 = vld [vmem:[%s3721_s7 + $0x20] sm:$0xff]  ;;  %v2484_v32 = vld [vmem:[%s3721_s7 + $0x28] sm:$0xff] }
  0x15   :  { %189 = vperm.xlu2 %2723, %v175_v30   ;;  %v176_v33 = vld [vmem:[%s3719_s5 + $0x18] sm:$0xff]  ;;  %v2531_v34 = vld [vmem:[%s3726_s12 + $0x28] sm:$0xff]  ;;  %v2567_v35 = vld [vmem:[%s3717_s3 + $0x60] sm:$0xff] }
  0x16   :  { %179 = vperm.xlu0 %2721, %v173_v13   ;;  %184 = vperm.xlu1 %2722, %v174_v14   ;;  %v3010_v36 = vld [vmem:[%s3737_s29] sm:$0xff]  ;;  %v3015_v37 = vld [vmem:[%s3737_s29 + $0x8] sm:$0xff]  ;;  %v2565_v41 = vld [vmem:[%s3717_s3 + $0x50] sm:$0xff] }
  0x17   :  { %v83_v38 = vld [vmem:[%s3717_s3 + $0x20] sm:$0xff]  ;;  %v313_v39 = vpack.c.bf16 %v3015_v37, %v3010_v36  ;;  %v2566_v42 = vld [vmem:[%s3717_s3 + $0x58] sm:$0xff]  ;;  %v591_v43 = vld [vmem:[%s3726_s12 + $0x10] sm:$0xff] }
  0x18   :  { %v3025_v40 = vld [vmem:[%s3722_s8] sm:$0xff]  ;;  %v2588_v44 = vld [vmem:[%s3719_s5 + $0x58] sm:$0xff]  ;;  %v251_v46 = vld [vmem:[%s3721_s7 + $0x8] sm:$0xff] }
  0x19   :  { %338 = vmatpush.bf16.msra.mxu3 %v313_v39  ;;  %v2585_v45 = vld [vmem:[%s3719_s5 + $0x40] sm:$0xff]  ;;  %v3050_v47 = vld [vmem:[%s3722_s8 + $0x8] sm:$0xff]  ;;  %v2569_v48 = vld [vmem:[%s3717_s3 + $0x70] sm:$0xff] }
  0x1a   :  { %v2603_v49 = vld [vmem:[%s3721_s7 + $0x40] sm:$0xff]  ;;  %v2447_v50 = vld [vmem:[%s3717_s3 + $0x38] sm:$0xff]  ;;  %v2605_v51 = vld [vmem:[%s3721_s7 + $0x50] sm:$0xff] }
  0x1b   :  { %v2606_v52 = vld [vmem:[%s3721_s7 + $0x58] sm:$0xff]  ;;  %v3072_v53 = vld [vmem:[%s3737_s29 + $0x10] sm:$0xff]  ;;  %v2651_v57 = vld [vmem:[%s3726_s12 + $0x48] sm:$0xff] }
  0x1c   :  { %2403 = vmatmul.msk.bf16.vlgmr.msra.gmra.mxu3 %vm324_vm1, %v3025_v40  ;;  %v3077_v54 = vld [vmem:[%s3737_s29 + $0x18] sm:$0xff]  ;;  %v2446_v56 = vld [vmem:[%s3717_s3 + $0x30] sm:$0xff]  ;;  %v2465_v59 = vld [vmem:[%s3719_s5 + $0x20] sm:$0xff] }
  0x1d   :  { %194 = vperm.xlu2 %2723, %v176_v33   ;;  %v350_v55 = vpack.c.bf16 %v3077_v54, %v3072_v53  ;;  %v2652_v58 = vld [vmem:[%s3726_s12 + $0x50] sm:$0xff]  ;;  %v2276_v60 = vld [vmem:[%s3728_s14] sm:$0xff]  ;;  %v2277_v61 = vld [vmem:[%s3728_s14 + $0x8] sm:$0xff] }
  0x1e   :  { %266 = vperm.xlu0 %2721, %v252_v15   ;;  %271 = vperm.xlu1 %2722, %v253_v16   ;;  %v2485_v63 = vld [vmem:[%s3721_s7 + $0x30] sm:$0xff]  ;;  %v2279_v0 = vld [vmem:[%s3728_s14 + $0x18] sm:$0xff]  ;;  %v2313_v1 = vld [vmem:[%s3729_s15] sm:$0xff] }
  0x1f   :  { %358 = vmatpush.bf16.msrb.mxu3 %v350_v55  ;;  %v2533_v4 = vld [vmem:[%s3726_s12 + $0x38] sm:$0xff]  ;;  %v76_v9 = vld [vmem:[%s3716_s2 + $0x10] sm:$0xf]  ;;  %v2335_v12 = vld [vmem:[#allocation2] sm:$0x1] }
  0x20   :  { %v118_v10 = vunpack.c.l.b16 %v76_v9  ;;  %v2530_v15 = vld [vmem:[%s3726_s12 + $0x20] sm:$0xff] }
  0x22   :  { %v121_v13 = vpack.c.b16 %v118_v10, %v118_v10 }
  0x23   :  { %2373 = vmatmul.msk.bf16.gmra.mxu0 %vm122_vm0, %v2681_v17 }
  0x25   :  { %106 = vperm.xlu2 %2723, %v83_v38  }
  0x26   :  { %610 = vperm.xlu0 %2721, %v592_v18   ;;  %256 = vperm.xlu1 %2722, %v250_v19  }
  0x2c   :  { %2404 = vmatmul.msk.bf16.gmra.mxu3 %vm324_vm1, %v3050_v47 }
  0x2d   :  { %605 = vperm.xlu2 %2723, %v591_v43   ;;  %v2604_v43 = vld [vmem:[%s3721_s7 + $0x48] sm:$0xff] }
  0x2e   :  { %595 = vperm.xlu0 %2721, %v589_v20   ;;  %600 = vperm.xlu1 %2722, %v590_v21  }
  0x33   :  { %2374 = vmatmul.msk.bf16.gmra.mxu0 %vm122_vm0, %v121_v13 }
  0x35   :  { %261 = vperm.xlu2 %2723, %v251_v46   ;;  %v2653_v46 = vld [vmem:[%s3726_s12 + $0x58] sm:$0xff] }
  0x36   :  { %821 = vperm.xlu0 %2721, %v2448_v22   ;;  %806 = vperm.xlu1 %2722, %v2445_v23  }
  0x3c   :  { %2405 = vmatmul.msk.bf16.vlgmr.msrb.gmra.mxu3 %vm324_vm1, %v3025_v40 }
  0x3d   :  { %816 = vperm.xlu2 %2723, %v2447_v50  }
  0x3e   :  { %910 = vperm.xlu0 %2721, %v2467_v24   ;;  %915 = vperm.xlu1 %2722, %v2468_v25   ;;  %v2568_v24 = vld [vmem:[%s3717_s3 + $0x68] sm:$0xff] }
  0x45   :  { %811 = vperm.xlu2 %2723, %v2446_v56  }
  0x46   :  { %905 = vperm.xlu0 %2721, %v2466_v26   ;;  %826 = vperm.xlu1 %2722, %v2449_v27  }
  0x4c   :  { %2406 = vmatmul.msk.bf16.gmra.mxu3 %vm324_vm1, %v3050_v47 }
  0x4d   :  { %900 = vperm.xlu2 %2723, %v2465_v59  }
  0x4e   :  { %994 = vperm.xlu0 %2721, %v2486_v28   ;;  %1332 = vperm.xlu1 %2722, %v2532_v29  }
  0x55   :  { %989 = vperm.xlu2 %2723, %v2485_v63  }
  0x56   :  { %979 = vperm.xlu0 %2721, %v2483_v31   ;;  %984 = vperm.xlu1 %2722, %v2484_v32   ;;  %v3128_v31 = vld [vmem:[%s3737_s29 + $0x20] sm:$0xff]  ;;  %v3133_v32 = vld [vmem:[%s3737_s29 + $0x28] sm:$0xff] }
  0x57   :  { %v370_v38 = vpack.c.bf16 %v3133_v32, %v3128_v31 }
  0x5d   :  { %1337 = vperm.xlu2 %2723, %v2533_v4  }
  0x5e   :  { %1327 = vperm.xlu0 %2721, %v2531_v34   ;;  %1542 = vperm.xlu1 %2722, %v2567_v35   ;;  %v2587_v35 = vld [vmem:[%s3719_s5 + $0x50] sm:$0xff] }
  0x65   :  { %1322 = vperm.xlu2 %2723, %v2530_v15  }
  0x66   :  { %1532 = vperm.xlu0 %2721, %v2565_v41   ;;  %1537 = vperm.xlu1 %2722, %v2566_v42   ;;  %v2682_v41 = vld [vmem:[%s3718_s4] sm:$0xff]  ;;  %v2586_v42 = vld [vmem:[%s3719_s5 + $0x48] sm:$0xff] }
  0x6d   :  { %1547 = vperm.xlu2 %2723, %v2568_v24  }
  0x6e   :  { %1641 = vperm.xlu0 %2721, %v2588_v44   ;;  %1626 = vperm.xlu1 %2722, %v2585_v45   ;;  %v2683_v44 = vld [vmem:[%s3718_s4 + $0x8] sm:$0xff]  ;;  %v2650_v45 = vld [vmem:[%s3726_s12 + $0x40] sm:$0xff]  ;;  %s2351_s12 = sshll.u32 %s3731_s17, 4  ;;  %s2352_s12 = int_to_ptr.hbm [resolvable:$true] %s2351_s12 }
  0x75   :  { %1636 = vperm.xlu2 %2723, %v2587_v35  }
  0x76   :  { %1552 = vperm.xlu0 %2721, %v2569_v48   ;;  %1705 = vperm.xlu1 %2722, %v2603_v49   ;;  %v2278_v48 = vld [vmem:[%s3728_s14 + $0x10] sm:$0xff]  ;;  %v2314_v49 = vld [vmem:[%s3729_s15 + $0x8] sm:$0xff] }
  0x77   :  { %v87_v8 = vpop.permute.xlu1 %86  ;;  %v97_v11 = vpop.permute.xlu0 %96 }
  0x7d   :  { %1631 = vperm.xlu2 %2723, %v2586_v42  }
  0x7e   :  { %1715 = vperm.xlu0 %2721, %v2605_v51   ;;  %1720 = vperm.xlu1 %2722, %v2606_v52  }
  0x80   :  { %v92_v17 = vpop.permute.xlu1 %91  ;;  %v102_v19 = vpop.permute.xlu0 %101 }
  0x85   :  { %1710 = vperm.xlu2 %2723, %v2604_v43  }
  0x86   :  { %2053 = vperm.xlu0 %2721, %v2651_v57   ;;  %2058 = vperm.xlu1 %2722, %v2652_v58   ;;  %v190_v57 = vpop.permute.xlu2 %189 }
  0x88   :  { %v185_v10 = vpop.permute.xlu1 %184 }
  0x8d   :  { %2048 = vperm.xlu2 %2723, %v2650_v45  }
  0x8e   :  { %2282 = vperm.xlu0 %2721, %v2276_v60   ;;  %2287 = vperm.xlu1 %2722, %v2277_v61   ;;  %v195_v59 = vpop.permute.xlu2 %194 }
  0x90   :  { %v141_v62 = vpop.f32.mrf.mxu0 }
  0x91   :  { %v142_v21 = vadd.f32 %v141_v62, %v87_v8 }
  0x93   :  { %v159_v27 = vmul.f32 0.2, %v142_v21  ;;  %vm155_vm5 = vcmp.gt.f32.partialorder %v142_v21, 0.0 }
  0x95   :  { %v163_v34 = vsel %vm155_vm5, %v142_v21, %v159_v27  ;;  %2063 = vperm.xlu2 %2723, %v2653_v46  }
  0x96   :  { %2297 = vperm.xlu0 %2721, %v2279_v0   ;;  %2317 = vperm.xlu1 %2722, %v2313_v1   ;;  %v107_v63 = vpop.permute.xlu2 %106 }
  0x98   :  { %v143_v2 = vpop.f32.mrf.mxu0 }
  0x99   :  { %v144_v18 = vadd.f32 %v143_v2, %v92_v17 }
  0x9b   :  { %v160_v25 = vmul.f32 0.2, %v144_v18  ;;  %vm156_vm4 = vcmp.gt.f32.partialorder %v144_v18, 0.0 }
  0x9d   :  { %v164_v33 = vsel %vm156_vm4, %v144_v18, %v160_v25  ;;  %2292 = vperm.xlu2 %2723, %v2278_v48  }
  0x9e   :  { %2338 = vperm.xlu0 %2721, %v2335_v12   ;;  %v171_v39 = vpack.c.bf16 %v164_v33, %v163_v34  ;;  %v180_v12 = vpop.permute.xlu0 %179  ;;  %v2684_v34 = vld [vmem:[%s3720_s6] sm:$0xff] }
  0x9f   :  { %v3170_v50 = vpop.f32.mrf.mxu3 }
  0xa0   :  { %v146_v14 = vpop.f32.mrf.mxu0 }
  0xa1   :  { %v147_v16 = vadd.f32 %v146_v14, %v97_v11 }
  0xa3   :  { %v161_v22 = vmul.f32 0.2, %v147_v16  ;;  %vm157_vm2 = vcmp.gt.f32.partialorder %v147_v16, 0.0 }
  0xa5   :  { %v165_v28 = vsel %vm157_vm2, %v147_v16, %v161_v22  ;;  %2322 = vperm.xlu2 %2723, %v2314_v49  }
  0xa7   :  { %v3172_v51 = vpop.f32.mrf.mxu3 }
  0xa8   :  { %v148_v20 = vpop.f32.mrf.mxu0  ;;  %v391_v35 = vmul.f32 %v3172_v51, %v3172_v51 }
  0xa9   :  { %v149_v23 = vadd.f32 %v148_v20, %v102_v19  ;;  %v390_v19 = vmul.f32 %v3170_v50, %v3170_v50 }
  0xab   :  { %vm158_vm3 = vcmp.gt.f32.partialorder %v149_v23, 0.0  ;;  %v162_v26 = vmul.f32 0.2, %v149_v23 }
  0xad   :  { %v166_v29 = vsel %vm158_vm3, %v149_v23, %v162_v26 }
  0xae   :  { %v172_v30 = vpack.c.bf16 %v166_v29, %v165_v28 }
  0xaf   :  { %v3174_v52 = vpop.f32.mrf.mxu3 }
  0xb0   :  { %219 = vmatpush.bf16.msra.mxu1 %v172_v30 }
  0xb4   :  { %220 = vmatpush.bf16.msra.mxu1 %v171_v39 }
  0xb7   :  { %2383 = vmatmul.msk.bf16.vlgmr.msra.gmra.mxu1 %vm122_vm0, %v2682_v41  ;;  %v3176_v55 = vpop.f32.mrf.mxu3 }
  0xb8   :  { %378 = vmatpush.bf16.msrb.mxu1 %v370_v38 }
  0xbf   :  { %v3178_v58 = vpop.f32.mrf.mxu3 }
  0xc0   :  { %v392_v20 = vmul.f32 %v3178_v58, %v3178_v58 }
  0xc2   :  { %v394_v27 = vadd.f32 %v392_v20, %v390_v19 }
  0xc7   :  { %2384 = vmatmul.msk.bf16.gmra.mxu1 %vm122_vm0, %v2683_v44  ;;  %v3180_v61 = vpop.f32.mrf.mxu3 }
  0xc8   :  { %v393_v38 = vmul.f32 %v3180_v61, %v3180_v61 }
  0xca   :  { %v395_v42 = vadd.f32 %v393_v38, %v391_v35 }
  0xcf   :  { %v365_v0 = vpop.f32.mrf.mxu3 }
  0xd7   :  { %2407 = vmatmul.msk.bf16.vlgmr.msrb.gmra.mxu1 %vm324_vm1, %v3025_v40  ;;  %v151_v40 = vpop.f32.mrf.mxu0 }
  0xdf   :  { %v153_v56 = vpop.f32.mrf.mxu0 }
  0xe0   :  { %v367_v56 = vpop.f32.mrf.mxu3 }
  0xe7   :  { %2408 = vmatmul.msk.bf16.gmra.mxu1 %vm324_vm1, %v3050_v47  ;;  %v3182_v47 = vadd.f32 %v151_v40, %v107_v63  ;;  %v578_v63 = vmul.f32 %v3176_v55, %v3174_v52 }
  0xe9   :  { %v682_v1 = vmul.f32 %v365_v0, %v3182_v47 }
  0xeb   :  { %v683_v2 = vpack.c.bf16 %v682_v1, %v682_v1  ;;  %v579_v1 = vmul.f32 %v367_v56, %v365_v0 }
  0xed   :  { %v685_v8 = vsel %vm630_vm6, %v683_v2, 0 }
  0xee   :  { %694 = vmatpush.bf16.msra.mxu1 %v685_v8 }
 0x134   :  { %v222_v60 = vpop.f32.mrf.mxu1 }
 0x135   :  { %v223_v14 = vadd.f32 %v222_v60, %v180_v12 }
 0x137   :  { %v236_v21 = vmul.f32 0.2, %v223_v14  ;;  %vm232_vm10 = vcmp.gt.f32.partialorder %v223_v14, 0.0 }
 0x139   :  { %v240_v29 = vsel %vm232_vm10, %v223_v14, %v236_v21 }
 0x13c   :  { %v224_v62 = vpop.f32.mrf.mxu1 }
 0x13d   :  { %v225_v11 = vadd.f32 %v224_v62, %v185_v10 }
 0x13f   :  { %v237_v17 = vmul.f32 0.2, %v225_v11  ;;  %vm233_vm9 = vcmp.gt.f32.partialorder %v225_v11, 0.0 }
 0x141   :  { %v241_v25 = vsel %vm233_vm9, %v225_v11, %v237_v17  ;;  %v580_v11 = vadd.f32 %v579_v1, %v578_v63 }
 0x142   :  { %v248_v30 = vpack.c.bf16 %v241_v25, %v240_v29 }
 0x144   :  { %v227_v4 = vpop.f32.mrf.mxu1 }
 0x145   :  { %v228_v9 = vadd.f32 %v227_v4, %v190_v57 }
 0x147   :  { %v238_v15 = vmul.f32 0.2, %v228_v9  ;;  %vm234_vm7 = vcmp.gt.f32.partialorder %v228_v9, 0.0 }
 0x149   :  { %v242_v22 = vsel %vm234_vm7, %v228_v9, %v238_v15 }
 0x14c   :  { %v229_v13 = vpop.f32.mrf.mxu1 }
 0x14d   :  { %v230_v16 = vadd.f32 %v229_v13, %v195_v59  ;;  %v2685_v59 = vld [vmem:[%s3720_s6 + $0x8] sm:$0xff] }
 0x14f   :  { %vm235_vm8 = vcmp.gt.f32.partialorder %v230_v16, 0.0  ;;  %v239_v18 = vmul.f32 0.2, %v230_v16 }
 0x151   :  { %v243_v23 = vsel %vm235_vm8, %v230_v16, %v239_v18 }
 0x152   :  { %v249_v24 = vpack.c.bf16 %v243_v23, %v242_v22 }
 0x154   :  { %296 = vmatpush.bf16.msra.mxu2 %v249_v24  ;;  %v3190_v26 = vpop.f32.mrf.mxu1  ;;  %v2690_v24 = vld [vmem:[%s3725_s11] sm:$0xff] }
 0x155   :  { %v396_v28 = vmul.f32 %v3190_v26, %v3190_v26 }
 0x157   :  { %v398_v33 = vadd.f32 %v396_v28, %v394_v27 }
 0x158   :  { %297 = vmatpush.bf16.msra.mxu2 %v248_v30 }
 0x159   :  { %v400_v39 = vadd.f32 1e-12, %v398_v33 }
 0x15b   :  { %2724 = vrsqrt.f32 %v400_v39  ;;  %2393 = vmatmul.msk.bf16.vlgmr.msra.gmra.mxu2 %vm122_vm0, %v2684_v34  ;;  %vm409_vm11 = vcmp.eq.f32.partialorder %v400_v39, inf  ;;  %v412_v12 = vand.u32 2147483648, %v400_v39  ;;  %vm411_vm12 = vcmp.eq.f32.partialorder %v400_v39, 0.0 }
 0x15c   :  { %v3202_v41 = vpop.f32.mrf.mxu1 }
 0x15d   :  { %v397_v43 = vmul.f32 %v3202_v41, %v3202_v41 }
 0x15f   :  { %v399_v44 = vadd.f32 %v397_v43, %v395_v42 }
 0x161   :  { %v2725_v45 = vpop.eup %2724  ;;  %v401_v46 = vadd.f32 1e-12, %v399_v44 }
 0x162   :  { %v403_v48 = vmul.f32 %v2725_v45, %v400_v39 }
 0x163   :  { %2726 = vrsqrt.f32 %v401_v46  ;;  %vm421_vm13 = vcmp.eq.f32.partialorder %v401_v46, inf  ;;  %v424_v22 = vand.u32 2147483648, %v401_v46  ;;  %vm423_vm14 = vcmp.eq.f32.partialorder %v401_v46, 0.0 }
 0x164   :  { %v404_v49 = vmul.f32 %v2725_v45, %v403_v48  ;;  %v3206_v40 = vpop.f32.mrf.mxu1 }
 0x166   :  { %v405_v57 = vmul.f32 0.5, %v404_v49 }
 0x168   :  { %v406_v60 = vsub.f32 1.5, %v405_v57 }
 0x169   :  { %v2727_v62 = vpop.eup %2726 }
 0x16a   :  { %v407_v2 = vmul.f32 %v2725_v45, %v406_v60  ;;  %v415_v4 = vmul.f32 %v2727_v62, %v401_v46  ;;  %v2691_v45 = vld [vmem:[%s3725_s11 + $0x8] sm:$0xff] }
 0x16b   :  { %2394 = vmatmul.msk.bf16.gmra.mxu2 %vm122_vm0, %v2685_v59 }
 0x16c   :  { %v408_v8 = vmul.f32 %v407_v2, %v400_v39  ;;  %v416_v9 = vmul.f32 %v2727_v62, %v415_v4  ;;  %v387_v10 = vpop.f32.mrf.mxu1 }
 0x16d   :  { %v581_v13 = vmul.f32 %v387_v10, %v3206_v40 }
 0x16e   :  { %v410_v14 = vsel %vm409_vm11, %v400_v39, %v408_v8  ;;  %v417_v15 = vmul.f32 0.5, %v416_v9 }
 0x16f   :  { %v413_v16 = vsel %vm411_vm12, %v412_v12, %v410_v14  ;;  %v582_v17 = vadd.f32 %v581_v13, %v580_v11  ;;  %v606_v14 = vpop.permute.xlu2 %605 }
 0x170   :  { %v426_v18 = vadd.f32 1.0, %v413_v16  ;;  %v418_v55 = vsub.f32 1.5, %v417_v15 }
 0x171   :  { %v587_v0 = vmul.f32 %v582_v17, %v3182_v47 }
 0x172   :  { %2728 = vrsqrt.f32 %v426_v18  ;;  %v419_v19 = vmul.f32 %v2727_v62, %v418_v55  ;;  %vm434_vm3 = vweird.f32 %v426_v18  ;;  %v701_v62 = vmul.f32 %v3206_v40, %v3182_v47  ;;  %v267_v40 = vpop.permute.xlu0 %266 }
 0x173   :  { %v588_v20 = vpack.c.bf16 %v587_v0, %v587_v0 }
 0x174   :  { %v420_v21 = vmul.f32 %v419_v19, %v401_v46  ;;  %v702_v11 = vpack.c.bf16 %v701_v62, %v701_v62 }
 0x175   :  { %v632_v23 = vsel %vm630_vm6, %v588_v20, 0 }
 0x176   :  { %v422_v25 = vsel %vm421_vm13, %v401_v46, %v420_v21  ;;  %641 = vmatpush.bf16.msra.mxu3 %v632_v23  ;;  %v655_v46 = vmul.f32 %v3174_v52, %v3182_v47 }
 0x177   :  { %v425_v27 = vsel %vm423_vm14, %v424_v22, %v422_v25  ;;  %v262_v19 = vpop.permute.xlu2 %261 }
 0x178   :  { %v2729_v28 = vpop.eup %2728  ;;  %v427_v29 = vadd.f32 1.0, %v425_v27  ;;  %v656_v57 = vpack.c.bf16 %v655_v46, %v655_v46  ;;  %v2693_v46 = vld [vmem:[%s3716_s2 + $0x14] sm:$0xff] }
 0x179   :  { %v429_v30 = vmul.f32 %v2729_v28, %v426_v18  ;;  %2424 = vmatmul.msk.bf16.vlgmr.msra.gmra.mxu3 %vm623_vm15, %v2690_v24  ;;  %vm435_vm2 = vweird.f32 %v2729_v28 }
 0x17a   :  { %2730 = vrsqrt.f32 %v427_v29  ;;  %vm436_vm4 = vmor %vm434_vm3, %vm435_vm2  ;;  %vm444_vm7 = vweird.f32 %v427_v29  ;;  %v611_v16 = vpop.permute.xlu0 %610 }
 0x17b   :  { %v430_v33 = vmul.f32 %v2729_v28, %v429_v30 }
 0x17d   :  { %v431_v34 = vmul.f32 0.5, %v430_v33 }
 0x17f   :  { %v432_v38 = vsub.f32 1.5, %v431_v34 }
 0x180   :  { %v2731_v35 = vpop.eup %2730 }
 0x181   :  { %v439_v39 = vmul.f32 %v2731_v35, %v427_v29  ;;  %v433_v43 = vmul.f32 %v2729_v28, %v432_v38  ;;  %vm445_vm5 = vweird.f32 %v2731_v35 }
 0x182   :  { %vm446_vm8 = vmor %vm444_vm7, %vm445_vm5  ;;  %v596_v30 = vpop.permute.xlu0 %595 }
 0x183   :  { %v440_v42 = vmul.f32 %v2731_v35, %v439_v39  ;;  %v437_v49 = vsel %vm436_vm4, %v2729_v28, %v433_v43 }
 0x184   :  { %v452_v59 = vmul.f32 %v437_v49, %v3190_v26  ;;  %v448_v63 = vmul.f32 %v437_v49, %v3170_v50  ;;  %v450_v2 = vmul.f32 %v437_v49, %v3178_v58  ;;  %v2688_v26 = vld [vmem:[%s3723_s9] sm:$0xff]  ;;  %v666_v50 = vsel %vm630_vm6, %v656_v57, 0 }
 0x185   :  { %v441_v44 = vmul.f32 0.5, %v440_v42 }
 0x187   :  { %v442_v48 = vsub.f32 1.5, %v441_v44 }
 0x189   :  { %v443_v56 = vmul.f32 %v2731_v35, %v442_v48  ;;  %2425 = vmatmul.msk.bf16.gmra.mxu3 %vm623_vm15, %v2691_v45 }
 0x18b   :  { %v447_v60 = vsel %vm446_vm8, %v2731_v35, %v443_v56 }
 0x18c   :  { %v453_v52 = vmul.f32 %v447_v60, %v3202_v41  ;;  %v449_v1 = vmul.f32 %v447_v60, %v3172_v51  ;;  %v451_v4 = vmul.f32 %v447_v60, %v3180_v61  ;;  %v704_v51 = vsel %vm630_vm6, %v702_v11, 0  ;;  %v272_v41 = vpop.permute.xlu1 %271 }
 0x18e   :  { %v494_v8 = vpack.c.bf16 %v453_v52, %v452_v59  ;;  %v456_v9 = vpack.c.bf16 %v449_v1, %v448_v63  ;;  %v479_v10 = vpack.c.bf16 %v451_v4, %v450_v2  ;;  %v2694_v4 = vld [vmem:[%s3716_s2 + $0x1c] sm:$0xff] }
 0x190   :  { %472 = vmatpush.bf16.msrb.mxu2 %v456_v9  ;;  %487 = vmatpush.bf16.msrb.mxu0 %v479_v10 }
 0x193   :  { %2413 = vmatmul.msk.bf16.vlgmr.msrb.gmra.mxu2 %vm324_vm1, %v2688_v26  ;;  %2414 = vmatmul.msk.bf16.vlgmr.msrb.gmra.mxu0 %vm324_vm1, %v2688_v26 }
 0x194   :  { %502 = vmatpush.bf16.msra.mxu2 %v494_v8  ;;  %675 = vmatpush.bf16.msra.mxu0 %v666_v50  ;;  %v257_v15 = vpop.permute.xlu1 %256 }
 0x198   :  { %713 = vmatpush.bf16.msrb.mxu2 %v704_v51 }
 0x19c   :  { %v601_v22 = vpop.permute.xlu1 %600 }
 0x1a3   :  { %2415 = vmatmul.msk.bf16.vlgmr.msra.gmra.mxu2 %vm324_vm1, %v2688_v26  ;;  %v2692_v26 = vld [vmem:[%s3727_s13] sm:$0xff] }
 0x1a4   :  { %2430 = vmatmul.msk.bf16.vlgmr.msra.gmra.mxu0 %vm623_vm15, %v2692_v26  ;;  %2431 = vmatmul.msk.bf16.vlgmr.msra.gmra.mxu1 %vm623_vm15, %v2692_v26 }
 0x1b3   :  { %2432 = vmatmul.msk.bf16.vlgmr.msrb.gmra.mxu2 %vm623_vm15, %v2692_v26  ;;  %v2689_v26 = vld [vmem:[%s3724_s10] sm:$0xff] }
 0x1de   :  { %v299_v58 = vpop.f32.mrf.mxu2 }
 0x1df   :  { %v300_v23 = vadd.f32 %v299_v58, %v257_v15  ;;  %v2444_v58 = vld [vmem:[%s3716_s2 + $0x24] sm:$0xf] }
 0x1e1   :  { %v720_v42 = vadd.f32 %v300_v23, %v2916_v6 }
 0x1e6   :  { %v301_v61 = vpop.f32.mrf.mxu2 }
 0x1e7   :  { %v302_v20 = vadd.f32 %v301_v61, %v262_v19 }
 0x1e9   :  { %v721_v34 = vadd.f32 %v302_v20, %v2921_v7 }
 0x1ee   :  { %v304_v12 = vpop.f32.mrf.mxu2 }
 0x1ef   :  { %v305_v55 = vadd.f32 %v304_v12, %v267_v40 }
 0x1f1   :  { %v722_v25 = vadd.f32 %v305_v55, %v2906_v3 }
 0x1f6   :  { %v306_v18 = vpop.f32.mrf.mxu2 }
 0x1f7   :  { %v307_v0 = vadd.f32 %v306_v18, %v272_v41  ;;  %v838_v41 = vunpack.c.l.b16 %v2444_v58  ;;  %v807_v58 = vpop.permute.xlu1 %806 }
 0x1f9   :  { %v723_v27 = vadd.f32 %v307_v0, %v2911_v5 }
 0x1fc   :  { %v643_v47 = vpop.f32.mrf.mxu3 }
 0x1fd   :  { %v644_v35 = vadd.f32 %v643_v47, %v596_v30 }
 0x1ff   :  { %v3257_v5 = vadd.f32 %v720_v42, %v644_v35 }
 0x204   :  { %v645_v13 = vpop.f32.mrf.mxu3 }
 0x205   :  { %v646_v28 = vadd.f32 %v645_v13, %v601_v22 }
 0x207   :  { %v3253_v43 = vadd.f32 %v721_v34, %v646_v28 }
 0x209   :  { %v796_v7 = vpack.c.bf16 %v3253_v43, %v3257_v5 }
 0x20c   :  { %v648_v17 = vpop.f32.mrf.mxu3 }
 0x20d   :  { %v649_v21 = vadd.f32 %v648_v17, %v606_v14  ;;  %v841_v17 = vpack.c.b16 %v838_v41, %v838_v41 }
 0x20f   :  { %v3248_v38 = vadd.f32 %v722_v25, %v649_v21 }
 0x210   :  { %v3259_v44 = vpop.f32.mrf.mxu0 }
 0x211   :  { %v511_v48 = vmul.f32 %v3259_v44, %v3259_v44 }
 0x214   :  { %v650_v24 = vpop.f32.mrf.mxu3 }
 0x215   :  { %v651_v29 = vadd.f32 %v650_v24, %v611_v16 }
 0x216   :  { %v3245_v33 = vpop.f32.mrf.mxu2 }
 0x217   :  { %v3250_v39 = vadd.f32 %v723_v27, %v651_v29  ;;  %v509_v6 = vmul.f32 %v3245_v33, %v3245_v33 }
 0x218   :  { %v3275_v57 = vpop.f32.mrf.mxu0 }
 0x219   :  { %v797_v3 = vpack.c.bf16 %v3250_v39, %v3248_v38  ;;  %v513_v49 = vadd.f32 %v511_v48, %v509_v6  ;;  %v512_v63 = vmul.f32 %v3275_v57, %v3275_v57 }
 0x21b   :  { %857 = vmatpush.bf16.msrb.mxu3 %v797_v3 }
 0x21e   :  { %v3263_v45 = vpop.f32.mrf.mxu2 }
 0x21f   :  { %858 = vmatpush.bf16.msrb.mxu3 %v796_v7  ;;  %v510_v60 = vmul.f32 %v3263_v45, %v3263_v45 }
 0x221   :  { %v514_v1 = vadd.f32 %v512_v63, %v510_v60 }
 0x222   :  { %2458 = vmatmul.msk.bf16.vlgmr.msrb.gmra.mxu3 %vm122_vm0, %v2693_v46 }
 0x226   :  { %v3273_v56 = vpop.f32.mrf.mxu2 }
 0x227   :  { %v515_v59 = vmul.f32 %v3273_v56, %v3273_v56 }
 0x229   :  { %v517_v62 = vadd.f32 %v515_v59, %v513_v49 }
 0x22b   :  { %v519_v52 = vadd.f32 1e-12, %v517_v62 }
 0x22d   :  { %2732 = vrsqrt.f32 %v519_v52  ;;  %vm528_vm9 = vcmp.eq.f32.partialorder %v519_v52, inf  ;;  %v531_v14 = vand.u32 2147483648, %v519_v52  ;;  %vm530_vm10 = vcmp.eq.f32.partialorder %v519_v52, 0.0 }
 0x22e   :  { %v3283_v2 = vpop.f32.mrf.mxu2 }
 0x22f   :  { %v516_v8 = vmul.f32 %v3283_v2, %v3283_v2 }
 0x231   :  { %v518_v9 = vadd.f32 %v516_v8, %v514_v1 }
 0x232   :  { %2459 = vmatmul.msk.bf16.gmra.mxu3 %vm122_vm0, %v2694_v4 }
 0x233   :  { %v2733_v10 = vpop.eup %2732  ;;  %v520_v11 = vadd.f32 1e-12, %v518_v9 }
 0x234   :  { %v522_v50 = vmul.f32 %v2733_v10, %v519_v52 }
 0x235   :  { %2734 = vrsqrt.f32 %v520_v11  ;;  %vm540_vm11 = vcmp.eq.f32.partialorder %v520_v11, inf  ;;  %v543_v22 = vand.u32 2147483648, %v520_v11  ;;  %vm542_vm12 = vcmp.eq.f32.partialorder %v520_v11, 0.0 }
 0x236   :  { %v523_v51 = vmul.f32 %v2733_v10, %v522_v50  ;;  %v822_v50 = vpop.permute.xlu0 %821 }
 0x238   :  { %v524_v61 = vmul.f32 0.5, %v523_v51 }
 0x23a   :  { %v525_v47 = vsub.f32 1.5, %v524_v61 }
 0x23b   :  { %v2735_v40 = vpop.eup %2734 }
 0x23c   :  { %v526_v12 = vmul.f32 %v2733_v10, %v525_v47  ;;  %v534_v13 = vmul.f32 %v2735_v40, %v520_v11 }
 0x23e   :  { %v527_v15 = vmul.f32 %v526_v12, %v519_v52  ;;  %v535_v16 = vmul.f32 %v2735_v40, %v534_v13 }
 0x240   :  { %v529_v18 = vsel %vm528_vm9, %v519_v52, %v527_v15  ;;  %v536_v55 = vmul.f32 0.5, %v535_v16 }
 0x241   :  { %v532_v0 = vsel %vm530_vm10, %v531_v14, %v529_v18 }
 0x242   :  { %v545_v19 = vadd.f32 1.0, %v532_v0  ;;  %v537_v20 = vsub.f32 1.5, %v536_v55  ;;  %2460 = vmatmul.msk.bf16.gmra.mxu3 %vm122_vm0, %v841_v17 }
 0x244   :  { %2736 = vrsqrt.f32 %v545_v19  ;;  %v538_v21 = vmul.f32 %v2735_v40, %v537_v20  ;;  %vm553_vm13 = vweird.f32 %v545_v19  ;;  %v2695_v20 = vld [vmem:[%s3718_s4 + $0x10] sm:$0xff] }
 0x246   :  { %v539_v23 = vmul.f32 %v538_v21, %v520_v11 }
 0x248   :  { %v541_v24 = vsel %vm540_vm11, %v520_v11, %v539_v23  ;;  %v696_v23 = vpop.f32.mrf.mxu1 }
 0x249   :  { %v544_v25 = vsel %vm542_vm12, %v543_v22, %v541_v24  ;;  %v677_v22 = vpop.f32.mrf.mxu0 }
 0x24a   :  { %v2737_v27 = vpop.eup %2736  ;;  %v546_v28 = vadd.f32 1.0, %v544_v25 }
 0x24b   :  { %v548_v29 = vmul.f32 %v2737_v27, %v545_v19  ;;  %vm554_vm14 = vweird.f32 %v2737_v27 }
 0x24c   :  { %2738 = vrsqrt.f32 %v546_v28  ;;  %vm555_vm2 = vmor %vm553_vm13, %vm554_vm14  ;;  %vm563_vm3 = vweird.f32 %v546_v28 }
 0x24d   :  { %v549_v30 = vmul.f32 %v2737_v27, %v548_v29 }
 0x24f   :  { %v550_v34 = vmul.f32 0.5, %v549_v30 }
 0x250   :  { %v698_v25 = vpop.f32.mrf.mxu1 }
 0x251   :  { %v551_v35 = vsub.f32 1.5, %v550_v34  ;;  %v679_v24 = vpop.f32.mrf.mxu0 }
 0x252   :  { %v2739_v42 = vpop.eup %2738 }
 0x253   :  { %v558_v3 = vmul.f32 %v2739_v42, %v546_v28  ;;  %v552_v7 = vmul.f32 %v2737_v27, %v551_v35  ;;  %vm564_vm4 = vweird.f32 %v2739_v42 }
 0x254   :  { %vm565_vm5 = vmor %vm563_vm3, %vm564_vm4 }
 0x255   :  { %v559_v46 = vmul.f32 %v2739_v42, %v558_v3  ;;  %v556_v48 = vsel %vm555_vm2, %v2737_v27, %v552_v7  ;;  %v2696_v27 = vld [vmem:[%s3718_s4 + $0x18] sm:$0xff] }
 0x256   :  { %v567_v60 = vmul.f32 %v556_v48, %v3245_v33  ;;  %v569_v62 = vmul.f32 %v556_v48, %v3259_v44  ;;  %v571_v63 = vmul.f32 %v556_v48, %v3273_v56 }
 0x257   :  { %v560_v6 = vmul.f32 0.5, %v559_v46 }
 0x259   :  { %v561_v49 = vsub.f32 1.5, %v560_v6 }
 0x25b   :  { %v562_v59 = vmul.f32 %v2739_v42, %v561_v49 }
 0x25d   :  { %v566_v52 = vsel %vm565_vm5, %v2739_v42, %v562_v59 }
 0x25e   :  { %v568_v1 = vmul.f32 %v566_v52, %v3263_v45  ;;  %v570_v4 = vmul.f32 %v566_v52, %v3275_v57  ;;  %v572_v8 = vmul.f32 %v566_v52, %v3283_v2  ;;  %v817_v45 = vpop.permute.xlu2 %816 }
 0x260   :  { %v577_v9 = vpack.c.bf16 %v572_v8, %v571_v63  ;;  %v575_v10 = vpack.c.bf16 %v568_v1, %v567_v60  ;;  %v576_v11 = vpack.c.bf16 %v570_v4, %v569_v62 }
 0x262   :  { %743 = vmatpush.bf16.msrb.mxu0 %v575_v10  ;;  %761 = vmatpush.bf16.msrb.mxu1 %v576_v11  ;;  %v911_v10 = vpop.permute.xlu0 %910 }
 0x263   :  { %779 = vmatpush.bf16.msra.mxu2 %v577_v9 }
 0x265   :  { %2437 = vmatmul.msk.bf16.vlgmr.msrb.gmra.mxu0 %vm324_vm1, %v2689_v26  ;;  %2438 = vmatmul.msk.bf16.vlgmr.msrb.gmra.mxu1 %vm324_vm1, %v2689_v26 }
 0x266   :  { %2439 = vmatmul.msk.bf16.vlgmr.msra.gmra.mxu2 %vm324_vm1, %v2689_v26  ;;  %v812_v2 = vpop.permute.xlu2 %811 }
 0x2a5   :  { %v860_v33 = vpop.f32.mrf.mxu3 }
 0x2a6   :  { %v861_v47 = vadd.f32 %v860_v33, %v807_v58 }
 0x2a8   :  { %v878_v14 = vmul.f32 0.2, %v861_v47  ;;  %vm874_vm10 = vcmp.gt.f32.partialorder %v861_v47, 0.0 }
 0x2aa   :  { %v882_v0 = vsel %vm874_vm10, %v861_v47, %v878_v14 }
 0x2ad   :  { %v862_v44 = vpop.f32.mrf.mxu3 }
 0x2ae   :  { %v863_v51 = vadd.f32 %v862_v44, %v812_v2 }
 0x2b0   :  { %v879_v12 = vmul.f32 0.2, %v863_v51  ;;  %vm875_vm9 = vcmp.gt.f32.partialorder %v863_v51, 0.0 }
 0x2b2   :  { %v883_v18 = vsel %vm875_vm9, %v863_v51, %v879_v12 }
 0x2b3   :  { %v891_v19 = vpack.c.bf16 %v883_v18, %v882_v0 }
 0x2b5   :  { %v865_v56 = vpop.f32.mrf.mxu3 }
 0x2b6   :  { %v866_v57 = vadd.f32 %v865_v56, %v817_v45  ;;  %v906_v56 = vpop.permute.xlu0 %905 }
 0x2b8   :  { %v880_v41 = vmul.f32 0.2, %v866_v57  ;;  %vm876_vm7 = vcmp.gt.f32.partialorder %v866_v57, 0.0 }
 0x2ba   :  { %v884_v15 = vsel %vm876_vm7, %v866_v57, %v880_v41  ;;  %v916_v57 = vpop.permute.xlu1 %915 }
 0x2bd   :  { %v867_v61 = vpop.f32.mrf.mxu3 }
 0x2be   :  { %v868_v40 = vadd.f32 %v867_v61, %v822_v50  ;;  %v901_v50 = vpop.permute.xlu2 %900 }
 0x2c0   :  { %vm877_vm8 = vcmp.gt.f32.partialorder %v868_v40, 0.0  ;;  %v881_v13 = vmul.f32 0.2, %v868_v40 }
 0x2c2   :  { %v885_v16 = vsel %vm877_vm8, %v868_v40, %v881_v13 }
 0x2c3   :  { %v892_v17 = vpack.c.bf16 %v885_v16, %v884_v15 }
 0x2c5   :  { %v3313_v55 = vpop.f32.mrf.mxu3  ;;  %940 = vmatpush.bf16.msra.mxu0 %v892_v17 }
 0x2c9   :  { %941 = vmatpush.bf16.msra.mxu0 %v891_v19 }
 0x2cc   :  { %2477 = vmatmul.msk.bf16.vlgmr.msra.gmra.mxu0 %vm122_vm0, %v2695_v20 }
 0x2cd   :  { %v872_v21 = vpop.f32.mrf.mxu3 }
 0x2dc   :  { %2478 = vmatmul.msk.bf16.gmra.mxu0 %vm122_vm0, %v2696_v27  ;;  %v827_v27 = vpop.permute.xlu1 %826 }
 0x2e2   :  { %v745_v28 = vpop.f32.mrf.mxu0  ;;  %v763_v29 = vpop.f32.mrf.mxu1 }
 0x2e3   :  { %v746_v30 = vadd.f32 %v745_v28, %v677_v22  ;;  %v764_v34 = vadd.f32 %v763_v29, %v696_v23  ;;  %v3382_v29 = vadd.f32 %v3313_v55, %v827_v27 }
 0x2e5   :  { %v750_v35 = vmul.f32 0.05, %v746_v30  ;;  %v768_v42 = vmul.f32 0.05, %v764_v34 }
 0x2e7   :  { %v3324_v48 = vadd.f32 %v750_v35, %v3010_v36  ;;  %v3327_v49 = vadd.f32 %v3072_v53, %v768_v42  ;;  %v3342_v36 = vld [vmem:[%s3722_s8 + $0x10] sm:$0xff]  ;;  %v715_v53 = vpop.f32.mrf.mxu2 }
 0x2ea   :  { %v747_v3 = vpop.f32.mrf.mxu0  ;;  %v765_v7 = vpop.f32.mrf.mxu1 }
 0x2eb   :  { %v748_v46 = vadd.f32 %v747_v3, %v679_v24  ;;  %v766_v6 = vadd.f32 %v765_v7, %v698_v25  ;;  %v2698_v25 = vld [vmem:[%s3720_s6 + $0x18] sm:$0xff] }
 0x2ed   :  { %v751_v59 = vmul.f32 0.05, %v748_v46  ;;  %v769_v60 = vmul.f32 0.05, %v766_v6 }
 0x2ef   :  { %v3330_v62 = vadd.f32 %v751_v59, %v3015_v37  ;;  %v3333_v63 = vadd.f32 %v3077_v54, %v769_v60  ;;  %v3351_v37 = vld [vmem:[%s3722_s8 + $0x18] sm:$0xff]  ;;  %v717_v54 = vpop.f32.mrf.mxu2 }
 0x2f1   :  { %v1037_v52 = vpack.c.bf16 %v3330_v62, %v3324_v48  ;;  %v1073_v1 = vpack.c.bf16 %v3333_v63, %v3327_v49 }
 0x2f3   :  { %1061 = vmatpush.bf16.msrb.mxu2 %v1037_v52  ;;  %1081 = vmatpush.bf16.msrb.mxu0 %v1073_v1 }
 0x2f6   :  { %2509 = vmatmul.msk.bf16.vlgmr.msrb.gmra.mxu2 %vm324_vm1, %v3342_v36  ;;  %2511 = vmatmul.msk.bf16.vlgmr.msrb.gmra.mxu0 %vm324_vm1, %v3342_v36 }
 0x2f7   :  { %v781_v9 = vpop.f32.mrf.mxu2 }
 0x2f8   :  { %v782_v33 = vadd.f32 %v781_v9, %v715_v53 }
 0x2fa   :  { %v786_v58 = vmul.f32 0.05, %v782_v33 }
 0x2fc   :  { %v3358_v14 = vadd.f32 %v3128_v31, %v786_v58  ;;  %v2697_v31 = vld [vmem:[%s3720_s6 + $0x10] sm:$0xff] }
 0x2ff   :  { %v783_v26 = vpop.f32.mrf.mxu2 }
 0x300   :  { %v784_v45 = vadd.f32 %v783_v26, %v717_v54 }
 0x302   :  { %v787_v40 = vmul.f32 0.05, %v784_v45 }
 0x304   :  { %v3361_v18 = vadd.f32 %v3133_v32, %v787_v40 }
 0x306   :  { %2510 = vmatmul.msk.bf16.gmra.mxu2 %vm324_vm1, %v3351_v37  ;;  %2512 = vmatmul.msk.bf16.gmra.mxu0 %vm324_vm1, %v3351_v37  ;;  %v1093_v20 = vpack.c.bf16 %v3361_v18, %v3358_v14 }
 0x349   :  { %v943_v4 = vpop.f32.mrf.mxu0 }
 0x34a   :  { %v944_v61 = vadd.f32 %v943_v4, %v901_v50 }
 0x34c   :  { %v957_v15 = vmul.f32 0.2, %v944_v61  ;;  %vm953_vm14 = vcmp.gt.f32.partialorder %v944_v61, 0.0 }
 0x34e   :  { %v961_v21 = vsel %vm953_vm14, %v944_v61, %v957_v15 }
 0x351   :  { %v945_v8 = vpop.f32.mrf.mxu0 }
 0x352   :  { %v946_v2 = vadd.f32 %v945_v8, %v906_v56 }
 0x354   :  { %v958_v12 = vmul.f32 0.2, %v946_v2  ;;  %vm954_vm13 = vcmp.gt.f32.partialorder %v946_v2, 0.0 }
 0x356   :  { %v962_v19 = vsel %vm954_vm13, %v946_v2, %v958_v12 }
 0x357   :  { %v970_v22 = vpack.c.bf16 %v962_v19, %v961_v21 }
 0x359   :  { %v948_v11 = vpop.f32.mrf.mxu0 }
 0x35a   :  { %v949_v44 = vadd.f32 %v948_v11, %v911_v10 }
 0x35c   :  { %v959_v47 = vmul.f32 0.2, %v949_v44  ;;  %vm955_vm11 = vcmp.gt.f32.partialorder %v949_v44, 0.0 }
 0x35e   :  { %v963_v16 = vsel %vm955_vm11, %v949_v44, %v959_v47 }
 0x361   :  { %v950_v51 = vpop.f32.mrf.mxu0 }
 0x362   :  { %v951_v41 = vadd.f32 %v950_v51, %v916_v57 }
 0x364   :  { %vm956_vm12 = vcmp.gt.f32.partialorder %v951_v41, 0.0  ;;  %v960_v13 = vmul.f32 0.2, %v951_v41 }
 0x366   :  { %v964_v17 = vsel %vm956_vm12, %v951_v41, %v960_v13 }
 0x367   :  { %v971_v0 = vpack.c.bf16 %v964_v17, %v963_v16 }
 0x369   :  { %1019 = vmatpush.bf16.msra.mxu1 %v971_v0 }
 0x36d   :  { %1020 = vmatpush.bf16.msra.mxu1 %v970_v22 }
 0x370   :  { %2495 = vmatmul.msk.bf16.vlgmr.msra.gmra.mxu1 %vm122_vm0, %v2697_v31 }
 0x371   :  { %1101 = vmatpush.bf16.msrb.mxu1 %v1093_v20 }
 0x373   :  { %v3369_v23 = vpop.f32.mrf.mxu0 }
 0x374   :  { %v1115_v1 = vmul.f32 %v3369_v23, %v3369_v23 }
 0x379   :  { %v3371_v32 = vpop.f32.mrf.mxu2 }
 0x37a   :  { %v1113_v53 = vmul.f32 %v3371_v32, %v3371_v32 }
 0x37b   :  { %v3373_v24 = vpop.f32.mrf.mxu0 }
 0x37c   :  { %v1117_v54 = vadd.f32 %v1115_v1, %v1113_v53  ;;  %v1116_v8 = vmul.f32 %v3373_v24, %v3373_v24 }
 0x380   :  { %2496 = vmatmul.msk.bf16.gmra.mxu1 %vm122_vm0, %v2698_v25 }
 0x381   :  { %v3379_v28 = vpop.f32.mrf.mxu2 }
 0x382   :  { %v1114_v9 = vmul.f32 %v3379_v28, %v3379_v28 }
 0x383   :  { %v3384_v30 = vpop.f32.mrf.mxu0 }
 0x384   :  { %v1408_v34 = vmul.f32 %v3384_v30, %v3382_v29  ;;  %v1118_v26 = vadd.f32 %v1116_v8, %v1114_v9 }
 0x386   :  { %v1409_v35 = vpack.c.bf16 %v1408_v34, %v1408_v34 }
 0x388   :  { %v1411_v42 = vsel %vm630_vm6, %v1409_v35, 0 }
 0x389   :  { %v1068_v3 = vpop.f32.mrf.mxu2  ;;  %1420 = vmatpush.bf16.msra.mxu1 %v1411_v42 }
 0x38a   :  { %v1381_v7 = vmul.f32 %v1068_v3, %v3382_v29 }
 0x38b   :  { %v1090_v42 = vpop.f32.mrf.mxu0 }
 0x38c   :  { %v1382_v46 = vpack.c.bf16 %v1381_v7, %v1381_v7  ;;  %v1304_v1 = vmul.f32 %v1090_v42, %v3384_v30 }
 0x38e   :  { %v1392_v6 = vsel %vm630_vm6, %v1382_v46, 0 }
 0x38f   :  { %1401 = vmatpush.bf16.msra.mxu0 %v1392_v6 }
 0x390   :  { %2513 = vmatmul.msk.bf16.vlgmr.msrb.gmra.mxu1 %vm324_vm1, %v3342_v36 }
 0x391   :  { %v1070_v35 = vpop.f32.mrf.mxu2 }
 0x392   :  { %v1303_v6 = vmul.f32 %v1070_v35, %v1068_v3  ;;  %v995_v35 = vpop.permute.xlu0 %994 }
 0x3a0   :  { %2514 = vmatmul.msk.bf16.gmra.mxu1 %vm324_vm1, %v3351_v37 }
 0x3ed   :  { %v3395_v55 = vpop.f32.mrf.mxu1 }
 0x3f5   :  { %v3397_v59 = vpop.f32.mrf.mxu1 }
 0x3fd   :  { %v3399_v60 = vpop.f32.mrf.mxu1 }
 0x405   :  { %v3401_v52 = vpop.f32.mrf.mxu1 }
 0x40d   :  { %v3407_v4 = vpop.f32.mrf.mxu1 }
 0x40e   :  { %v1119_v36 = vmul.f32 %v3407_v4, %v3407_v4 }
 0x410   :  { %v1121_v37 = vadd.f32 %v1119_v36, %v1117_v54  ;;  %v1305_v36 = vadd.f32 %v1304_v1, %v1303_v6  ;;  %v990_v6 = vpop.permute.xlu2 %989 }
 0x412   :  { %v1123_v10 = vadd.f32 1e-12, %v1121_v37 }
 0x414   :  { %2740 = vrsqrt.f32 %v1123_v10  ;;  %vm1132_vm2 = vcmp.eq.f32.partialorder %v1123_v10, inf  ;;  %v1135_v12 = vand.u32 2147483648, %v1123_v10  ;;  %vm1134_vm3 = vcmp.eq.f32.partialorder %v1123_v10, 0.0 }
 0x415   :  { %v3415_v11 = vpop.f32.mrf.mxu1 }
 0x416   :  { %v1120_v33 = vmul.f32 %v3415_v11, %v3415_v11 }
 0x418   :  { %v1122_v44 = vadd.f32 %v1120_v33, %v1118_v26 }
 0x41a   :  { %v2741_v45 = vpop.eup %2740  ;;  %v1124_v56 = vadd.f32 1e-12, %v1122_v44 }
 0x41b   :  { %v1126_v57 = vmul.f32 %v2741_v45, %v1123_v10 }
 0x41c   :  { %2742 = vrsqrt.f32 %v1124_v56  ;;  %vm1144_vm4 = vcmp.eq.f32.partialorder %v1124_v56, inf  ;;  %v1147_v22 = vand.u32 2147483648, %v1124_v56  ;;  %vm1146_vm5 = vcmp.eq.f32.partialorder %v1124_v56, 0.0 }
 0x41d   :  { %v1127_v2 = vmul.f32 %v2741_v45, %v1126_v57  ;;  %v1108_v20 = vpop.f32.mrf.mxu1 }
 0x41f   :  { %v1128_v50 = vmul.f32 0.5, %v1127_v2  ;;  %v1427_v2 = vmul.f32 %v1108_v20, %v3382_v29 }
 0x421   :  { %v1129_v51 = vsub.f32 1.5, %v1128_v50 }
 0x422   :  { %v2743_v58 = vpop.eup %2742 }
 0x423   :  { %v1130_v61 = vmul.f32 %v2741_v45, %v1129_v51  ;;  %v1138_v47 = vmul.f32 %v2743_v58, %v1124_v56 }
 0x425   :  { %v1131_v41 = vmul.f32 %v1130_v61, %v1123_v10  ;;  %v1139_v40 = vmul.f32 %v2743_v58, %v1138_v47  ;;  %v1110_v53 = vpop.f32.mrf.mxu1 }
 0x426   :  { %v1306_v37 = vmul.f32 %v1110_v53, %v1108_v20 }
 0x427   :  { %v1133_v13 = vsel %vm1132_vm2, %v1123_v10, %v1131_v41  ;;  %v1140_v15 = vmul.f32 0.5, %v1139_v40 }
 0x428   :  { %v1136_v16 = vsel %vm1134_vm3, %v1135_v12, %v1133_v13  ;;  %v1307_v33 = vadd.f32 %v1306_v37, %v1305_v36  ;;  %v1333_v37 = vpop.permute.xlu1 %1332 }
 0x429   :  { %v1149_v17 = vadd.f32 1.0, %v1136_v16  ;;  %v1141_v0 = vsub.f32 1.5, %v1140_v15 }
 0x42a   :  { %v1313_v3 = vmul.f32 %v1307_v33, %v3382_v29  ;;  %v2704_v29 = vld [vmem:[%s3725_s11 + $0x18] sm:$0xff]  ;;  %v980_v33 = vpop.permute.xlu0 %979 }
 0x42b   :  { %2744 = vrsqrt.f32 %v1149_v17  ;;  %v1142_v19 = vmul.f32 %v2743_v58, %v1141_v0  ;;  %vm1157_vm8 = vweird.f32 %v1149_v17 }
 0x42c   :  { %v1314_v61 = vpack.c.bf16 %v1313_v3, %v1313_v3 }
 0x42d   :  { %v1143_v21 = vmul.f32 %v1142_v19, %v1124_v56 }
 0x42f   :  { %v1145_v31 = vsel %vm1144_vm4, %v1124_v56, %v1143_v21 }
 0x430   :  { %v1148_v25 = vsel %vm1146_vm5, %v1147_v22, %v1145_v31 }
 0x431   :  { %v2745_v27 = vpop.eup %2744  ;;  %v1150_v34 = vadd.f32 1.0, %v1148_v25 }
 0x432   :  { %v1152_v7 = vmul.f32 %v2745_v27, %v1149_v17  ;;  %vm1158_vm7 = vweird.f32 %v2745_v27  ;;  %v1428_v17 = vpack.c.bf16 %v1427_v2, %v1427_v2  ;;  %v1030_v2 = vadd.f32 %v3401_v52, %v995_v35 }
 0x433   :  { %2746 = vrsqrt.f32 %v1150_v34  ;;  %vm1159_vm9 = vmor %vm1157_vm8, %vm1158_vm7  ;;  %vm1167_vm11 = vweird.f32 %v1150_v34 }
 0x434   :  { %v1153_v46 = vmul.f32 %v2745_v27, %v1152_v7 }
 0x436   :  { %v1154_v54 = vmul.f32 0.5, %v1153_v46 }
 0x438   :  { %v1155_v9 = vsub.f32 1.5, %v1154_v54 }
 0x439   :  { %v2747_v8 = vpop.eup %2746 }
 0x43a   :  { %v1162_v10 = vmul.f32 %v2747_v8, %v1150_v34  ;;  %v1156_v44 = vmul.f32 %v2745_v27, %v1155_v9  ;;  %vm1168_vm10 = vweird.f32 %v2747_v8 }
 0x43b   :  { %vm1169_vm12 = vmor %vm1167_vm11, %vm1168_vm10 }
 0x43c   :  { %v1163_v26 = vmul.f32 %v2747_v8, %v1162_v10  ;;  %v1160_v57 = vsel %vm1159_vm9, %v2745_v27, %v1156_v44 }
 0x43d   :  { %v1171_v50 = vmul.f32 %v1160_v57, %v3371_v32  ;;  %v1173_v51 = vmul.f32 %v1160_v57, %v3369_v23  ;;  %v1175_v47 = vmul.f32 %v1160_v57, %v3407_v4  ;;  %v2701_v32 = vld [vmem:[%s3723_s9 + $0x8] sm:$0xff]  ;;  %v1357_v23 = vsel %vm630_vm6, %v1314_v61, 0 }
 0x43e   :  { %v1164_v45 = vmul.f32 0.5, %v1163_v26  ;;  %v2705_v26 = vld [vmem:[%s3727_s13 + $0x8] sm:$0xff] }
 0x43f   :  { %2550 = vmatmul.msk.bf16.vlgmr.msra.gmra.mxu0 %vm623_vm15, %v2705_v26  ;;  %2551 = vmatmul.msk.bf16.vlgmr.msra.gmra.mxu1 %vm623_vm15, %v2705_v26 }
 0x440   :  { %v1165_v56 = vsub.f32 1.5, %v1164_v45  ;;  %v1338_v45 = vpop.permute.xlu2 %1337 }
 0x442   :  { %v1166_v30 = vmul.f32 %v2747_v8, %v1165_v56 }
 0x444   :  { %v1170_v58 = vsel %vm1169_vm12, %v2747_v8, %v1166_v30  ;;  %v1028_v30 = vadd.f32 %v3399_v60, %v990_v6 }
 0x445   :  { %v1172_v41 = vmul.f32 %v1170_v58, %v3379_v28  ;;  %v1174_v40 = vmul.f32 %v1170_v58, %v3373_v24  ;;  %v1176_v12 = vmul.f32 %v1170_v58, %v3415_v11  ;;  %v1430_v24 = vsel %vm630_vm6, %v1428_v17, 0  ;;  %v2703_v28 = vld [vmem:[%s3725_s11 + $0x10] sm:$0xff]  ;;  %v985_v58 = vpop.permute.xlu1 %984 }
 0x446   :  { %v1025_v61 = vadd.f32 %v3397_v59, %v985_v58 }
 0x447   :  { %v1218_v13 = vpack.c.bf16 %v1176_v12, %v1175_v47  ;;  %v1180_v15 = vpack.c.bf16 %v1172_v41, %v1171_v50  ;;  %v1203_v16 = vpack.c.bf16 %v1174_v40, %v1173_v51  ;;  %v1023_v40 = vadd.f32 %v3395_v55, %v980_v33 }
 0x448   :  { %v1447_v59 = vadd.f32 %v1025_v61, %v3253_v43 }
 0x449   :  { %1196 = vmatpush.bf16.msra.mxu2 %v1180_v15  ;;  %1211 = vmatpush.bf16.msra.mxu3 %v1203_v16  ;;  %v1448_v15 = vadd.f32 %v1028_v30, %v3248_v38  ;;  %v1449_v16 = vadd.f32 %v1030_v2, %v3250_v39 }
 0x44c   :  { %2521 = vmatmul.msk.bf16.vlgmr.msra.gmra.mxu2 %vm324_vm1, %v2701_v32  ;;  %2522 = vmatmul.msk.bf16.vlgmr.msra.gmra.mxu3 %vm324_vm1, %v2701_v32 }
 0x44d   :  { %1226 = vmatpush.bf16.msrb.mxu2 %v1218_v13  ;;  %1366 = vmatpush.bf16.msrb.mxu3 %v1357_v23  ;;  %v1328_v13 = vpop.permute.xlu0 %1327 }
 0x451   :  { %1439 = vmatpush.bf16.msra.mxu2 %v1430_v24 }
 0x45c   :  { %2523 = vmatmul.msk.bf16.vlgmr.msrb.gmra.mxu2 %vm324_vm1, %v2701_v32  ;;  %2542 = vmatmul.msk.bf16.vlgmr.msrb.gmra.mxu3 %vm623_vm15, %v2703_v28  ;;  %v1323_v28 = vpop.permute.xlu2 %1322 }
 0x46c   :  { %2543 = vmatmul.msk.bf16.gmra.mxu3 %vm623_vm15, %v2704_v29  ;;  %2552 = vmatmul.msk.bf16.vlgmr.msra.gmra.mxu2 %vm623_vm15, %v2705_v26 }
 0x4cf   :  { %v3444_v4 = vpop.f32.mrf.mxu2  ;;  %v3446_v11 = vpop.f32.mrf.mxu3 }
 0x4d0   :  { %v1233_v20 = vmul.f32 %v3444_v4, %v3444_v4  ;;  %v1235_v21 = vmul.f32 %v3446_v11, %v3446_v11 }
 0x4d2   :  { %v1237_v25 = vadd.f32 %v1235_v21, %v1233_v20 }
 0x4d7   :  { %v3448_v0 = vpop.f32.mrf.mxu2  ;;  %v3450_v19 = vpop.f32.mrf.mxu3 }
 0x4d8   :  { %v1234_v42 = vmul.f32 %v3448_v0, %v3448_v0  ;;  %v1236_v7 = vmul.f32 %v3450_v19, %v3450_v19 }
 0x4da   :  { %v1238_v54 = vadd.f32 %v1236_v7, %v1234_v42 }
 0x4df   :  { %v3456_v22 = vpop.f32.mrf.mxu2  ;;  %v1368_v31 = vpop.f32.mrf.mxu3 }
 0x4e0   :  { %v1239_v27 = vmul.f32 %v3456_v22, %v3456_v22  ;;  %v1369_v21 = vadd.f32 %v1368_v31, %v1323_v28 }
 0x4e2   :  { %v1241_v34 = vadd.f32 %v1239_v27, %v1237_v25 }
 0x4e4   :  { %v1243_v46 = vadd.f32 1e-12, %v1241_v34  ;;  %v1446_v34 = vadd.f32 %v1023_v40, %v3257_v5  ;;  %v2706_v5 = vld [vmem:[%s3716_s2 + $0x28] sm:$0xff] }
 0x4e6   :  { %2748 = vrsqrt.f32 %v1243_v46  ;;  %vm1252_vm13 = vcmp.eq.f32.partialorder %v1243_v46, inf  ;;  %v1255_v52 = vand.u32 2147483648, %v1243_v46  ;;  %vm1254_vm14 = vcmp.eq.f32.partialorder %v1243_v46, 0.0 }
 0x4e7   :  { %v3464_v1 = vpop.f32.mrf.mxu2  ;;  %v1370_v53 = vpop.f32.mrf.mxu3  ;;  %v3490_v7 = vadd.f32 %v1446_v34, %v1369_v21 }
 0x4e8   :  { %v1240_v36 = vmul.f32 %v3464_v1, %v3464_v1  ;;  %v1371_v23 = vadd.f32 %v1370_v53, %v1328_v13 }
 0x4ea   :  { %v1242_v8 = vadd.f32 %v1240_v36, %v1238_v54  ;;  %v3486_v35 = vadd.f32 %v1447_v59, %v1371_v23  ;;  %v1543_v23 = vpop.permute.xlu1 %1542 }
 0x4ec   :  { %v2749_v9 = vpop.eup %2748  ;;  %v1244_v10 = vadd.f32 1e-12, %v1242_v8  ;;  %v1522_v6 = vpack.c.bf16 %v3486_v35, %v3490_v7 }
 0x4ed   :  { %v1246_v44 = vmul.f32 %v2749_v9, %v1243_v46 }
 0x4ee   :  { %2750 = vrsqrt.f32 %v1244_v10  ;;  %vm1264_vm2 = vcmp.eq.f32.partialorder %v1244_v10, inf  ;;  %v1267_v31 = vand.u32 2147483648, %v1244_v10  ;;  %vm1266_vm3 = vcmp.eq.f32.partialorder %v1244_v10, 0.0 }
 0x4ef   :  { %v1247_v56 = vmul.f32 %v2749_v9, %v1246_v44  ;;  %v1373_v3 = vpop.f32.mrf.mxu3 }
 0x4f0   :  { %v1374_v12 = vadd.f32 %v1373_v3, %v1333_v37 }
 0x4f1   :  { %v1248_v57 = vmul.f32 0.5, %v1247_v56 }
 0x4f2   :  { %v3481_v25 = vadd.f32 %v1448_v15, %v1374_v12 }
 0x4f3   :  { %v1249_v50 = vsub.f32 1.5, %v1248_v57  ;;  %v2707_v57 = vld [vmem:[%s3716_s2 + $0x30] sm:$0xff] }
 0x4f4   :  { %v2751_v51 = vpop.eup %2750 }
 0x4f5   :  { %v1250_v47 = vmul.f32 %v2749_v9, %v1249_v50  ;;  %v1258_v41 = vmul.f32 %v2751_v51, %v1244_v10 }
 0x4f7   :  { %v1251_v17 = vmul.f32 %v1250_v47, %v1243_v46  ;;  %v1259_v32 = vmul.f32 %v2751_v51, %v1258_v41  ;;  %v1375_v60 = vpop.f32.mrf.mxu3 }
 0x4f8   :  { %v1376_v24 = vadd.f32 %v1375_v60, %v1338_v45 }
 0x4f9   :  { %v1253_v29 = vsel %vm1252_vm13, %v1243_v46, %v1251_v17  ;;  %v1260_v20 = vmul.f32 0.5, %v1259_v32  ;;  %v2702_v17 = vld [vmem:[%s3724_s10 + $0x8] sm:$0xff] }
 0x4fa   :  { %v1256_v55 = vsel %vm1254_vm14, %v1255_v52, %v1253_v29  ;;  %v3483_v38 = vadd.f32 %v1449_v16, %v1376_v24 }
 0x4fb   :  { %v1269_v39 = vadd.f32 1.0, %v1256_v55  ;;  %v1261_v27 = vsub.f32 1.5, %v1260_v20  ;;  %v1538_v20 = vpop.permute.xlu1 %1537  ;;  %v1533_v55 = vpop.permute.xlu0 %1532 }
 0x4fc   :  { %v1523_v42 = vpack.c.bf16 %v3483_v38, %v3481_v25 }
 0x4fd   :  { %2752 = vrsqrt.f32 %v1269_v39  ;;  %v1262_v43 = vmul.f32 %v2751_v51, %v1261_v27  ;;  %vm1277_vm5 = vweird.f32 %v1269_v39 }
 0x4fe   :  { %1583 = vmatpush.bf16.msra.mxu3 %v1523_v42 }
 0x4ff   :  { %v1263_v46 = vmul.f32 %v1262_v43, %v1244_v10 }
 0x501   :  { %v1265_v53 = vsel %vm1264_vm2, %v1244_v10, %v1263_v46 }
 0x502   :  { %v1268_v54 = vsel %vm1266_vm3, %v1267_v31, %v1265_v53  ;;  %1584 = vmatpush.bf16.msra.mxu3 %v1522_v6 }
 0x503   :  { %v2753_v36 = vpop.eup %2752  ;;  %v1270_v37 = vadd.f32 1.0, %v1268_v54 }
 0x504   :  { %v1272_v8 = vmul.f32 %v2753_v36, %v1269_v39  ;;  %vm1278_vm4 = vweird.f32 %v2753_v36  ;;  %v1548_v39 = vpop.permute.xlu2 %1547 }
 0x505   :  { %2754 = vrsqrt.f32 %v1270_v37  ;;  %2578 = vmatmul.msk.bf16.vlgmr.msra.gmra.mxu3 %vm122_vm0, %v2706_v5  ;;  %vm1279_vm7 = vmor %vm1277_vm5, %vm1278_vm4  ;;  %vm1287_vm9 = vweird.f32 %v1270_v37 }
 0x506   :  { %v1273_v9 = vmul.f32 %v2753_v36, %v1272_v8 }
 0x508   :  { %v1274_v26 = vmul.f32 0.5, %v1273_v9 }
 0x50a   :  { %v1275_v44 = vsub.f32 1.5, %v1274_v26 }
 0x50b   :  { %v2755_v33 = vpop.eup %2754 }
 0x50c   :  { %v1282_v45 = vmul.f32 %v2755_v33, %v1270_v37  ;;  %v1276_v3 = vmul.f32 %v2753_v36, %v1275_v44  ;;  %vm1288_vm8 = vweird.f32 %v2755_v33 }
 0x50d   :  { %vm1289_vm10 = vmor %vm1287_vm9, %vm1288_vm8 }
 0x50e   :  { %v1283_v56 = vmul.f32 %v2755_v33, %v1282_v45  ;;  %v1280_v2 = vsel %vm1279_vm7, %v2753_v36, %v1276_v3 }
 0x50f   :  { %v1291_v51 = vmul.f32 %v1280_v2, %v3444_v4  ;;  %v1293_v58 = vmul.f32 %v1280_v2, %v3446_v11  ;;  %v1295_v47 = vmul.f32 %v1280_v2, %v3456_v22  ;;  %v2564_v4 = vld [vmem:[%s3716_s2 + $0x38] sm:$0xf]  ;;  %v1422_v22 = vpop.f32.mrf.mxu1 }
 0x510   :  { %v1284_v10 = vmul.f32 0.5, %v1283_v56  ;;  %v1564_v11 = vunpack.c.l.b16 %v2564_v4 }
 0x512   :  { %v1285_v30 = vsub.f32 1.5, %v1284_v10 }
 0x514   :  { %v1286_v50 = vmul.f32 %v2755_v33, %v1285_v30 }
 0x515   :  { %2579 = vmatmul.msk.bf16.gmra.mxu3 %vm122_vm0, %v2707_v57 }
 0x516   :  { %v1290_v61 = vsel %vm1289_vm10, %v2755_v33, %v1286_v50 }
 0x517   :  { %v1292_v41 = vmul.f32 %v1290_v61, %v3448_v0  ;;  %v1294_v40 = vmul.f32 %v1290_v61, %v3450_v19  ;;  %v1296_v12 = vmul.f32 %v1290_v61, %v3464_v1  ;;  %v1567_v0 = vpack.c.b16 %v1564_v11, %v1564_v11  ;;  %v1403_v19 = vpop.f32.mrf.mxu0  ;;  %v1424_v52 = vpop.f32.mrf.mxu1 }
 0x519   :  { %v1302_v13 = vpack.c.bf16 %v1296_v12, %v1295_v47  ;;  %v1300_v15 = vpack.c.bf16 %v1292_v41, %v1291_v51  ;;  %v1301_v16 = vpack.c.bf16 %v1294_v40, %v1293_v58  ;;  %v2709_v41 = vld [vmem:[%s3718_s4 + $0x28] sm:$0xff]  ;;  %v1441_v12 = vpop.f32.mrf.mxu2 }
 0x51a   :  { %v3552_v40 = vld [vmem:[%s3722_s8 + $0x28] sm:$0xff] }
 0x51b   :  { %1469 = vmatpush.bf16.msrb.mxu0 %v1300_v15  ;;  %1487 = vmatpush.bf16.msrb.mxu1 %v1301_v16 }
 0x51c   :  { %1505 = vmatpush.bf16.msrb.mxu2 %v1302_v13 }
 0x51e   :  { %2557 = vmatmul.msk.bf16.vlgmr.msrb.gmra.mxu0 %vm324_vm1, %v2702_v17  ;;  %2558 = vmatmul.msk.bf16.vlgmr.msrb.gmra.mxu1 %vm324_vm1, %v2702_v17 }
 0x51f   :  { %2559 = vmatmul.msk.bf16.vlgmr.msrb.gmra.mxu2 %vm324_vm1, %v2702_v17  ;;  %v1405_v60 = vpop.f32.mrf.mxu0 }
 0x521   :  { %v1443_v13 = vpop.f32.mrf.mxu2 }
 0x525   :  { %2580 = vmatmul.msk.bf16.gmra.mxu3 %vm122_vm0, %v1567_v0  ;;  %v1642_v0 = vpop.permute.xlu0 %1641 }
 0x588   :  { %v1586_v1 = vpop.f32.mrf.mxu3 }
 0x589   :  { %v1587_v43 = vadd.f32 %v1586_v1, %v1533_v55 }
 0x58b   :  { %v1604_v26 = vmul.f32 0.2, %v1587_v43  ;;  %vm1600_vm14 = vcmp.gt.f32.partialorder %v1587_v43, 0.0 }
 0x58d   :  { %v1608_v58 = vsel %vm1600_vm14, %v1587_v43, %v1604_v26 }
 0x590   :  { %v1588_v32 = vpop.f32.mrf.mxu3 }
 0x591   :  { %v1589_v21 = vadd.f32 %v1588_v32, %v1538_v20  ;;  %v1553_v32 = vpop.permute.xlu0 %1552  ;;  %v1627_v20 = vpop.permute.xlu1 %1626 }
 0x593   :  { %vm1601_vm12 = vcmp.gt.f32.partialorder %v1589_v21, 0.0  ;;  %v1605_v6 = vmul.f32 0.2, %v1589_v21 }
 0x595   :  { %v1609_v10 = vsel %vm1601_vm12, %v1589_v21, %v1605_v6 }
 0x598   :  { %v1591_v24 = vpop.f32.mrf.mxu3 }
 0x599   :  { %v1592_v29 = vadd.f32 %v1591_v24, %v1543_v23 }
 0x59b   :  { %v1471_v28 = vpop.f32.mrf.mxu0  ;;  %v1489_v59 = vpop.f32.mrf.mxu1  ;;  %v1606_v46 = vmul.f32 0.2, %v1592_v29  ;;  %vm1602_vm11 = vcmp.gt.f32.partialorder %v1592_v29, 0.0 }
 0x59c   :  { %v1472_v27 = vadd.f32 %v1471_v28, %v1403_v19  ;;  %v1490_v34 = vadd.f32 %v1489_v59, %v1422_v22  ;;  %v1637_v19 = vpop.permute.xlu2 %1636 }
 0x59d   :  { %v1610_v33 = vsel %vm1602_vm11, %v1592_v29, %v1606_v46 }
 0x59e   :  { %v1476_v36 = vmul.f32 0.05, %v1472_v27  ;;  %v1494_v37 = vmul.f32 0.05, %v1490_v34 }
 0x5a0   :  { %v1593_v42 = vpop.f32.mrf.mxu3  ;;  %v3520_v57 = vadd.f32 %v1476_v36, %v3324_v48  ;;  %v3523_v30 = vadd.f32 %v1494_v37, %v3327_v49  ;;  %v1617_v48 = vpack.c.bf16 %v1609_v10, %v1608_v58  ;;  %v2708_v49 = vld [vmem:[%s3718_s4 + $0x20] sm:$0xff]  ;;  %v2711_v58 = vld [vmem:[%s3720_s6 + $0x28] sm:$0xff] }
 0x5a1   :  { %v1594_v31 = vadd.f32 %v1593_v42, %v1548_v39 }
 0x5a2   :  { %v1507_v15 = vpop.f32.mrf.mxu2 }
 0x5a3   :  { %vm1603_vm13 = vcmp.gt.f32.partialorder %v1594_v31, 0.0  ;;  %v1607_v53 = vmul.f32 0.2, %v1594_v31  ;;  %v1473_v5 = vpop.f32.mrf.mxu0  ;;  %v1491_v54 = vpop.f32.mrf.mxu1  ;;  %v1508_v55 = vadd.f32 %v1507_v15, %v1441_v12 }
 0x5a4   :  { %v1474_v8 = vadd.f32 %v1473_v5, %v1405_v60  ;;  %v1492_v9 = vadd.f32 %v1491_v54, %v1424_v52  ;;  %v1632_v23 = vpop.permute.xlu2 %1631 }
 0x5a5   :  { %v1611_v44 = vsel %vm1603_vm13, %v1594_v31, %v1607_v53  ;;  %v1512_v53 = vmul.f32 0.05, %v1508_v55 }
 0x5a6   :  { %v1618_v45 = vpack.c.bf16 %v1611_v44, %v1610_v33  ;;  %v1477_v56 = vmul.f32 0.05, %v1474_v8  ;;  %v1495_v3 = vmul.f32 0.05, %v1492_v9 }
 0x5a7   :  { %v3578_v33 = vadd.f32 %v1512_v53, %v3358_v14 }
 0x5a8   :  { %v3526_v2 = vadd.f32 %v1477_v56, %v3330_v62  ;;  %v3529_v50 = vadd.f32 %v1495_v3, %v3333_v63  ;;  %v1596_v51 = vpop.f32.mrf.mxu3  ;;  %1666 = vmatpush.bf16.msra.mxu0 %v1618_v45  ;;  %v3541_v62 = vld [vmem:[%s3722_s8 + $0x20] sm:$0xff] }
 0x5a9   :  { %v3565_v60 = vadd.f32 %v1596_v51, %v1553_v32  ;;  %v2710_v3 = vld [vmem:[%s3720_s6 + $0x20] sm:$0xff] }
 0x5aa   :  { %v1763_v61 = vpack.c.bf16 %v3526_v2, %v3520_v57  ;;  %v1799_v47 = vpack.c.bf16 %v3529_v50, %v3523_v30  ;;  %v1509_v16 = vpop.f32.mrf.mxu2 }
 0x5ab   :  { %v1510_v24 = vadd.f32 %v1509_v16, %v1443_v13 }
 0x5ac   :  { %1667 = vmatpush.bf16.msra.mxu0 %v1617_v48  ;;  %1787 = vmatpush.bf16.msra.mxu2 %v1763_v61 }
 0x5ad   :  { %v1513_v43 = vmul.f32 0.05, %v1510_v24 }
 0x5af   :  { %2597 = vmatmul.msk.bf16.vlgmr.msra.gmra.mxu0 %vm122_vm0, %v2708_v49  ;;  %2629 = vmatmul.msk.bf16.vlgmr.msra.gmra.mxu2 %vm324_vm1, %v3541_v62  ;;  %v3573_v8 = vadd.f32 %v1513_v43, %v3361_v18 }
 0x5b0   :  { %1807 = vmatpush.bf16.msrb.mxu0 %v1799_v47  ;;  %v1598_v63 = vpop.f32.mrf.mxu3 }
 0x5b1   :  { %v1819_v56 = vpack.c.bf16 %v3573_v8, %v3578_v33 }
 0x5bf   :  { %2598 = vmatmul.msk.bf16.gmra.mxu0 %vm122_vm0, %v2709_v41  ;;  %2630 = vmatmul.msk.bf16.gmra.mxu2 %vm324_vm1, %v3552_v40 }
 0x5cf   :  { %2631 = vmatmul.msk.bf16.vlgmr.msrb.gmra.mxu0 %vm324_vm1, %v3541_v62 }
 0x5df   :  { %2632 = vmatmul.msk.bf16.gmra.mxu0 %vm324_vm1, %v3552_v40 }
 0x62c   :  { %v1669_v17 = vpop.f32.mrf.mxu0 }
 0x62d   :  { %v1670_v39 = vadd.f32 %v1669_v17, %v1627_v20 }
 0x62f   :  { %v1683_v5 = vmul.f32 0.2, %v1670_v39  ;;  %vm1679_vm5 = vcmp.gt.f32.partialorder %v1670_v39, 0.0 }
 0x631   :  { %v1687_v44 = vsel %vm1679_vm5, %v1670_v39, %v1683_v5 }
 0x632   :  { %v3561_v4 = vpop.f32.mrf.mxu2 }
 0x633   :  { %v1839_v41 = vmul.f32 %v3561_v4, %v3561_v4 }
 0x634   :  { %v1671_v11 = vpop.f32.mrf.mxu0 }
 0x635   :  { %v1672_v59 = vadd.f32 %v1671_v11, %v1632_v23 }
 0x637   :  { %v1684_v46 = vmul.f32 0.2, %v1672_v59  ;;  %vm1680_vm4 = vcmp.gt.f32.partialorder %v1672_v59, 0.0 }
 0x639   :  { %v1688_v9 = vsel %vm1680_vm4, %v1672_v59, %v1684_v46 }
 0x63a   :  { %v3563_v22 = vpop.f32.mrf.mxu2  ;;  %v1696_v45 = vpack.c.bf16 %v1688_v9, %v1687_v44 }
 0x63b   :  { %v1840_v16 = vmul.f32 %v3563_v22, %v3563_v22 }
 0x63c   :  { %v1674_v1 = vpop.f32.mrf.mxu0 }
 0x63d   :  { %v1675_v52 = vadd.f32 %v1674_v1, %v1637_v19 }
 0x63f   :  { %v1685_v27 = vmul.f32 0.2, %v1675_v52  ;;  %vm1681_vm2 = vcmp.gt.f32.partialorder %v1675_v52, 0.0 }
 0x641   :  { %v1689_v54 = vsel %vm1681_vm2, %v1675_v52, %v1685_v27 }
 0x642   :  { %v3567_v28 = vpop.f32.mrf.mxu2 }
 0x643   :  { %v2107_v29 = vmul.f32 %v3567_v28, %v3565_v60 }
 0x644   :  { %v1676_v21 = vpop.f32.mrf.mxu0 }
 0x645   :  { %v2108_v34 = vpack.c.bf16 %v2107_v29, %v2107_v29  ;;  %v1677_v42 = vadd.f32 %v1676_v21, %v1642_v0 }
 0x647   :  { %vm1682_vm3 = vcmp.gt.f32.partialorder %v1677_v42, 0.0  ;;  %v1686_v31 = vmul.f32 0.2, %v1677_v42  ;;  %v2118_v6 = vsel %vm630_vm6, %v2108_v34, 0 }
 0x648   :  { %2127 = vmatpush.bf16.msra.mxu0 %v2118_v6 }
 0x649   :  { %v1690_v36 = vsel %vm1682_vm3, %v1677_v42, %v1686_v31 }
 0x64a   :  { %v1697_v37 = vpack.c.bf16 %v1690_v36, %v1689_v54 }
 0x64c   :  { %1745 = vmatpush.bf16.msra.mxu1 %v1697_v37  ;;  %v3575_v26 = vpop.f32.mrf.mxu0 }
 0x64d   :  { %v1841_v12 = vmul.f32 %v3575_v26, %v3575_v26 }
 0x64f   :  { %v1843_v13 = vadd.f32 %v1841_v12, %v1839_v41 }
 0x650   :  { %1746 = vmatpush.bf16.msra.mxu1 %v1696_v45 }
 0x653   :  { %2615 = vmatmul.msk.bf16.vlgmr.msra.gmra.mxu1 %vm122_vm0, %v2710_v3  ;;  %v1796_v3 = vpop.f32.mrf.mxu2 }
 0x654   :  { %1827 = vmatpush.bf16.msrb.mxu1 %v1819_v56  ;;  %v3586_v18 = vpop.f32.mrf.mxu0 }
 0x655   :  { %v1842_v17 = vmul.f32 %v3586_v18, %v3586_v18 }
 0x657   :  { %v1844_v19 = vadd.f32 %v1842_v17, %v1840_v16 }
 0x65c   :  { %v3588_v10 = vpop.f32.mrf.mxu0 }
 0x65d   :  { %v2134_v14 = vmul.f32 %v3588_v10, %v3565_v60 }
 0x65f   :  { %v2135_v51 = vpack.c.bf16 %v2134_v14, %v2134_v14 }
 0x661   :  { %v2137_v61 = vsel %vm630_vm6, %v2135_v51, 0 }
 0x662   :  { %2146 = vmatpush.bf16.msra.mxu1 %v2137_v61  ;;  %v2029_v61 = vmul.f32 %v1796_v3, %v3567_v28 }
 0x663   :  { %2616 = vmatmul.msk.bf16.gmra.mxu1 %vm122_vm0, %v2711_v58 }
 0x664   :  { %v1816_v14 = vpop.f32.mrf.mxu0 }
 0x665   :  { %v2030_v41 = vmul.f32 %v1816_v14, %v3588_v10 }
 0x673   :  { %2633 = vmatmul.msk.bf16.vlgmr.msrb.gmra.mxu1 %vm324_vm1, %v3541_v62 }
 0x683   :  { %2634 = vmatmul.msk.bf16.gmra.mxu1 %vm324_vm1, %v3552_v40 }
 0x6d0   :  { %v3601_v47 = vpop.f32.mrf.mxu1 }
 0x6d8   :  { %v3603_v48 = vpop.f32.mrf.mxu1 }
 0x6e0   :  { %v3605_v49 = vpop.f32.mrf.mxu1 }
 0x6e8   :  { %v3607_v63 = vpop.f32.mrf.mxu1 }
 0x6f0   :  { %v3613_v15 = vpop.f32.mrf.mxu1 }
 0x6f1   :  { %v1845_v62 = vmul.f32 %v3613_v15, %v3613_v15 }
 0x6f3   :  { %v1847_v40 = vadd.f32 %v1845_v62, %v1843_v13  ;;  %v2031_v62 = vadd.f32 %v2030_v41, %v2029_v61 }
 0x6f5   :  { %v1849_v11 = vadd.f32 1e-12, %v1847_v40 }
 0x6f7   :  { %2756 = vrsqrt.f32 %v1849_v11  ;;  %vm1858_vm0 = vcmp.eq.f32.partialorder %v1849_v11, inf  ;;  %v1861_v42 = vand.u32 2147483648, %v1849_v11  ;;  %vm1860_vm7 = vcmp.eq.f32.partialorder %v1849_v11, 0.0 }
 0x6f8   :  { %v3621_v0 = vpop.f32.mrf.mxu1 }
 0x6f9   :  { %v1846_v1 = vmul.f32 %v3621_v0, %v3621_v0 }
 0x6fb   :  { %v1848_v32 = vadd.f32 %v1846_v1, %v1844_v19 }
 0x6fd   :  { %v2757_v52 = vpop.eup %2756  ;;  %v1850_v23 = vadd.f32 1e-12, %v1848_v32 }
 0x6fe   :  { %v1852_v24 = vmul.f32 %v2757_v52, %v1849_v11 }
 0x6ff   :  { %2758 = vrsqrt.f32 %v1850_v23  ;;  %vm1870_vm8 = vcmp.eq.f32.partialorder %v1850_v23, inf  ;;  %v1873_v37 = vand.u32 2147483648, %v1850_v23  ;;  %vm1872_vm9 = vcmp.eq.f32.partialorder %v1850_v23, 0.0 }
 0x700   :  { %v1853_v59 = vmul.f32 %v2757_v52, %v1852_v24  ;;  %v1834_v54 = vpop.f32.mrf.mxu1 }
 0x702   :  { %v1854_v29 = vmul.f32 0.5, %v1853_v59  ;;  %v2153_v59 = vmul.f32 %v1834_v54, %v3565_v60 }
 0x704   :  { %v1855_v20 = vsub.f32 1.5, %v1854_v29 }
 0x705   :  { %v2759_v55 = vpop.eup %2758 }
 0x706   :  { %v1856_v21 = vmul.f32 %v2757_v52, %v1855_v20  ;;  %v1864_v39 = vmul.f32 %v2759_v55, %v1850_v23 }
 0x708   :  { %v1857_v27 = vmul.f32 %v1856_v21, %v1849_v11  ;;  %v1865_v34 = vmul.f32 %v2759_v55, %v1864_v39  ;;  %v1836_v12 = vpop.f32.mrf.mxu1 }
 0x709   :  { %v2032_v40 = vmul.f32 %v1836_v12, %v1834_v54 }
 0x70a   :  { %v1859_v43 = vsel %vm1858_vm0, %v1849_v11, %v1857_v27  ;;  %v1866_v46 = vmul.f32 0.5, %v1865_v34 }
 0x70b   :  { %v1862_v31 = vsel %vm1860_vm7, %v1861_v42, %v1859_v43  ;;  %v2033_v1 = vadd.f32 %v2032_v40, %v2031_v62 }
 0x70c   :  { %v1875_v6 = vadd.f32 1.0, %v1862_v31  ;;  %v1867_v53 = vsub.f32 1.5, %v1866_v46 }
 0x70d   :  { %v2039_v28 = vmul.f32 %v2033_v1, %v3565_v60 }
 0x70e   :  { %2760 = vrsqrt.f32 %v1875_v6  ;;  %v1868_v5 = vmul.f32 %v2759_v55, %v1867_v53  ;;  %vm1883_vm11 = vweird.f32 %v1875_v6 }
 0x70f   :  { %v2040_v21 = vpack.c.bf16 %v2039_v28, %v2039_v28 }
 0x710   :  { %v1869_v36 = vmul.f32 %v1868_v5, %v1850_v23  ;;  %v1711_v5 = vpop.permute.xlu2 %1710 }
 0x711   :  { %v2083_v60 = vsel %vm630_vm6, %v2040_v21, 0  ;;  %v1751_v62 = vadd.f32 %v3603_v48, %v1711_v5 }
 0x712   :  { %v1871_v9 = vsel %vm1870_vm8, %v1850_v23, %v1869_v36 }
 0x713   :  { %v1874_v44 = vsel %vm1872_vm9, %v1873_v37, %v1871_v9  ;;  %v1716_v9 = vpop.permute.xlu0 %1715  ;;  %v2173_v48 = vadd.f32 %v1751_v62, %v3486_v35 }
 0x714   :  { %v2761_v45 = vpop.eup %2760  ;;  %v1876_v56 = vadd.f32 1.0, %v1874_v44  ;;  %v1754_v21 = vadd.f32 %v3605_v49, %v1716_v9 }
 0x715   :  { %v1878_v51 = vmul.f32 %v2761_v45, %v1875_v6  ;;  %vm1884_vm10 = vweird.f32 %v2761_v45  ;;  %v2154_v6 = vpack.c.bf16 %v2153_v59, %v2153_v59 }
 0x716   :  { %2762 = vrsqrt.f32 %v1876_v56  ;;  %vm1885_vm12 = vmor %vm1883_vm11, %vm1884_vm10  ;;  %vm1893_vm14 = vweird.f32 %v1876_v56 }
 0x717   :  { %v1879_v58 = vmul.f32 %v2761_v45, %v1878_v51 }
 0x719   :  { %v1880_v13 = vmul.f32 0.5, %v1879_v58 }
 0x71b   :  { %v1881_v17 = vsub.f32 1.5, %v1880_v13  ;;  %v2054_v41 = vpop.permute.xlu0 %2053 }
 0x71c   :  { %v2763_v16 = vpop.eup %2762 }
 0x71d   :  { %v1888_v11 = vmul.f32 %v2763_v16, %v1876_v56  ;;  %v1882_v32 = vmul.f32 %v2761_v45, %v1881_v17  ;;  %vm1894_vm13 = vweird.f32 %v2763_v16  ;;  %v2049_v56 = vpop.permute.xlu2 %2048 }
 0x71e   :  { %vm1895_vm2 = vmor %vm1893_vm14, %vm1894_vm13 }
 0x71f   :  { %v1889_v19 = vmul.f32 %v2763_v16, %v1888_v11  ;;  %v1886_v24 = vsel %vm1885_vm12, %v2761_v45, %v1882_v32 }
 0x720   :  { %v1897_v29 = vmul.f32 %v1886_v24, %v3561_v4  ;;  %v1899_v20 = vmul.f32 %v1886_v24, %v3575_v26  ;;  %v1901_v39 = vmul.f32 %v1886_v24, %v3613_v15  ;;  %v2714_v4 = vld [vmem:[%s3723_s9 + $0x10] sm:$0xff]  ;;  %v2716_v26 = vld [vmem:[%s3725_s11 + $0x20] sm:$0xff]  ;;  %v1706_v15 = vpop.permute.xlu1 %1705 }
 0x721   :  { %v1890_v52 = vmul.f32 0.5, %v1889_v19  ;;  %v1749_v13 = vadd.f32 %v3601_v47, %v1706_v15  ;;  %v2718_v19 = vld [vmem:[%s3727_s13 + $0x10] sm:$0xff] }
 0x722   :  { %2670 = vmatmul.msk.bf16.vlgmr.msra.gmra.mxu0 %vm623_vm15, %v2718_v19  ;;  %2671 = vmatmul.msk.bf16.vlgmr.msra.gmra.mxu1 %vm623_vm15, %v2718_v19 }
 0x723   :  { %v1891_v23 = vsub.f32 1.5, %v1890_v52  ;;  %v2172_v1 = vadd.f32 %v1749_v13, %v3490_v7 }
 0x725   :  { %v1892_v10 = vmul.f32 %v2763_v16, %v1891_v23  ;;  %v2064_v24 = vpop.permute.xlu2 %2063 }
 0x727   :  { %v1896_v55 = vsel %vm1895_vm2, %v2763_v16, %v1892_v10 }
 0x728   :  { %v1898_v27 = vmul.f32 %v1896_v55, %v3563_v22  ;;  %v1900_v34 = vmul.f32 %v1896_v55, %v3586_v18  ;;  %v1902_v42 = vmul.f32 %v1896_v55, %v3621_v0  ;;  %v2156_v22 = vsel %vm630_vm6, %v2154_v6, 0  ;;  %v2717_v18 = vld [vmem:[%s3725_s11 + $0x28] sm:$0xff]  ;;  %v1721_v54 = vpop.permute.xlu1 %1720  ;;  %v2283_v55 = vpop.permute.xlu0 %2282 }
 0x729   :  { %v1756_v15 = vadd.f32 %v3607_v63, %v1721_v54 }
 0x72a   :  { %v1944_v43 = vpack.c.bf16 %v1902_v42, %v1901_v39  ;;  %v1906_v46 = vpack.c.bf16 %v1898_v27, %v1897_v29  ;;  %v1929_v31 = vpack.c.bf16 %v1900_v34, %v1899_v20 }
 0x72c   :  { %1922 = vmatpush.bf16.msrb.mxu2 %v1906_v46  ;;  %1937 = vmatpush.bf16.msrb.mxu3 %v1929_v31  ;;  %v2174_v31 = vadd.f32 %v1754_v21, %v3481_v25 }
 0x72f   :  { %2641 = vmatmul.msk.bf16.vlgmr.msrb.gmra.mxu2 %vm324_vm1, %v2714_v4  ;;  %2642 = vmatmul.msk.bf16.vlgmr.msrb.gmra.mxu3 %vm324_vm1, %v2714_v4 }
 0x730   :  { %1952 = vmatpush.bf16.msra.mxu2 %v1944_v43  ;;  %2092 = vmatpush.bf16.msra.mxu3 %v2083_v60  ;;  %v2059_v61 = vpop.permute.xlu1 %2058  ;;  %v2298_v62 = vpop.permute.xlu0 %2297 }
 0x734   :  { %2165 = vmatpush.bf16.msrb.mxu2 %v2156_v22  ;;  %v2293_v22 = vpop.permute.xlu2 %2292 }
 0x738   :  { %v2288_v29 = vpop.permute.xlu1 %2287 }
 0x73f   :  { %2643 = vmatmul.msk.bf16.vlgmr.msra.gmra.mxu2 %vm324_vm1, %v2714_v4  ;;  %2662 = vmatmul.msk.bf16.vlgmr.msra.gmra.mxu3 %vm623_vm15, %v2716_v26 }
 0x74f   :  { %2663 = vmatmul.msk.bf16.gmra.mxu3 %vm623_vm15, %v2717_v18  ;;  %2672 = vmatmul.msk.bf16.vlgmr.msrb.gmra.mxu2 %vm623_vm15, %v2718_v19 }
 0x7b2   :  { %v3651_v0 = vpop.f32.mrf.mxu2  ;;  %v3653_v53 = vpop.f32.mrf.mxu3 }
 0x7b3   :  { %v1959_v44 = vmul.f32 %v3651_v0, %v3651_v0  ;;  %v1961_v45 = vmul.f32 %v3653_v53, %v3653_v53 }
 0x7b5   :  { %v1963_v51 = vadd.f32 %v1961_v45, %v1959_v44 }
 0x7ba   :  { %v3655_v36 = vpop.f32.mrf.mxu2  ;;  %v3657_v37 = vpop.f32.mrf.mxu3 }
 0x7bb   :  { %v1960_v40 = vmul.f32 %v3655_v36, %v3655_v36  ;;  %v1962_v16 = vmul.f32 %v3657_v37, %v3657_v37 }
 0x7bd   :  { %v1964_v52 = vadd.f32 %v1962_v16, %v1960_v40 }
 0x7c2   :  { %v3663_v3 = vpop.f32.mrf.mxu2  ;;  %v2094_v14 = vpop.f32.mrf.mxu3 }
 0x7c3   :  { %v1965_v58 = vmul.f32 %v3663_v3, %v3663_v3  ;;  %v2095_v11 = vadd.f32 %v2094_v14, %v2049_v56 }
 0x7c5   :  { %v1967_v12 = vadd.f32 %v1965_v58, %v1963_v51  ;;  %v2176_v10 = vadd.f32 %v2172_v1, %v2095_v11  ;;  %v2175_v51 = vadd.f32 %v1756_v15, %v3483_v38 }
 0x7c7   :  { %v1969_v17 = vadd.f32 1e-12, %v1967_v12  ;;  %v2300_v35 = vmul.f32 %v2283_v55, %v2176_v10 }
 0x7c9   :  { %2764 = vrsqrt.f32 %v1969_v17  ;;  %vm1978_vm6 = vcmp.eq.f32.partialorder %v1969_v17, inf  ;;  %v1981_v58 = vand.u32 2147483648, %v1969_v17  ;;  %vm1980_vm15 = vcmp.eq.f32.partialorder %v1969_v17, 0.0 }
 0x7ca   :  { %v3677_v32 = vpop.f32.mrf.mxu2  ;;  %v2096_v47 = vpop.f32.mrf.mxu3 }
 0x7cb   :  { %v1966_v23 = vmul.f32 %v3677_v32, %v3677_v32  ;;  %v2097_v28 = vadd.f32 %v2096_v47, %v2054_v41 }
 0x7cd   :  { %v1968_v59 = vadd.f32 %v1966_v23, %v1964_v52  ;;  %v2177_v7 = vadd.f32 %v2173_v48, %v2097_v28 }
 0x7cf   :  { %v2765_v20 = vpop.eup %2764  ;;  %v1970_v39 = vadd.f32 1e-12, %v1968_v59  ;;  %v2301_v27 = vmul.f32 %v2288_v29, %v2177_v7 }
 0x7d0   :  { %v1972_v34 = vmul.f32 %v2765_v20, %v1969_v17 }
 0x7d1   :  { %2766 = vrsqrt.f32 %v1970_v39  ;;  %v2304_v43 = vadd.f32 %v2301_v27, %v2300_v35  ;;  %vm1990_vm3 = vcmp.eq.f32.partialorder %v1970_v39, inf  ;;  %v1993_v1 = vand.u32 2147483648, %v1970_v39 }
 0x7d2   :  { %v1973_v42 = vmul.f32 %v2765_v20, %v1972_v34  ;;  %v2099_v46 = vpop.f32.mrf.mxu3  ;;  %vm1992_vm4 = vcmp.eq.f32.partialorder %v1970_v39, 0.0 }
 0x7d3   :  { %v2100_v6 = vadd.f32 %v2099_v46, %v2059_v61 }
 0x7d4   :  { %v1974_v4 = vmul.f32 0.5, %v1973_v42 }
 0x7d5   :  { %v2178_v60 = vadd.f32 %v2174_v31, %v2100_v6 }
 0x7d6   :  { %v1975_v26 = vsub.f32 1.5, %v1974_v4 }
 0x7d7   :  { %v2767_v18 = vpop.eup %2766  ;;  %v2302_v5 = vmul.f32 %v2293_v22, %v2178_v60  ;;  %v2715_v22 = vld [vmem:[%s3724_s10 + $0x10] sm:$0xff]  ;;  %s2803_s10 = smov [#allocation3]  }
 0x7d8   :  { %v1976_v49 = vmul.f32 %v2765_v20, %v1975_v26  ;;  %v1984_v9 = vmul.f32 %v2767_v18, %v1970_v39  ;;  %s2349_s7 = sshll.u32 %s2803_s10, 4  ;;  %s2350_s7 = int_to_ptr.vmem [resolvable:$true] %s2349_s7 }
 0x7d9   :  { %v2305_v44 = vadd.f32 %v2304_v43, %v2302_v5 }
 0x7da   :  { %v1977_v45 = vmul.f32 %v1976_v49, %v1969_v17  ;;  %v1985_v56 = vmul.f32 %v2767_v18, %v1984_v9  ;;  %v2101_v14 = vpop.f32.mrf.mxu3 }
 0x7db   :  { %v2102_v25 = vadd.f32 %v2101_v14, %v2064_v24 }
 0x7dc   :  { %v1979_v61 = vsel %vm1978_vm6, %v1969_v17, %v1977_v45  ;;  %v1986_v41 = vmul.f32 0.5, %v1985_v56 }
 0x7dd   :  { %v1982_v12 = vsel %vm1980_vm15, %v1981_v58, %v1979_v61  ;;  %v2179_v13 = vadd.f32 %v2175_v51, %v2102_v25 }
 0x7de   :  { %v1995_v40 = vadd.f32 1.0, %v1982_v12  ;;  %v1987_v63 = vsub.f32 1.5, %v1986_v41 }
 0x7df   :  { %v2303_v54 = vmul.f32 %v2298_v62, %v2179_v13 }
 0x7e0   :  { %2768 = vrsqrt.f32 %v1995_v40  ;;  %v1988_v16 = vmul.f32 %v2767_v18, %v1987_v63  ;;  %vm2003_vm0 = vweird.f32 %v1995_v40 }
 0x7e1   :  { %v3689_v11 = vadd.f32 %v2305_v44, %v2303_v54 }
 0x7e2   :  { %v1989_v19 = vmul.f32 %v1988_v16, %v1970_v39 }
 0x7e4   :  { %v1991_v38 = vsel %vm1990_vm3, %v1970_v39, %v1989_v19 }
 0x7e5   :  { %v1994_v47 = vsel %vm1992_vm4, %v1993_v1, %v1991_v38 }
 0x7e6   :  { %v2769_v48 = vpop.eup %2768  ;;  %v1996_v52 = vadd.f32 1.0, %v1994_v47 }
 0x7e7   :  { %v1998_v17 = vmul.f32 %v2769_v48, %v1995_v40  ;;  %vm2004_vm5 = vweird.f32 %v2769_v48 }
 0x7e8   :  { %2770 = vrsqrt.f32 %v1996_v52  ;;  %vm2005_vm7 = vmor %vm2003_vm0, %vm2004_vm5  ;;  %vm2013_vm9 = vweird.f32 %v1996_v52 }
 0x7e9   :  { %v1999_v23 = vmul.f32 %v2769_v48, %v1998_v17 }
 0x7eb   :  { %v2000_v28 = vmul.f32 0.5, %v1999_v23 }
 0x7ed   :  { %v2001_v10 = vsub.f32 1.5, %v2000_v28 }
 0x7ee   :  { %v2771_v24 = vpop.eup %2770 }
 0x7ef   :  { %v2008_v59 = vmul.f32 %v2771_v24, %v1996_v52  ;;  %v2002_v29 = vmul.f32 %v2769_v48, %v2001_v10  ;;  %vm2014_vm8 = vweird.f32 %v2771_v24 }
 0x7f0   :  { %vm2015_vm10 = vmor %vm2013_vm9, %vm2014_vm8 }
 0x7f1   :  { %v2009_v7 = vmul.f32 %v2771_v24, %v2008_v59  ;;  %v2006_v21 = vsel %vm2005_vm7, %v2769_v48, %v2002_v29 }
 0x7f2   :  { %v2017_v27 = vmul.f32 %v2006_v21, %v3651_v0  ;;  %v2019_v34 = vmul.f32 %v2006_v21, %v3653_v53  ;;  %v2021_v42 = vmul.f32 %v2006_v21, %v3663_v3  ;;  %v2129_v0 = vpop.f32.mrf.mxu0  ;;  %v2148_v53 = vpop.f32.mrf.mxu1 }
 0x7f3   :  { %v2010_v20 = vmul.f32 0.5, %v2009_v7 }
 0x7f5   :  { %v2011_v55 = vsub.f32 1.5, %v2010_v20 }
 0x7f7   :  { %v2012_v39 = vmul.f32 %v2771_v24, %v2011_v55 }
 0x7f9   :  { %v2016_v35 = vsel %vm2015_vm10, %v2771_v24, %v2012_v39 }
 0x7fa   :  { %v2018_v43 = vmul.f32 %v2016_v35, %v3655_v36  ;;  %v2020_v46 = vmul.f32 %v2016_v35, %v3657_v37  ;;  %v2022_v31 = vmul.f32 %v2016_v35, %v3677_v32  ;;  %v2167_v36 = vpop.f32.mrf.mxu2  ;;  %v2131_v37 = vpop.f32.mrf.mxu0 }
 0x7fb   :  { %v2150_v3 = vpop.f32.mrf.mxu1 }
 0x7fc   :  { %v2028_v6 = vpack.c.bf16 %v2022_v31, %v2021_v42  ;;  %v2026_v4 = vpack.c.bf16 %v2018_v43, %v2017_v27  ;;  %v2027_v60 = vpack.c.bf16 %v2020_v46, %v2019_v34  ;;  %v2307_v34 = vrot.slane %v3689_v11, 4 }
 0x7fe   :  { %2195 = vmatpush.bf16.msrb.mxu0 %v2026_v4  ;;  %2213 = vmatpush.bf16.msrb.mxu1 %v2027_v60  ;;  %v2318_v60 = vpop.permute.xlu1 %2317 }
 0x7ff   :  { %2231 = vmatpush.bf16.msra.mxu2 %v2028_v6  ;;  %v2308_v6 = vadd.f32 %v2307_v34, %v3689_v11 }
 0x801   :  { %2677 = vmatmul.msk.bf16.vlgmr.msrb.gmra.mxu0 %vm324_vm1, %v2715_v22  ;;  %2678 = vmatmul.msk.bf16.vlgmr.msrb.gmra.mxu1 %vm324_vm1, %v2715_v22 }
 0x802   :  { %2679 = vmatmul.msk.bf16.vlgmr.msra.gmra.mxu2 %vm324_vm1, %v2715_v22  ;;  %v2169_v32 = vpop.f32.mrf.mxu2  ;;  %v2323_v22 = vpop.permute.xlu2 %2322 }
 0x87e   :  { %v2197_v26 = vpop.f32.mrf.mxu0  ;;  %v2215_v18 = vpop.f32.mrf.mxu1 }
 0x87f   :  { %v2198_v15 = vadd.f32 %v2197_v26, %v2129_v0  ;;  %v2216_v5 = vadd.f32 %v2215_v18, %v2148_v53 }
 0x881   :  { %v2202_v49 = vmul.f32 0.05, %v2198_v15  ;;  %v2220_v9 = vmul.f32 0.05, %v2216_v5 }
 0x883   :  { %v2204_v44 = vadd.f32 %v2202_v49, %v3520_v57  ;;  %v2222_v45 = vadd.f32 %v2220_v9, %v3523_v30 }
 0x885   :  { %v2233_v56 = vpop.f32.mrf.mxu2  ;;  %v2242_v41 = vmul.f32 %v2204_v44, %v2204_v44  ;;  %v2244_v12 = vmul.f32 %v2222_v45, %v2222_v45  ;;  %v2339_v44 = vpop.permute.xlu0 %2338 }
 0x886   :  { %v2234_v14 = vadd.f32 %v2233_v56, %v2167_v36  ;;  %v2199_v51 = vpop.f32.mrf.mxu0  ;;  %v2217_v58 = vpop.f32.mrf.mxu1  ;;  %v2341_v11 = vperm.slane %v2339_v44, 0 }
 0x887   :  { %v2200_v25 = vadd.f32 %v2199_v51, %v2131_v37  ;;  %v2218_v61 = vadd.f32 %v2217_v58, %v2150_v3  ;;  %v2246_v54 = vadd.f32 %v2244_v12, %v2242_v41  ;;  %v2309_v37 = vrot.slane %v2308_v6, 2 }
 0x888   :  { %v2238_v13 = vmul.f32 0.05, %v2234_v14 }
 0x889   :  { %v2203_v62 = vmul.f32 0.05, %v2200_v25  ;;  %v2221_v40 = vmul.f32 0.05, %v2218_v61  ;;  %v2310_v26 = vadd.f32 %v2309_v37, %v2308_v6 }
 0x88a   :  { %v2240_v63 = vadd.f32 %v2238_v13, %v3578_v33 }
 0x88b   :  { %v2205_v19 = vadd.f32 %v2203_v62, %v3526_v2  ;;  %v2223_v57 = vadd.f32 %v2221_v40, %v3529_v50  ;;  %v2311_v5 = vrot.slane %v2310_v26, 1 }
 0x88c   :  { %v2248_v16 = vmul.f32 %v2240_v63, %v2240_v63 }
 0x88d   :  { %v2235_v30 = vpop.f32.mrf.mxu2  ;;  %v2243_v47 = vmul.f32 %v2205_v19, %v2205_v19  ;;  %v2245_v48 = vmul.f32 %v2223_v57, %v2223_v57  ;;  %v2312_v45 = vadd.f32 %v2311_v5, %v2310_v26 }
 0x88e   :  { %v2250_v1 = vadd.f32 %v2248_v16, %v2246_v54  ;;  %v2236_v38 = vadd.f32 %v2235_v30, %v2169_v32 }
 0x88f   :  { %v2247_v23 = vadd.f32 %v2245_v48, %v2243_v47 }
 0x890   :  { %2772 = vrsqrt.f32 %v2250_v1  ;;  %v2239_v52 = vmul.f32 0.05, %v2236_v38  ;;  %vm2259_vm1 = vcmp.eq.f32.partialorder %v2250_v1, inf  ;;  %v2262_v42 = vand.u32 2147483648, %v2250_v1 }
 0x891   :  { %vm2261_vm11 = vcmp.eq.f32.partialorder %v2250_v1, 0.0 }
 0x892   :  { %v2241_v17 = vadd.f32 %v2239_v52, %v3573_v8 }
 0x894   :  { %v2249_v28 = vmul.f32 %v2241_v17, %v2241_v17 }
 0x896   :  { %v2773_v24 = vpop.eup %2772  ;;  %v2251_v10 = vadd.f32 %v2249_v28, %v2247_v23 }
 0x897   :  { %v2253_v33 = vmul.f32 %v2773_v24, %v2250_v1 }
 0x898   :  { %2774 = vrsqrt.f32 %v2251_v10  ;;  %vm2271_vm12 = vcmp.eq.f32.partialorder %v2251_v10, inf  ;;  %v2274_v31 = vand.u32 2147483648, %v2251_v10  ;;  %vm2273_vm13 = vcmp.eq.f32.partialorder %v2251_v10, 0.0 }
 0x899   :  { %v2254_v59 = vmul.f32 %v2773_v24, %v2253_v33 }
 0x89b   :  { %v2255_v7 = vmul.f32 0.5, %v2254_v59 }
 0x89d   :  { %v2256_v2 = vsub.f32 1.5, %v2255_v7 }
 0x89e   :  { %v2775_v29 = vpop.eup %2774 }
 0x89f   :  { %v2265_v50 = vmul.f32 %v2775_v29, %v2251_v10  ;;  %v2257_v20 = vmul.f32 %v2773_v24, %v2256_v2 }
 0x8a1   :  { %v2266_v55 = vmul.f32 %v2775_v29, %v2265_v50  ;;  %v2258_v21 = vmul.f32 %v2257_v20, %v2250_v1 }
 0x8a3   :  { %v2267_v39 = vmul.f32 0.5, %v2266_v55  ;;  %v2260_v8 = vsel %vm2259_vm1, %v2250_v1, %v2258_v21 }
 0x8a4   :  { %v2263_v46 = vsel %vm2261_vm11, %v2262_v42, %v2260_v8 }
 0x8a5   :  { %v2268_v27 = vsub.f32 1.5, %v2267_v39  ;;  %v2325_v53 = vmul.f32 %v2318_v60, %v2263_v46 }
 0x8a7   :  { %v2269_v35 = vmul.f32 %v2775_v29, %v2268_v27 }
 0x8a9   :  { %v2270_v43 = vmul.f32 %v2269_v35, %v2251_v10 }
 0x8ab   :  { %v2272_v4 = vsel %vm2271_vm12, %v2251_v10, %v2270_v43 }
 0x8ac   :  { %v2275_v0 = vsel %vm2273_vm13, %v2274_v31, %v2272_v4 }
 0x8ad   :  { %v2326_v36 = vmul.f32 %v2323_v22, %v2275_v0 }
 0x8af   :  { %v2327_v3 = vadd.f32 %v2326_v36, %v2325_v53 }
 0x8b1   :  { %v2328_v32 = vrot.slane %v2327_v3, 4 }
 0x8b3   :  { %v2329_v18 = vadd.f32 %v2328_v32, %v2327_v3 }
 0x8b5   :  { %v2330_v15 = vrot.slane %v2329_v18, 2 }
 0x8b7   :  { %v2331_v49 = vadd.f32 %v2330_v15, %v2329_v18 }
 0x8b9   :  { %v2332_v9 = vrot.slane %v2331_v49, 1 }
 0x8bb   :  { %v2333_v56 = vadd.f32 %v2332_v9, %v2331_v49 }
 0x8bd   :  { %v2334_v14 = vadd.f32 %v2333_v56, %v2312_v45 }
 0x8bf   :  { %v2342_v51 = vadd.f32 %v2341_v11, %v2334_v14 }
 0x8c1   :  { %2343 = vst [vmem:[#allocation3] sm:$0x1] %v2342_v51 }
 0x8c2   :  { %2354 = dma.vmem_to_hbm [thread:$0]  %s2350_s7, 16, %s2352_s12, [#allocation4]  }
 0x8c3   :  { %2800 = dma.done.wait [#allocation4], 16  }
 0x8c4   :  { %2801 = vsyncadd [#allocation4], 4294967280 }
 0x8c5   :  { %2359 = vsyncpa [#allocation4], 1 }

</bundles_post_ra>
